<compile_context>
chip_gen: v7x
topology: tpu7x:2x2x1
jax: 0.10.0
libtpu: 0.0.40
codegen_flags: <defaults>
</compile_context>

<pallas_src>
import functools

import jax
import jax.numpy as jnp
import numpy as np
from jax.experimental import pallas as pl
from jax.experimental.pallas import tpu as pltpu

BN_EPS = 1e-3


def _conv_pool_stats_kernel(xs_ref, w_ref, b_ref, y_ref, s1_ref, s2_ref, p_buf):
    """One image per grid step.

    xs_ref: (1, 2, 2, Hp2, Cin, Wp2)  parity-split, zero-padded input (W on lanes)
    w_ref : (Cco, 49*Cin)             conv weights, k = (kh*7 + kw)*Cin + ci
    b_ref : (Cco, 1)                  conv bias
    y_ref : (1, Ho, Cout, Wo)         pre-BN concat([conv, pool]) output
    s1_ref: (1, Cout, 1)              per-channel sum    (accumulated over grid)
    s2_ref: (1, Cout, 1)              per-channel sum-sq (accumulated over grid)
    p_buf : VMEM (Ho, 49*Cin, Wo)     im2col scratch
    """
    _, Ho, Cout, Wo = y_ref.shape
    Cin = xs_ref.shape[4]
    Cco, K = w_ref.shape

    # ---- im2col gather: stride-2 taps are contiguous slices of the parity planes
    t = 0
    for kh in range(7):
        ph, ra = kh % 2, kh // 2          # padded row 2*oh + kh = 2*(oh+ra) + ph
        for kw in range(7):
            pw, ca = kw % 2, kw // 2
            p_buf[:, t * Cin:(t + 1) * Cin, :] = (
                xs_ref[0, ph, pw, ra:ra + Ho, :, ca:ca + Wo])   # (Ho, Cin, Wo)
            t += 1

    # ---- conv: one batched matmul per image, K = 49*Cin, default MXU precision
    w_b = jnp.broadcast_to(w_ref[...][None], (Ho, Cco, K))       # (Ho, Cco, K)
    conv = jax.lax.dot_general(
        w_b, p_buf[...],
        dimension_numbers=(((2,), (1,)), ((0,), (0,))),
        preferred_element_type=jnp.float32)                      # (Ho, Cco, Wo)
    y_ref[0, :, 0:Cco, :] = conv + b_ref[...]

    # ---- 2x2 stride-2 max-pool over the un-padded region -------------------
    # unpadded rows {2oh, 2oh+1} == padded rows {2(oh+1)+1, 2(oh+2)+0}
    p11 = xs_ref[0, 1, 1, 1:1 + Ho, :, 1:1 + Wo]
    p10 = xs_ref[0, 1, 0, 1:1 + Ho, :, 2:2 + Wo]
    p01 = xs_ref[0, 0, 1, 2:2 + Ho, :, 1:1 + Wo]
    p00 = xs_ref[0, 0, 0, 2:2 + Ho, :, 2:2 + Wo]
    y_ref[0, :, Cco:Cout, :] = jnp.maximum(jnp.maximum(p11, p10),
                                           jnp.maximum(p01, p00))

    # ---- per-channel partial sums for BatchNorm (accumulator pattern) ------
    @pl.when(pl.program_id(0) == 0)
    def _():
        s1_ref[...] = jnp.zeros_like(s1_ref)
        s2_ref[...] = jnp.zeros_like(s2_ref)

    yb = y_ref[0]                                                # (Ho, Cout, Wo)
    s1_ref[...] += jnp.sum(yb, axis=(0, 2), keepdims=True)
    s2_ref[...] += jnp.sum(yb * yb, axis=(0, 2), keepdims=True)


def _bn_relu_kernel(y_ref, s1_ref, s2_ref, g_ref, be_ref, o_ref, *, inv_count):
    """BatchNorm (training-mode batch stats, biased variance) + ReLU finalize."""
    mean = s1_ref[...] * inv_count                  # (1, Cout, 1)
    var = s2_ref[...] * inv_count - mean * mean     # biased variance (E[x^2]-E[x]^2)
    rstd = jax.lax.rsqrt(var + BN_EPS)
    scale = g_ref[...] * rstd[0]                    # (Cout, 1)
    shift = be_ref[...] - mean[0] * scale           # (Cout, 1)
    o_ref[...] = jnp.maximum(y_ref[...] * scale + shift, 0.0)


def downsampler_block7(x_nchw, conv_w, conv_b, bn_gamma, bn_beta):
    """x_nchw: (N, Cin, H, W) f32;  conv_w: (Cco, Cin, 7, 7) torch OIHW layout."""
    N, Cin, H, W = x_nchw.shape
    Cco = conv_w.shape[0]
    Cout = Cco + Cin
    Ho, Wo = H // 2, W // 2
    Hp, Wp = H + 6, W + 6
    Hp2, Wp2 = Hp // 2, Wp // 2
    K = 49 * Cin

    # NCHW -> (N, H, Cin, W): channels on sublanes, W on lanes; pad H, W by 3.
    xt = jnp.transpose(x_nchw, (0, 2, 1, 3)).astype(jnp.float32)
    xp = jnp.pad(xt, ((0, 0), (3, 3), (0, 0), (3, 3)))
    # space-to-parity: xs[n, ph, pw, i, c, j] = xp[n, 2i+ph, c, 2j+pw]
    xs = xp.reshape(N, Hp2, 2, Cin, Wp2, 2).transpose(0, 2, 5, 1, 3, 4)
    # TODO(synk): at real ERFNet resolutions, fuse this pad + parity rearrangement
    # into the kernel (manual DMA / strided slices) to avoid the extra HBM pass.

    # Conv weights OIHW -> (Cco, (kh, kw, ci)) matching the im2col ordering.
    w2 = jnp.transpose(conv_w, (0, 2, 3, 1)).reshape(Cco, K).astype(jnp.float32)
    b2 = conv_b.reshape(Cco, 1).astype(jnp.float32)
    g2 = bn_gamma.reshape(Cout, 1).astype(jnp.float32)
    be2 = bn_beta.reshape(Cout, 1).astype(jnp.float32)

    # Pass 1: conv + pool + per-channel partial sums, pipelined over N.
    y, s1, s2 = pl.pallas_call(
        _conv_pool_stats_kernel,
        grid=(N,),
        out_shape=(
            jax.ShapeDtypeStruct((N, Ho, Cout, Wo), jnp.float32),
            jax.ShapeDtypeStruct((1, Cout, 1), jnp.float32),
            jax.ShapeDtypeStruct((1, Cout, 1), jnp.float32),
        ),
        in_specs=[
            pl.BlockSpec((1, 2, 2, Hp2, Cin, Wp2), lambda n: (n, 0, 0, 0, 0, 0)),
            pl.BlockSpec((Cco, K), lambda n: (0, 0)),
            pl.BlockSpec((Cco, 1), lambda n: (0, 0)),
        ],
        out_specs=(
            pl.BlockSpec((1, Ho, Cout, Wo), lambda n: (n, 0, 0, 0)),
            pl.BlockSpec((1, Cout, 1), lambda n: (0, 0, 0)),
            pl.BlockSpec((1, Cout, 1), lambda n: (0, 0, 0)),
        ),
        scratch_shapes=[pltpu.VMEM((Ho, K, Wo), jnp.float32)],
        compiler_params=pltpu.CompilerParams(
            dimension_semantics=("arbitrary",)),  # s1/s2 accumulate across steps
    )(xs, w2, b2)

    # Pass 2: BatchNorm + ReLU finalize, independent per image.
    inv_count = 1.0 / float(N * Ho * Wo)
    y_bn = pl.pallas_call(
        functools.partial(_bn_relu_kernel, inv_count=inv_count),
        grid=(N,),
        out_shape=jax.ShapeDtypeStruct((N, Ho, Cout, Wo), jnp.float32),
        in_specs=[
            pl.BlockSpec((1, Ho, Cout, Wo), lambda n: (n, 0, 0, 0)),
            pl.BlockSpec((1, Cout, 1), lambda n: (0, 0, 0)),
            pl.BlockSpec((1, Cout, 1), lambda n: (0, 0, 0)),
            pl.BlockSpec((Cout, 1), lambda n: (0, 0)),
            pl.BlockSpec((Cout, 1), lambda n: (0, 0)),
        ],
        out_specs=pl.BlockSpec((1, Ho, Cout, Wo), lambda n: (n, 0, 0, 0)),
        compiler_params=pltpu.CompilerParams(
            dimension_semantics=("parallel",)),
    )(y, s1, s2, g2, be2)

    # (N, Ho, Cout, Wo) -> NCHW
    return jnp.transpose(y_bn, (0, 2, 1, 3))


def _reference(x, w, b, gamma, beta):
    """Pure-JAX reference (matches PyTorch forward in training mode, f32 conv)."""
    conv = jax.lax.conv_general_dilated(
        x, w, window_strides=(2, 2), padding=((3, 3), (3, 3)),
        dimension_numbers=("NCHW", "OIHW", "NCHW"),
        precision=jax.lax.Precision.HIGHEST,
    ) + b[None, :, None, None]
    pool = jax.lax.reduce_window(x, -jnp.inf, jax.lax.max,
                                 (1, 1, 2, 2), (1, 1, 2, 2), "VALID")
    y = jnp.concatenate([conv, pool], axis=1)
    mean = jnp.mean(y, axis=(0, 2, 3), keepdims=True)
    var = jnp.mean((y - mean) ** 2, axis=(0, 2, 3), keepdims=True)
    y_hat = (y - mean) * jax.lax.rsqrt(var + BN_EPS)
    out = y_hat * gamma[None, :, None, None] + beta[None, :, None, None]
    return jnp.maximum(out, 0.0)


if __name__ == "__main__":
    # DownsamplerBlock7(ninput=4, noutput=8): conv 4 -> 4 channels, pool keeps 4.
    N, Cin, H, W = 2, 4, 16, 16
    Cout = 8
    Cco = Cout - Cin

    key = jax.random.PRNGKey(0)
    kx, kw, kb, kg, kbe = jax.random.split(key, 5)
    x = jax.random.normal(kx, (N, Cin, H, W), dtype=jnp.float32)
    conv_w = 0.1 * jax.random.normal(kw, (Cco, Cin, 7, 7), dtype=jnp.float32)
    conv_b = 0.1 * jax.random.normal(kb, (Cco,), dtype=jnp.float32)
    bn_gamma = 1.0 + 0.1 * jax.random.normal(kg, (Cout,), dtype=jnp.float32)
    bn_beta = 0.1 * jax.random.normal(kbe, (Cout,), dtype=jnp.float32)

    out = downsampler_block7(x, conv_w, conv_b, bn_gamma, bn_beta)
    out = jax.block_until_ready(out)

    ref = jax.block_until_ready(_reference(x, conv_w, conv_b, bn_gamma, bn_beta))
    if out.shape != (N, Cout, H // 2, W // 2):
        raise AssertionError(f"bad output shape {out.shape}")
    # Tolerance accounts for the default (single bf16 pass) MXU precision of the
    # K=196 im2col matmul vs. the full-f32 reference conv; observed error << 2e-2.
    if not np.allclose(np.asarray(out), np.asarray(ref), rtol=2e-2, atol=2e-2):
        raise AssertionError("Pallas kernel does not match reference")

    # TODO(synk): BatchNorm running_mean/running_var buffer updates (a training-time
    # side effect of the PyTorch forward) are not replicated; output is unaffected.
    print("KERNEL_OK")
</pallas_src>

<mosaic_0001>
module attributes {stable_mosaic.version = 11 : i64} {
  func.func @_conv_pool_stats_kernel(%arg0: i32, %arg1: memref<1x2x2x11x4x11xf32, #tpu.memory_space<vmem>>, %arg2: memref<4x196xf32, #tpu.memory_space<vmem>>, %arg3: memref<4x1xf32, #tpu.memory_space<vmem>>, %arg4: memref<1x8x8x8xf32, #tpu.memory_space<vmem>>, %arg5: memref<1x8x1xf32, #tpu.memory_space<vmem>>, %arg6: memref<1x8x1xf32, #tpu.memory_space<vmem>>, %arg7: memref<8x196x8xf32, #tpu.memory_space<vmem>>) attributes {dimension_semantics = [#tpu.dimension_semantics<arbitrary>], iteration_bounds = array<i64: 2>, scalar_prefetch = 0 : i64, scratch_operands = 1 : i64, tpu.core_type = #tpu.core_type<tc>, window_params = [{transform_indices = @transform_0, window_bounds = array<i64: 1, 2, 2, 11, 4, 11>}, {pipeline_mode = #tpu.pipeline_mode<synchronous>, transform_indices = @transform_1, window_bounds = array<i64: 4, 196>}, {pipeline_mode = #tpu.pipeline_mode<synchronous>, transform_indices = @transform_2, window_bounds = array<i64: 4, 1>}, {transform_indices = @transform_3, window_bounds = array<i64: 1, 8, 8, 8>}, {pipeline_mode = #tpu.pipeline_mode<synchronous>, transform_indices = @transform_4, window_bounds = array<i64: 1, 8, 1>}, {pipeline_mode = #tpu.pipeline_mode<synchronous>, transform_indices = @transform_5, window_bounds = array<i64: 1, 8, 1>}]} {
    %c0 = arith.constant 0 : index
    %c0_0 = arith.constant 0 : index
    %c0_1 = arith.constant 0 : index
    %c0_2 = arith.constant 0 : index
    %c0_3 = arith.constant 0 : index
    %c0_4 = arith.constant 0 : index
    %0 = vector.load %arg1[%c0, %c0_0, %c0_1, %c0_2, %c0_3, %c0_4] : memref<1x2x2x11x4x11xf32, #tpu.memory_space<vmem>>, vector<1x1x1x8x4x8xf32>
    %1 = vector.shape_cast %0 : vector<1x1x1x8x4x8xf32> to vector<8x4x8xf32>
    %c0_5 = arith.constant 0 : index
    %c0_6 = arith.constant 0 : index
    %c0_7 = arith.constant 0 : index
    %2 = vector.load %arg7[%c0_5, %c0_6, %c0_7] : memref<8x196x8xf32, #tpu.memory_space<vmem>>, vector<8x4x8xf32>
    tpu.vector_store %arg7[%c0_5, %c0_6, %c0_7], %1 {strides = array<i32>} : memref<8x196x8xf32, #tpu.memory_space<vmem>>, vector<8x4x8xf32>,
    %c0_8 = arith.constant 0 : index
    %c0_9 = arith.constant 0 : index
    %c1 = arith.constant 1 : index
    %c0_10 = arith.constant 0 : index
    %c0_11 = arith.constant 0 : index
    %c0_12 = arith.constant 0 : index
    %3 = vector.load %arg1[%c0_8, %c0_9, %c1, %c0_10, %c0_11, %c0_12] : memref<1x2x2x11x4x11xf32, #tpu.memory_space<vmem>>, vector<1x1x1x8x4x8xf32>
    %4 = vector.shape_cast %3 : vector<1x1x1x8x4x8xf32> to vector<8x4x8xf32>
    %c0_13 = arith.constant 0 : index
    %c4 = arith.constant 4 : index
    %c0_14 = arith.constant 0 : index
    %5 = vector.load %arg7[%c0_13, %c4, %c0_14] : memref<8x196x8xf32, #tpu.memory_space<vmem>>, vector<8x4x8xf32>
    tpu.vector_store %arg7[%c0_13, %c4, %c0_14], %4 {strides = array<i32>} : memref<8x196x8xf32, #tpu.memory_space<vmem>>, vector<8x4x8xf32>,
    %c0_15 = arith.constant 0 : index
    %c0_16 = arith.constant 0 : index
    %c0_17 = arith.constant 0 : index
    %c0_18 = arith.constant 0 : index
    %c0_19 = arith.constant 0 : index
    %c1_20 = arith.constant 1 : index
    %6 = vector.load %arg1[%c0_15, %c0_16, %c0_17, %c0_18, %c0_19, %c1_20] : memref<1x2x2x11x4x11xf32, #tpu.memory_space<vmem>>, vector<1x1x1x8x4x8xf32>
    %7 = vector.shape_cast %6 : vector<1x1x1x8x4x8xf32> to vector<8x4x8xf32>
    %c0_21 = arith.constant 0 : index
    %c8 = arith.constant 8 : index
    %c0_22 = arith.constant 0 : index
    %8 = vector.load %arg7[%c0_21, %c8, %c0_22] : memref<8x196x8xf32, #tpu.memory_space<vmem>>, vector<8x4x8xf32>
    tpu.vector_store %arg7[%c0_21, %c8, %c0_22], %7 {strides = array<i32>} : memref<8x196x8xf32, #tpu.memory_space<vmem>>, vector<8x4x8xf32>,
    %c0_23 = arith.constant 0 : index
    %c0_24 = arith.constant 0 : index
    %c1_25 = arith.constant 1 : index
    %c0_26 = arith.constant 0 : index
    %c0_27 = arith.constant 0 : index
    %c1_28 = arith.constant 1 : index
    %9 = vector.load %arg1[%c0_23, %c0_24, %c1_25, %c0_26, %c0_27, %c1_28] : memref<1x2x2x11x4x11xf32, #tpu.memory_space<vmem>>, vector<1x1x1x8x4x8xf32>
    %10 = vector.shape_cast %9 : vector<1x1x1x8x4x8xf32> to vector<8x4x8xf32>
    %c0_29 = arith.constant 0 : index
    %c12 = arith.constant 12 : index
    %c0_30 = arith.constant 0 : index
    %11 = vector.load %arg7[%c0_29, %c12, %c0_30] : memref<8x196x8xf32, #tpu.memory_space<vmem>>, vector<8x4x8xf32>
    tpu.vector_store %arg7[%c0_29, %c12, %c0_30], %10 {strides = array<i32>} : memref<8x196x8xf32, #tpu.memory_space<vmem>>, vector<8x4x8xf32>,
    %c0_31 = arith.constant 0 : index
    %c0_32 = arith.constant 0 : index
    %c0_33 = arith.constant 0 : index
    %c0_34 = arith.constant 0 : index
    %c0_35 = arith.constant 0 : index
    %c2 = arith.constant 2 : index
    %12 = vector.load %arg1[%c0_31, %c0_32, %c0_33, %c0_34, %c0_35, %c2] : memref<1x2x2x11x4x11xf32, #tpu.memory_space<vmem>>, vector<1x1x1x8x4x8xf32>
    %13 = vector.shape_cast %12 : vector<1x1x1x8x4x8xf32> to vector<8x4x8xf32>
    %c0_36 = arith.constant 0 : index
    %c16 = arith.constant 16 : index
    %c0_37 = arith.constant 0 : index
    %14 = vector.load %arg7[%c0_36, %c16, %c0_37] : memref<8x196x8xf32, #tpu.memory_space<vmem>>, vector<8x4x8xf32>
    tpu.vector_store %arg7[%c0_36, %c16, %c0_37], %13 {strides = array<i32>} : memref<8x196x8xf32, #tpu.memory_space<vmem>>, vector<8x4x8xf32>,
    %c0_38 = arith.constant 0 : index
    %c0_39 = arith.constant 0 : index
    %c1_40 = arith.constant 1 : index
    %c0_41 = arith.constant 0 : index
    %c0_42 = arith.constant 0 : index
    %c2_43 = arith.constant 2 : index
    %15 = vector.load %arg1[%c0_38, %c0_39, %c1_40, %c0_41, %c0_42, %c2_43] : memref<1x2x2x11x4x11xf32, #tpu.memory_space<vmem>>, vector<1x1x1x8x4x8xf32>
    %16 = vector.shape_cast %15 : vector<1x1x1x8x4x8xf32> to vector<8x4x8xf32>
    %c0_44 = arith.constant 0 : index
    %c20 = arith.constant 20 : index
    %c0_45 = arith.constant 0 : index
    %17 = vector.load %arg7[%c0_44, %c20, %c0_45] : memref<8x196x8xf32, #tpu.memory_space<vmem>>, vector<8x4x8xf32>
    tpu.vector_store %arg7[%c0_44, %c20, %c0_45], %16 {strides = array<i32>} : memref<8x196x8xf32, #tpu.memory_space<vmem>>, vector<8x4x8xf32>,
    %c0_46 = arith.constant 0 : index
    %c0_47 = arith.constant 0 : index
    %c0_48 = arith.constant 0 : index
    %c0_49 = arith.constant 0 : index
    %c0_50 = arith.constant 0 : index
    %c3 = arith.constant 3 : index
    %18 = vector.load %arg1[%c0_46, %c0_47, %c0_48, %c0_49, %c0_50, %c3] : memref<1x2x2x11x4x11xf32, #tpu.memory_space<vmem>>, vector<1x1x1x8x4x8xf32>
    %19 = vector.shape_cast %18 : vector<1x1x1x8x4x8xf32> to vector<8x4x8xf32>
    %c0_51 = arith.constant 0 : index
    %c24 = arith.constant 24 : index
    %c0_52 = arith.constant 0 : index
    %20 = vector.load %arg7[%c0_51, %c24, %c0_52] : memref<8x196x8xf32, #tpu.memory_space<vmem>>, vector<8x4x8xf32>
    tpu.vector_store %arg7[%c0_51, %c24, %c0_52], %19 {strides = array<i32>} : memref<8x196x8xf32, #tpu.memory_space<vmem>>, vector<8x4x8xf32>,
    %c0_53 = arith.constant 0 : index
    %c1_54 = arith.constant 1 : index
    %c0_55 = arith.constant 0 : index
    %c0_56 = arith.constant 0 : index
    %c0_57 = arith.constant 0 : index
    %c0_58 = arith.constant 0 : index
    %21 = vector.load %arg1[%c0_53, %c1_54, %c0_55, %c0_56, %c0_57, %c0_58] : memref<1x2x2x11x4x11xf32, #tpu.memory_space<vmem>>, vector<1x1x1x8x4x8xf32>
    %22 = vector.shape_cast %21 : vector<1x1x1x8x4x8xf32> to vector<8x4x8xf32>
    %c0_59 = arith.constant 0 : index
    %c28 = arith.constant 28 : index
    %c0_60 = arith.constant 0 : index
    %23 = vector.load %arg7[%c0_59, %c28, %c0_60] : memref<8x196x8xf32, #tpu.memory_space<vmem>>, vector<8x4x8xf32>
    tpu.vector_store %arg7[%c0_59, %c28, %c0_60], %22 {strides = array<i32>} : memref<8x196x8xf32, #tpu.memory_space<vmem>>, vector<8x4x8xf32>,
    %c0_61 = arith.constant 0 : index
    %c1_62 = arith.constant 1 : index
    %c1_63 = arith.constant 1 : index
    %c0_64 = arith.constant 0 : index
    %c0_65 = arith.constant 0 : index
    %c0_66 = arith.constant 0 : index
    %24 = vector.load %arg1[%c0_61, %c1_62, %c1_63, %c0_64, %c0_65, %c0_66] : memref<1x2x2x11x4x11xf32, #tpu.memory_space<vmem>>, vector<1x1x1x8x4x8xf32>
    %25 = vector.shape_cast %24 : vector<1x1x1x8x4x8xf32> to vector<8x4x8xf32>
    %c0_67 = arith.constant 0 : index
    %c32 = arith.constant 32 : index
    %c0_68 = arith.constant 0 : index
    %26 = vector.load %arg7[%c0_67, %c32, %c0_68] : memref<8x196x8xf32, #tpu.memory_space<vmem>>, vector<8x4x8xf32>
    tpu.vector_store %arg7[%c0_67, %c32, %c0_68], %25 {strides = array<i32>} : memref<8x196x8xf32, #tpu.memory_space<vmem>>, vector<8x4x8xf32>,
    %c0_69 = arith.constant 0 : index
    %c1_70 = arith.constant 1 : index
    %c0_71 = arith.constant 0 : index
    %c0_72 = arith.constant 0 : index
    %c0_73 = arith.constant 0 : index
    %c1_74 = arith.constant 1 : index
    %27 = vector.load %arg1[%c0_69, %c1_70, %c0_71, %c0_72, %c0_73, %c1_74] : memref<1x2x2x11x4x11xf32, #tpu.memory_space<vmem>>, vector<1x1x1x8x4x8xf32>
    %28 = vector.shape_cast %27 : vector<1x1x1x8x4x8xf32> to vector<8x4x8xf32>
    %c0_75 = arith.constant 0 : index
    %c36 = arith.constant 36 : index
    %c0_76 = arith.constant 0 : index
    %29 = vector.load %arg7[%c0_75, %c36, %c0_76] : memref<8x196x8xf32, #tpu.memory_space<vmem>>, vector<8x4x8xf32>
    tpu.vector_store %arg7[%c0_75, %c36, %c0_76], %28 {strides = array<i32>} : memref<8x196x8xf32, #tpu.memory_space<vmem>>, vector<8x4x8xf32>,
    %c0_77 = arith.constant 0 : index
    %c1_78 = arith.constant 1 : index
    %c1_79 = arith.constant 1 : index
    %c0_80 = arith.constant 0 : index
    %c0_81 = arith.constant 0 : index
    %c1_82 = arith.constant 1 : index
    %30 = vector.load %arg1[%c0_77, %c1_78, %c1_79, %c0_80, %c0_81, %c1_82] : memref<1x2x2x11x4x11xf32, #tpu.memory_space<vmem>>, vector<1x1x1x8x4x8xf32>
    %31 = vector.shape_cast %30 : vector<1x1x1x8x4x8xf32> to vector<8x4x8xf32>
    %c0_83 = arith.constant 0 : index
    %c40 = arith.constant 40 : index
    %c0_84 = arith.constant 0 : index
    %32 = vector.load %arg7[%c0_83, %c40, %c0_84] : memref<8x196x8xf32, #tpu.memory_space<vmem>>, vector<8x4x8xf32>
    tpu.vector_store %arg7[%c0_83, %c40, %c0_84], %31 {strides = array<i32>} : memref<8x196x8xf32, #tpu.memory_space<vmem>>, vector<8x4x8xf32>,
    %c0_85 = arith.constant 0 : index
    %c1_86 = arith.constant 1 : index
    %c0_87 = arith.constant 0 : index
    %c0_88 = arith.constant 0 : index
    %c0_89 = arith.constant 0 : index
    %c2_90 = arith.constant 2 : index
    %33 = vector.load %arg1[%c0_85, %c1_86, %c0_87, %c0_88, %c0_89, %c2_90] : memref<1x2x2x11x4x11xf32, #tpu.memory_space<vmem>>, vector<1x1x1x8x4x8xf32>
    %34 = vector.shape_cast %33 : vector<1x1x1x8x4x8xf32> to vector<8x4x8xf32>
    %c0_91 = arith.constant 0 : index
    %c44 = arith.constant 44 : index
    %c0_92 = arith.constant 0 : index
    %35 = vector.load %arg7[%c0_91, %c44, %c0_92] : memref<8x196x8xf32, #tpu.memory_space<vmem>>, vector<8x4x8xf32>
    tpu.vector_store %arg7[%c0_91, %c44, %c0_92], %34 {strides = array<i32>} : memref<8x196x8xf32, #tpu.memory_space<vmem>>, vector<8x4x8xf32>,
    %c0_93 = arith.constant 0 : index
    %c1_94 = arith.constant 1 : index
    %c1_95 = arith.constant 1 : index
    %c0_96 = arith.constant 0 : index
    %c0_97 = arith.constant 0 : index
    %c2_98 = arith.constant 2 : index
    %36 = vector.load %arg1[%c0_93, %c1_94, %c1_95, %c0_96, %c0_97, %c2_98] : memref<1x2x2x11x4x11xf32, #tpu.memory_space<vmem>>, vector<1x1x1x8x4x8xf32>
    %37 = vector.shape_cast %36 : vector<1x1x1x8x4x8xf32> to vector<8x4x8xf32>
    %c0_99 = arith.constant 0 : index
    %c48 = arith.constant 48 : index
    %c0_100 = arith.constant 0 : index
    %38 = vector.load %arg7[%c0_99, %c48, %c0_100] : memref<8x196x8xf32, #tpu.memory_space<vmem>>, vector<8x4x8xf32>
    tpu.vector_store %arg7[%c0_99, %c48, %c0_100], %37 {strides = array<i32>} : memref<8x196x8xf32, #tpu.memory_space<vmem>>, vector<8x4x8xf32>,
    %c0_101 = arith.constant 0 : index
    %c1_102 = arith.constant 1 : index
    %c0_103 = arith.constant 0 : index
    %c0_104 = arith.constant 0 : index
    %c0_105 = arith.constant 0 : index
    %c3_106 = arith.constant 3 : index
    %39 = vector.load %arg1[%c0_101, %c1_102, %c0_103, %c0_104, %c0_105, %c3_106] : memref<1x2x2x11x4x11xf32, #tpu.memory_space<vmem>>, vector<1x1x1x8x4x8xf32>
    %40 = vector.shape_cast %39 : vector<1x1x1x8x4x8xf32> to vector<8x4x8xf32>
    %c0_107 = arith.constant 0 : index
    %c52 = arith.constant 52 : index
    %c0_108 = arith.constant 0 : index
    %41 = vector.load %arg7[%c0_107, %c52, %c0_108] : memref<8x196x8xf32, #tpu.memory_space<vmem>>, vector<8x4x8xf32>
    tpu.vector_store %arg7[%c0_107, %c52, %c0_108], %40 {strides = array<i32>} : memref<8x196x8xf32, #tpu.memory_space<vmem>>, vector<8x4x8xf32>,
    %c0_109 = arith.constant 0 : index
    %c0_110 = arith.constant 0 : index
    %c0_111 = arith.constant 0 : index
    %c1_112 = arith.constant 1 : index
    %c0_113 = arith.constant 0 : index
    %c0_114 = arith.constant 0 : index
    %42 = vector.load %arg1[%c0_109, %c0_110, %c0_111, %c1_112, %c0_113, %c0_114] : memref<1x2x2x11x4x11xf32, #tpu.memory_space<vmem>>, vector<1x1x1x8x4x8xf32>
    %43 = vector.shape_cast %42 : vector<1x1x1x8x4x8xf32> to vector<8x4x8xf32>
    %c0_115 = arith.constant 0 : index
    %c56 = arith.constant 56 : index
    %c0_116 = arith.constant 0 : index
    %44 = vector.load %arg7[%c0_115, %c56, %c0_116] : memref<8x196x8xf32, #tpu.memory_space<vmem>>, vector<8x4x8xf32>
    tpu.vector_store %arg7[%c0_115, %c56, %c0_116], %43 {strides = array<i32>} : memref<8x196x8xf32, #tpu.memory_space<vmem>>, vector<8x4x8xf32>,
    %c0_117 = arith.constant 0 : index
    %c0_118 = arith.constant 0 : index
    %c1_119 = arith.constant 1 : index
    %c1_120 = arith.constant 1 : index
    %c0_121 = arith.constant 0 : index
    %c0_122 = arith.constant 0 : index
    %45 = vector.load %arg1[%c0_117, %c0_118, %c1_119, %c1_120, %c0_121, %c0_122] : memref<1x2x2x11x4x11xf32, #tpu.memory_space<vmem>>, vector<1x1x1x8x4x8xf32>
    %46 = vector.shape_cast %45 : vector<1x1x1x8x4x8xf32> to vector<8x4x8xf32>
    %c0_123 = arith.constant 0 : index
    %c60 = arith.constant 60 : index
    %c0_124 = arith.constant 0 : index
    %47 = vector.load %arg7[%c0_123, %c60, %c0_124] : memref<8x196x8xf32, #tpu.memory_space<vmem>>, vector<8x4x8xf32>
    tpu.vector_store %arg7[%c0_123, %c60, %c0_124], %46 {strides = array<i32>} : memref<8x196x8xf32, #tpu.memory_space<vmem>>, vector<8x4x8xf32>,
    %c0_125 = arith.constant 0 : index
    %c0_126 = arith.constant 0 : index
    %c0_127 = arith.constant 0 : index
    %c1_128 = arith.constant 1 : index
    %c0_129 = arith.constant 0 : index
    %c1_130 = arith.constant 1 : index
    %48 = vector.load %arg1[%c0_125, %c0_126, %c0_127, %c1_128, %c0_129, %c1_130] : memref<1x2x2x11x4x11xf32, #tpu.memory_space<vmem>>, vector<1x1x1x8x4x8xf32>
    %49 = vector.shape_cast %48 : vector<1x1x1x8x4x8xf32> to vector<8x4x8xf32>
    %c0_131 = arith.constant 0 : index
    %c64 = arith.constant 64 : index
    %c0_132 = arith.constant 0 : index
    %50 = vector.load %arg7[%c0_131, %c64, %c0_132] : memref<8x196x8xf32, #tpu.memory_space<vmem>>, vector<8x4x8xf32>
    tpu.vector_store %arg7[%c0_131, %c64, %c0_132], %49 {strides = array<i32>} : memref<8x196x8xf32, #tpu.memory_space<vmem>>, vector<8x4x8xf32>,
    %c0_133 = arith.constant 0 : index
    %c0_134 = arith.constant 0 : index
    %c1_135 = arith.constant 1 : index
    %c1_136 = arith.constant 1 : index
    %c0_137 = arith.constant 0 : index
    %c1_138 = arith.constant 1 : index
    %51 = vector.load %arg1[%c0_133, %c0_134, %c1_135, %c1_136, %c0_137, %c1_138] : memref<1x2x2x11x4x11xf32, #tpu.memory_space<vmem>>, vector<1x1x1x8x4x8xf32>
    %52 = vector.shape_cast %51 : vector<1x1x1x8x4x8xf32> to vector<8x4x8xf32>
    %c0_139 = arith.constant 0 : index
    %c68 = arith.constant 68 : index
    %c0_140 = arith.constant 0 : index
    %53 = vector.load %arg7[%c0_139, %c68, %c0_140] : memref<8x196x8xf32, #tpu.memory_space<vmem>>, vector<8x4x8xf32>
    tpu.vector_store %arg7[%c0_139, %c68, %c0_140], %52 {strides = array<i32>} : memref<8x196x8xf32, #tpu.memory_space<vmem>>, vector<8x4x8xf32>,
    %c0_141 = arith.constant 0 : index
    %c0_142 = arith.constant 0 : index
    %c0_143 = arith.constant 0 : index
    %c1_144 = arith.constant 1 : index
    %c0_145 = arith.constant 0 : index
    %c2_146 = arith.constant 2 : index
    %54 = vector.load %arg1[%c0_141, %c0_142, %c0_143, %c1_144, %c0_145, %c2_146] : memref<1x2x2x11x4x11xf32, #tpu.memory_space<vmem>>, vector<1x1x1x8x4x8xf32>
    %55 = vector.shape_cast %54 : vector<1x1x1x8x4x8xf32> to vector<8x4x8xf32>
    %c0_147 = arith.constant 0 : index
    %c72 = arith.constant 72 : index
    %c0_148 = arith.constant 0 : index
    %56 = vector.load %arg7[%c0_147, %c72, %c0_148] : memref<8x196x8xf32, #tpu.memory_space<vmem>>, vector<8x4x8xf32>
    tpu.vector_store %arg7[%c0_147, %c72, %c0_148], %55 {strides = array<i32>} : memref<8x196x8xf32, #tpu.memory_space<vmem>>, vector<8x4x8xf32>,
    %c0_149 = arith.constant 0 : index
    %c0_150 = arith.constant 0 : index
    %c1_151 = arith.constant 1 : index
    %c1_152 = arith.constant 1 : index
    %c0_153 = arith.constant 0 : index
    %c2_154 = arith.constant 2 : index
    %57 = vector.load %arg1[%c0_149, %c0_150, %c1_151, %c1_152, %c0_153, %c2_154] : memref<1x2x2x11x4x11xf32, #tpu.memory_space<vmem>>, vector<1x1x1x8x4x8xf32>
    %58 = vector.shape_cast %57 : vector<1x1x1x8x4x8xf32> to vector<8x4x8xf32>
    %c0_155 = arith.constant 0 : index
    %c76 = arith.constant 76 : index
    %c0_156 = arith.constant 0 : index
    %59 = vector.load %arg7[%c0_155, %c76, %c0_156] : memref<8x196x8xf32, #tpu.memory_space<vmem>>, vector<8x4x8xf32>
    tpu.vector_store %arg7[%c0_155, %c76, %c0_156], %58 {strides = array<i32>} : memref<8x196x8xf32, #tpu.memory_space<vmem>>, vector<8x4x8xf32>,
    %c0_157 = arith.constant 0 : index
    %c0_158 = arith.constant 0 : index
    %c0_159 = arith.constant 0 : index
    %c1_160 = arith.constant 1 : index
    %c0_161 = arith.constant 0 : index
    %c3_162 = arith.constant 3 : index
    %60 = vector.load %arg1[%c0_157, %c0_158, %c0_159, %c1_160, %c0_161, %c3_162] : memref<1x2x2x11x4x11xf32, #tpu.memory_space<vmem>>, vector<1x1x1x8x4x8xf32>
    %61 = vector.shape_cast %60 : vector<1x1x1x8x4x8xf32> to vector<8x4x8xf32>
    %c0_163 = arith.constant 0 : index
    %c80 = arith.constant 80 : index
    %c0_164 = arith.constant 0 : index
    %62 = vector.load %arg7[%c0_163, %c80, %c0_164] : memref<8x196x8xf32, #tpu.memory_space<vmem>>, vector<8x4x8xf32>
    tpu.vector_store %arg7[%c0_163, %c80, %c0_164], %61 {strides = array<i32>} : memref<8x196x8xf32, #tpu.memory_space<vmem>>, vector<8x4x8xf32>,
    %c0_165 = arith.constant 0 : index
    %c1_166 = arith.constant 1 : index
    %c0_167 = arith.constant 0 : index
    %c1_168 = arith.constant 1 : index
    %c0_169 = arith.constant 0 : index
    %c0_170 = arith.constant 0 : index
    %63 = vector.load %arg1[%c0_165, %c1_166, %c0_167, %c1_168, %c0_169, %c0_170] : memref<1x2x2x11x4x11xf32, #tpu.memory_space<vmem>>, vector<1x1x1x8x4x8xf32>
    %64 = vector.shape_cast %63 : vector<1x1x1x8x4x8xf32> to vector<8x4x8xf32>
    %c0_171 = arith.constant 0 : index
    %c84 = arith.constant 84 : index
    %c0_172 = arith.constant 0 : index
    %65 = vector.load %arg7[%c0_171, %c84, %c0_172] : memref<8x196x8xf32, #tpu.memory_space<vmem>>, vector<8x4x8xf32>
    tpu.vector_store %arg7[%c0_171, %c84, %c0_172], %64 {strides = array<i32>} : memref<8x196x8xf32, #tpu.memory_space<vmem>>, vector<8x4x8xf32>,
    %c0_173 = arith.constant 0 : index
    %c1_174 = arith.constant 1 : index
    %c1_175 = arith.constant 1 : index
    %c1_176 = arith.constant 1 : index
    %c0_177 = arith.constant 0 : index
    %c0_178 = arith.constant 0 : index
    %66 = vector.load %arg1[%c0_173, %c1_174, %c1_175, %c1_176, %c0_177, %c0_178] : memref<1x2x2x11x4x11xf32, #tpu.memory_space<vmem>>, vector<1x1x1x8x4x8xf32>
    %67 = vector.shape_cast %66 : vector<1x1x1x8x4x8xf32> to vector<8x4x8xf32>
    %c0_179 = arith.constant 0 : index
    %c88 = arith.constant 88 : index
    %c0_180 = arith.constant 0 : index
    %68 = vector.load %arg7[%c0_179, %c88, %c0_180] : memref<8x196x8xf32, #tpu.memory_space<vmem>>, vector<8x4x8xf32>
    tpu.vector_store %arg7[%c0_179, %c88, %c0_180], %67 {strides = array<i32>} : memref<8x196x8xf32, #tpu.memory_space<vmem>>, vector<8x4x8xf32>,
    %c0_181 = arith.constant 0 : index
    %c1_182 = arith.constant 1 : index
    %c0_183 = arith.constant 0 : index
    %c1_184 = arith.constant 1 : index
    %c0_185 = arith.constant 0 : index
    %c1_186 = arith.constant 1 : index
    %69 = vector.load %arg1[%c0_181, %c1_182, %c0_183, %c1_184, %c0_185, %c1_186] : memref<1x2x2x11x4x11xf32, #tpu.memory_space<vmem>>, vector<1x1x1x8x4x8xf32>
    %70 = vector.shape_cast %69 : vector<1x1x1x8x4x8xf32> to vector<8x4x8xf32>
    %c0_187 = arith.constant 0 : index
    %c92 = arith.constant 92 : index
    %c0_188 = arith.constant 0 : index
    %71 = vector.load %arg7[%c0_187, %c92, %c0_188] : memref<8x196x8xf32, #tpu.memory_space<vmem>>, vector<8x4x8xf32>
    tpu.vector_store %arg7[%c0_187, %c92, %c0_188], %70 {strides = array<i32>} : memref<8x196x8xf32, #tpu.memory_space<vmem>>, vector<8x4x8xf32>,
    %c0_189 = arith.constant 0 : index
    %c1_190 = arith.constant 1 : index
    %c1_191 = arith.constant 1 : index
    %c1_192 = arith.constant 1 : index
    %c0_193 = arith.constant 0 : index
    %c1_194 = arith.constant 1 : index
    %72 = vector.load %arg1[%c0_189, %c1_190, %c1_191, %c1_192, %c0_193, %c1_194] : memref<1x2x2x11x4x11xf32, #tpu.memory_space<vmem>>, vector<1x1x1x8x4x8xf32>
    %73 = vector.shape_cast %72 : vector<1x1x1x8x4x8xf32> to vector<8x4x8xf32>
    %c0_195 = arith.constant 0 : index
    %c96 = arith.constant 96 : index
    %c0_196 = arith.constant 0 : index
    %74 = vector.load %arg7[%c0_195, %c96, %c0_196] : memref<8x196x8xf32, #tpu.memory_space<vmem>>, vector<8x4x8xf32>
    tpu.vector_store %arg7[%c0_195, %c96, %c0_196], %73 {strides = array<i32>} : memref<8x196x8xf32, #tpu.memory_space<vmem>>, vector<8x4x8xf32>,
    %c0_197 = arith.constant 0 : index
    %c1_198 = arith.constant 1 : index
    %c0_199 = arith.constant 0 : index
    %c1_200 = arith.constant 1 : index
    %c0_201 = arith.constant 0 : index
    %c2_202 = arith.constant 2 : index
    %75 = vector.load %arg1[%c0_197, %c1_198, %c0_199, %c1_200, %c0_201, %c2_202] : memref<1x2x2x11x4x11xf32, #tpu.memory_space<vmem>>, vector<1x1x1x8x4x8xf32>
    %76 = vector.shape_cast %75 : vector<1x1x1x8x4x8xf32> to vector<8x4x8xf32>
    %c0_203 = arith.constant 0 : index
    %c100 = arith.constant 100 : index
    %c0_204 = arith.constant 0 : index
    %77 = vector.load %arg7[%c0_203, %c100, %c0_204] : memref<8x196x8xf32, #tpu.memory_space<vmem>>, vector<8x4x8xf32>
    tpu.vector_store %arg7[%c0_203, %c100, %c0_204], %76 {strides = array<i32>} : memref<8x196x8xf32, #tpu.memory_space<vmem>>, vector<8x4x8xf32>,
    %c0_205 = arith.constant 0 : index
    %c1_206 = arith.constant 1 : index
    %c1_207 = arith.constant 1 : index
    %c1_208 = arith.constant 1 : index
    %c0_209 = arith.constant 0 : index
    %c2_210 = arith.constant 2 : index
    %78 = vector.load %arg1[%c0_205, %c1_206, %c1_207, %c1_208, %c0_209, %c2_210] : memref<1x2x2x11x4x11xf32, #tpu.memory_space<vmem>>, vector<1x1x1x8x4x8xf32>
    %79 = vector.shape_cast %78 : vector<1x1x1x8x4x8xf32> to vector<8x4x8xf32>
    %c0_211 = arith.constant 0 : index
    %c104 = arith.constant 104 : index
    %c0_212 = arith.constant 0 : index
    %80 = vector.load %arg7[%c0_211, %c104, %c0_212] : memref<8x196x8xf32, #tpu.memory_space<vmem>>, vector<8x4x8xf32>
    tpu.vector_store %arg7[%c0_211, %c104, %c0_212], %79 {strides = array<i32>} : memref<8x196x8xf32, #tpu.memory_space<vmem>>, vector<8x4x8xf32>,
    %c0_213 = arith.constant 0 : index
    %c1_214 = arith.constant 1 : index
    %c0_215 = arith.constant 0 : index
    %c1_216 = arith.constant 1 : index
    %c0_217 = arith.constant 0 : index
    %c3_218 = arith.constant 3 : index
    %81 = vector.load %arg1[%c0_213, %c1_214, %c0_215, %c1_216, %c0_217, %c3_218] : memref<1x2x2x11x4x11xf32, #tpu.memory_space<vmem>>, vector<1x1x1x8x4x8xf32>
    %82 = vector.shape_cast %81 : vector<1x1x1x8x4x8xf32> to vector<8x4x8xf32>
    %c0_219 = arith.constant 0 : index
    %c108 = arith.constant 108 : index
    %c0_220 = arith.constant 0 : index
    %83 = vector.load %arg7[%c0_219, %c108, %c0_220] : memref<8x196x8xf32, #tpu.memory_space<vmem>>, vector<8x4x8xf32>
    tpu.vector_store %arg7[%c0_219, %c108, %c0_220], %82 {strides = array<i32>} : memref<8x196x8xf32, #tpu.memory_space<vmem>>, vector<8x4x8xf32>,
    %c0_221 = arith.constant 0 : index
    %c0_222 = arith.constant 0 : index
    %c0_223 = arith.constant 0 : index
    %c2_224 = arith.constant 2 : index
    %c0_225 = arith.constant 0 : index
    %c0_226 = arith.constant 0 : index
    %84 = vector.load %arg1[%c0_221, %c0_222, %c0_223, %c2_224, %c0_225, %c0_226] : memref<1x2x2x11x4x11xf32, #tpu.memory_space<vmem>>, vector<1x1x1x8x4x8xf32>
    %85 = vector.shape_cast %84 : vector<1x1x1x8x4x8xf32> to vector<8x4x8xf32>
    %c0_227 = arith.constant 0 : index
    %c112 = arith.constant 112 : index
    %c0_228 = arith.constant 0 : index
    %86 = vector.load %arg7[%c0_227, %c112, %c0_228] : memref<8x196x8xf32, #tpu.memory_space<vmem>>, vector<8x4x8xf32>
    tpu.vector_store %arg7[%c0_227, %c112, %c0_228], %85 {strides = array<i32>} : memref<8x196x8xf32, #tpu.memory_space<vmem>>, vector<8x4x8xf32>,
    %c0_229 = arith.constant 0 : index
    %c0_230 = arith.constant 0 : index
    %c1_231 = arith.constant 1 : index
    %c2_232 = arith.constant 2 : index
    %c0_233 = arith.constant 0 : index
    %c0_234 = arith.constant 0 : index
    %87 = vector.load %arg1[%c0_229, %c0_230, %c1_231, %c2_232, %c0_233, %c0_234] : memref<1x2x2x11x4x11xf32, #tpu.memory_space<vmem>>, vector<1x1x1x8x4x8xf32>
    %88 = vector.shape_cast %87 : vector<1x1x1x8x4x8xf32> to vector<8x4x8xf32>
    %c0_235 = arith.constant 0 : index
    %c116 = arith.constant 116 : index
    %c0_236 = arith.constant 0 : index
    %89 = vector.load %arg7[%c0_235, %c116, %c0_236] : memref<8x196x8xf32, #tpu.memory_space<vmem>>, vector<8x4x8xf32>
    tpu.vector_store %arg7[%c0_235, %c116, %c0_236], %88 {strides = array<i32>} : memref<8x196x8xf32, #tpu.memory_space<vmem>>, vector<8x4x8xf32>,
    %c0_237 = arith.constant 0 : index
    %c0_238 = arith.constant 0 : index
    %c0_239 = arith.constant 0 : index
    %c2_240 = arith.constant 2 : index
    %c0_241 = arith.constant 0 : index
    %c1_242 = arith.constant 1 : index
    %90 = vector.load %arg1[%c0_237, %c0_238, %c0_239, %c2_240, %c0_241, %c1_242] : memref<1x2x2x11x4x11xf32, #tpu.memory_space<vmem>>, vector<1x1x1x8x4x8xf32>
    %91 = vector.shape_cast %90 : vector<1x1x1x8x4x8xf32> to vector<8x4x8xf32>
    %c0_243 = arith.constant 0 : index
    %c120 = arith.constant 120 : index
    %c0_244 = arith.constant 0 : index
    %92 = vector.load %arg7[%c0_243, %c120, %c0_244] : memref<8x196x8xf32, #tpu.memory_space<vmem>>, vector<8x4x8xf32>
    tpu.vector_store %arg7[%c0_243, %c120, %c0_244], %91 {strides = array<i32>} : memref<8x196x8xf32, #tpu.memory_space<vmem>>, vector<8x4x8xf32>,
    %c0_245 = arith.constant 0 : index
    %c0_246 = arith.constant 0 : index
    %c1_247 = arith.constant 1 : index
    %c2_248 = arith.constant 2 : index
    %c0_249 = arith.constant 0 : index
    %c1_250 = arith.constant 1 : index
    %93 = vector.load %arg1[%c0_245, %c0_246, %c1_247, %c2_248, %c0_249, %c1_250] : memref<1x2x2x11x4x11xf32, #tpu.memory_space<vmem>>, vector<1x1x1x8x4x8xf32>
    %94 = vector.shape_cast %93 : vector<1x1x1x8x4x8xf32> to vector<8x4x8xf32>
    %c0_251 = arith.constant 0 : index
    %c124 = arith.constant 124 : index
    %c0_252 = arith.constant 0 : index
    %95 = vector.load %arg7[%c0_251, %c124, %c0_252] : memref<8x196x8xf32, #tpu.memory_space<vmem>>, vector<8x4x8xf32>
    tpu.vector_store %arg7[%c0_251, %c124, %c0_252], %94 {strides = array<i32>} : memref<8x196x8xf32, #tpu.memory_space<vmem>>, vector<8x4x8xf32>,
    %c0_253 = arith.constant 0 : index
    %c0_254 = arith.constant 0 : index
    %c0_255 = arith.constant 0 : index
    %c2_256 = arith.constant 2 : index
    %c0_257 = arith.constant 0 : index
    %c2_258 = arith.constant 2 : index
    %96 = vector.load %arg1[%c0_253, %c0_254, %c0_255, %c2_256, %c0_257, %c2_258] : memref<1x2x2x11x4x11xf32, #tpu.memory_space<vmem>>, vector<1x1x1x8x4x8xf32>
    %97 = vector.shape_cast %96 : vector<1x1x1x8x4x8xf32> to vector<8x4x8xf32>
    %c0_259 = arith.constant 0 : index
    %c128 = arith.constant 128 : index
    %c0_260 = arith.constant 0 : index
    %98 = vector.load %arg7[%c0_259, %c128, %c0_260] : memref<8x196x8xf32, #tpu.memory_space<vmem>>, vector<8x4x8xf32>
    tpu.vector_store %arg7[%c0_259, %c128, %c0_260], %97 {strides = array<i32>} : memref<8x196x8xf32, #tpu.memory_space<vmem>>, vector<8x4x8xf32>,
    %c0_261 = arith.constant 0 : index
    %c0_262 = arith.constant 0 : index
    %c1_263 = arith.constant 1 : index
    %c2_264 = arith.constant 2 : index
    %c0_265 = arith.constant 0 : index
    %c2_266 = arith.constant 2 : index
    %99 = vector.load %arg1[%c0_261, %c0_262, %c1_263, %c2_264, %c0_265, %c2_266] : memref<1x2x2x11x4x11xf32, #tpu.memory_space<vmem>>, vector<1x1x1x8x4x8xf32>
    %100 = vector.shape_cast %99 : vector<1x1x1x8x4x8xf32> to vector<8x4x8xf32>
    %c0_267 = arith.constant 0 : index
    %c132 = arith.constant 132 : index
    %c0_268 = arith.constant 0 : index
    %101 = vector.load %arg7[%c0_267, %c132, %c0_268] : memref<8x196x8xf32, #tpu.memory_space<vmem>>, vector<8x4x8xf32>
    tpu.vector_store %arg7[%c0_267, %c132, %c0_268], %100 {strides = array<i32>} : memref<8x196x8xf32, #tpu.memory_space<vmem>>, vector<8x4x8xf32>,
    %c0_269 = arith.constant 0 : index
    %c0_270 = arith.constant 0 : index
    %c0_271 = arith.constant 0 : index
    %c2_272 = arith.constant 2 : index
    %c0_273 = arith.constant 0 : index
    %c3_274 = arith.constant 3 : index
    %102 = vector.load %arg1[%c0_269, %c0_270, %c0_271, %c2_272, %c0_273, %c3_274] : memref<1x2x2x11x4x11xf32, #tpu.memory_space<vmem>>, vector<1x1x1x8x4x8xf32>
    %103 = vector.shape_cast %102 : vector<1x1x1x8x4x8xf32> to vector<8x4x8xf32>
    %c0_275 = arith.constant 0 : index
    %c136 = arith.constant 136 : index
    %c0_276 = arith.constant 0 : index
    %104 = vector.load %arg7[%c0_275, %c136, %c0_276] : memref<8x196x8xf32, #tpu.memory_space<vmem>>, vector<8x4x8xf32>
    tpu.vector_store %arg7[%c0_275, %c136, %c0_276], %103 {strides = array<i32>} : memref<8x196x8xf32, #tpu.memory_space<vmem>>, vector<8x4x8xf32>,
    %c0_277 = arith.constant 0 : index
    %c1_278 = arith.constant 1 : index
    %c0_279 = arith.constant 0 : index
    %c2_280 = arith.constant 2 : index
    %c0_281 = arith.constant 0 : index
    %c0_282 = arith.constant 0 : index
    %105 = vector.load %arg1[%c0_277, %c1_278, %c0_279, %c2_280, %c0_281, %c0_282] : memref<1x2x2x11x4x11xf32, #tpu.memory_space<vmem>>, vector<1x1x1x8x4x8xf32>
    %106 = vector.shape_cast %105 : vector<1x1x1x8x4x8xf32> to vector<8x4x8xf32>
    %c0_283 = arith.constant 0 : index
    %c140 = arith.constant 140 : index
    %c0_284 = arith.constant 0 : index
    %107 = vector.load %arg7[%c0_283, %c140, %c0_284] : memref<8x196x8xf32, #tpu.memory_space<vmem>>, vector<8x4x8xf32>
    tpu.vector_store %arg7[%c0_283, %c140, %c0_284], %106 {strides = array<i32>} : memref<8x196x8xf32, #tpu.memory_space<vmem>>, vector<8x4x8xf32>,
    %c0_285 = arith.constant 0 : index
    %c1_286 = arith.constant 1 : index
    %c1_287 = arith.constant 1 : index
    %c2_288 = arith.constant 2 : index
    %c0_289 = arith.constant 0 : index
    %c0_290 = arith.constant 0 : index
    %108 = vector.load %arg1[%c0_285, %c1_286, %c1_287, %c2_288, %c0_289, %c0_290] : memref<1x2x2x11x4x11xf32, #tpu.memory_space<vmem>>, vector<1x1x1x8x4x8xf32>
    %109 = vector.shape_cast %108 : vector<1x1x1x8x4x8xf32> to vector<8x4x8xf32>
    %c0_291 = arith.constant 0 : index
    %c144 = arith.constant 144 : index
    %c0_292 = arith.constant 0 : index
    %110 = vector.load %arg7[%c0_291, %c144, %c0_292] : memref<8x196x8xf32, #tpu.memory_space<vmem>>, vector<8x4x8xf32>
    tpu.vector_store %arg7[%c0_291, %c144, %c0_292], %109 {strides = array<i32>} : memref<8x196x8xf32, #tpu.memory_space<vmem>>, vector<8x4x8xf32>,
    %c0_293 = arith.constant 0 : index
    %c1_294 = arith.constant 1 : index
    %c0_295 = arith.constant 0 : index
    %c2_296 = arith.constant 2 : index
    %c0_297 = arith.constant 0 : index
    %c1_298 = arith.constant 1 : index
    %111 = vector.load %arg1[%c0_293, %c1_294, %c0_295, %c2_296, %c0_297, %c1_298] : memref<1x2x2x11x4x11xf32, #tpu.memory_space<vmem>>, vector<1x1x1x8x4x8xf32>
    %112 = vector.shape_cast %111 : vector<1x1x1x8x4x8xf32> to vector<8x4x8xf32>
    %c0_299 = arith.constant 0 : index
    %c148 = arith.constant 148 : index
    %c0_300 = arith.constant 0 : index
    %113 = vector.load %arg7[%c0_299, %c148, %c0_300] : memref<8x196x8xf32, #tpu.memory_space<vmem>>, vector<8x4x8xf32>
    tpu.vector_store %arg7[%c0_299, %c148, %c0_300], %112 {strides = array<i32>} : memref<8x196x8xf32, #tpu.memory_space<vmem>>, vector<8x4x8xf32>,
    %c0_301 = arith.constant 0 : index
    %c1_302 = arith.constant 1 : index
    %c1_303 = arith.constant 1 : index
    %c2_304 = arith.constant 2 : index
    %c0_305 = arith.constant 0 : index
    %c1_306 = arith.constant 1 : index
    %114 = vector.load %arg1[%c0_301, %c1_302, %c1_303, %c2_304, %c0_305, %c1_306] : memref<1x2x2x11x4x11xf32, #tpu.memory_space<vmem>>, vector<1x1x1x8x4x8xf32>
    %115 = vector.shape_cast %114 : vector<1x1x1x8x4x8xf32> to vector<8x4x8xf32>
    %c0_307 = arith.constant 0 : index
    %c152 = arith.constant 152 : index
    %c0_308 = arith.constant 0 : index
    %116 = vector.load %arg7[%c0_307, %c152, %c0_308] : memref<8x196x8xf32, #tpu.memory_space<vmem>>, vector<8x4x8xf32>
    tpu.vector_store %arg7[%c0_307, %c152, %c0_308], %115 {strides = array<i32>} : memref<8x196x8xf32, #tpu.memory_space<vmem>>, vector<8x4x8xf32>,
    %c0_309 = arith.constant 0 : index
    %c1_310 = arith.constant 1 : index
    %c0_311 = arith.constant 0 : index
    %c2_312 = arith.constant 2 : index
    %c0_313 = arith.constant 0 : index
    %c2_314 = arith.constant 2 : index
    %117 = vector.load %arg1[%c0_309, %c1_310, %c0_311, %c2_312, %c0_313, %c2_314] : memref<1x2x2x11x4x11xf32, #tpu.memory_space<vmem>>, vector<1x1x1x8x4x8xf32>
    %118 = vector.shape_cast %117 : vector<1x1x1x8x4x8xf32> to vector<8x4x8xf32>
    %c0_315 = arith.constant 0 : index
    %c156 = arith.constant 156 : index
    %c0_316 = arith.constant 0 : index
    %119 = vector.load %arg7[%c0_315, %c156, %c0_316] : memref<8x196x8xf32, #tpu.memory_space<vmem>>, vector<8x4x8xf32>
    tpu.vector_store %arg7[%c0_315, %c156, %c0_316], %118 {strides = array<i32>} : memref<8x196x8xf32, #tpu.memory_space<vmem>>, vector<8x4x8xf32>,
    %c0_317 = arith.constant 0 : index
    %c1_318 = arith.constant 1 : index
    %c1_319 = arith.constant 1 : index
    %c2_320 = arith.constant 2 : index
    %c0_321 = arith.constant 0 : index
    %c2_322 = arith.constant 2 : index
    %120 = vector.load %arg1[%c0_317, %c1_318, %c1_319, %c2_320, %c0_321, %c2_322] : memref<1x2x2x11x4x11xf32, #tpu.memory_space<vmem>>, vector<1x1x1x8x4x8xf32>
    %121 = vector.shape_cast %120 : vector<1x1x1x8x4x8xf32> to vector<8x4x8xf32>
    %c0_323 = arith.constant 0 : index
    %c160 = arith.constant 160 : index
    %c0_324 = arith.constant 0 : index
    %122 = vector.load %arg7[%c0_323, %c160, %c0_324] : memref<8x196x8xf32, #tpu.memory_space<vmem>>, vector<8x4x8xf32>
    tpu.vector_store %arg7[%c0_323, %c160, %c0_324], %121 {strides = array<i32>} : memref<8x196x8xf32, #tpu.memory_space<vmem>>, vector<8x4x8xf32>,
    %c0_325 = arith.constant 0 : index
    %c1_326 = arith.constant 1 : index
    %c0_327 = arith.constant 0 : index
    %c2_328 = arith.constant 2 : index
    %c0_329 = arith.constant 0 : index
    %c3_330 = arith.constant 3 : index
    %123 = vector.load %arg1[%c0_325, %c1_326, %c0_327, %c2_328, %c0_329, %c3_330] : memref<1x2x2x11x4x11xf32, #tpu.memory_space<vmem>>, vector<1x1x1x8x4x8xf32>
    %124 = vector.shape_cast %123 : vector<1x1x1x8x4x8xf32> to vector<8x4x8xf32>
    %c0_331 = arith.constant 0 : index
    %c164 = arith.constant 164 : index
    %c0_332 = arith.constant 0 : index
    %125 = vector.load %arg7[%c0_331, %c164, %c0_332] : memref<8x196x8xf32, #tpu.memory_space<vmem>>, vector<8x4x8xf32>
    tpu.vector_store %arg7[%c0_331, %c164, %c0_332], %124 {strides = array<i32>} : memref<8x196x8xf32, #tpu.memory_space<vmem>>, vector<8x4x8xf32>,
    %c0_333 = arith.constant 0 : index
    %c0_334 = arith.constant 0 : index
    %c0_335 = arith.constant 0 : index
    %c3_336 = arith.constant 3 : index
    %c0_337 = arith.constant 0 : index
    %c0_338 = arith.constant 0 : index
    %126 = vector.load %arg1[%c0_333, %c0_334, %c0_335, %c3_336, %c0_337, %c0_338] : memref<1x2x2x11x4x11xf32, #tpu.memory_space<vmem>>, vector<1x1x1x8x4x8xf32>
    %127 = vector.shape_cast %126 : vector<1x1x1x8x4x8xf32> to vector<8x4x8xf32>
    %c0_339 = arith.constant 0 : index
    %c168 = arith.constant 168 : index
    %c0_340 = arith.constant 0 : index
    %128 = vector.load %arg7[%c0_339, %c168, %c0_340] : memref<8x196x8xf32, #tpu.memory_space<vmem>>, vector<8x4x8xf32>
    tpu.vector_store %arg7[%c0_339, %c168, %c0_340], %127 {strides = array<i32>} : memref<8x196x8xf32, #tpu.memory_space<vmem>>, vector<8x4x8xf32>,
    %c0_341 = arith.constant 0 : index
    %c0_342 = arith.constant 0 : index
    %c1_343 = arith.constant 1 : index
    %c3_344 = arith.constant 3 : index
    %c0_345 = arith.constant 0 : index
    %c0_346 = arith.constant 0 : index
    %129 = vector.load %arg1[%c0_341, %c0_342, %c1_343, %c3_344, %c0_345, %c0_346] : memref<1x2x2x11x4x11xf32, #tpu.memory_space<vmem>>, vector<1x1x1x8x4x8xf32>
    %130 = vector.shape_cast %129 : vector<1x1x1x8x4x8xf32> to vector<8x4x8xf32>
    %c0_347 = arith.constant 0 : index
    %c172 = arith.constant 172 : index
    %c0_348 = arith.constant 0 : index
    %131 = vector.load %arg7[%c0_347, %c172, %c0_348] : memref<8x196x8xf32, #tpu.memory_space<vmem>>, vector<8x4x8xf32>
    tpu.vector_store %arg7[%c0_347, %c172, %c0_348], %130 {strides = array<i32>} : memref<8x196x8xf32, #tpu.memory_space<vmem>>, vector<8x4x8xf32>,
    %c0_349 = arith.constant 0 : index
    %c0_350 = arith.constant 0 : index
    %c0_351 = arith.constant 0 : index
    %c3_352 = arith.constant 3 : index
    %c0_353 = arith.constant 0 : index
    %c1_354 = arith.constant 1 : index
    %132 = vector.load %arg1[%c0_349, %c0_350, %c0_351, %c3_352, %c0_353, %c1_354] : memref<1x2x2x11x4x11xf32, #tpu.memory_space<vmem>>, vector<1x1x1x8x4x8xf32>
    %133 = vector.shape_cast %132 : vector<1x1x1x8x4x8xf32> to vector<8x4x8xf32>
    %c0_355 = arith.constant 0 : index
    %c176 = arith.constant 176 : index
    %c0_356 = arith.constant 0 : index
    %134 = vector.load %arg7[%c0_355, %c176, %c0_356] : memref<8x196x8xf32, #tpu.memory_space<vmem>>, vector<8x4x8xf32>
    tpu.vector_store %arg7[%c0_355, %c176, %c0_356], %133 {strides = array<i32>} : memref<8x196x8xf32, #tpu.memory_space<vmem>>, vector<8x4x8xf32>,
    %c0_357 = arith.constant 0 : index
    %c0_358 = arith.constant 0 : index
    %c1_359 = arith.constant 1 : index
    %c3_360 = arith.constant 3 : index
    %c0_361 = arith.constant 0 : index
    %c1_362 = arith.constant 1 : index
    %135 = vector.load %arg1[%c0_357, %c0_358, %c1_359, %c3_360, %c0_361, %c1_362] : memref<1x2x2x11x4x11xf32, #tpu.memory_space<vmem>>, vector<1x1x1x8x4x8xf32>
    %136 = vector.shape_cast %135 : vector<1x1x1x8x4x8xf32> to vector<8x4x8xf32>
    %c0_363 = arith.constant 0 : index
    %c180 = arith.constant 180 : index
    %c0_364 = arith.constant 0 : index
    %137 = vector.load %arg7[%c0_363, %c180, %c0_364] : memref<8x196x8xf32, #tpu.memory_space<vmem>>, vector<8x4x8xf32>
    tpu.vector_store %arg7[%c0_363, %c180, %c0_364], %136 {strides = array<i32>} : memref<8x196x8xf32, #tpu.memory_space<vmem>>, vector<8x4x8xf32>,
    %c0_365 = arith.constant 0 : index
    %c0_366 = arith.constant 0 : index
    %c0_367 = arith.constant 0 : index
    %c3_368 = arith.constant 3 : index
    %c0_369 = arith.constant 0 : index
    %c2_370 = arith.constant 2 : index
    %138 = vector.load %arg1[%c0_365, %c0_366, %c0_367, %c3_368, %c0_369, %c2_370] : memref<1x2x2x11x4x11xf32, #tpu.memory_space<vmem>>, vector<1x1x1x8x4x8xf32>
    %139 = vector.shape_cast %138 : vector<1x1x1x8x4x8xf32> to vector<8x4x8xf32>
    %c0_371 = arith.constant 0 : index
    %c184 = arith.constant 184 : index
    %c0_372 = arith.constant 0 : index
    %140 = vector.load %arg7[%c0_371, %c184, %c0_372] : memref<8x196x8xf32, #tpu.memory_space<vmem>>, vector<8x4x8xf32>
    tpu.vector_store %arg7[%c0_371, %c184, %c0_372], %139 {strides = array<i32>} : memref<8x196x8xf32, #tpu.memory_space<vmem>>, vector<8x4x8xf32>,
    %c0_373 = arith.constant 0 : index
    %c0_374 = arith.constant 0 : index
    %c1_375 = arith.constant 1 : index
    %c3_376 = arith.constant 3 : index
    %c0_377 = arith.constant 0 : index
    %c2_378 = arith.constant 2 : index
    %141 = vector.load %arg1[%c0_373, %c0_374, %c1_375, %c3_376, %c0_377, %c2_378] : memref<1x2x2x11x4x11xf32, #tpu.memory_space<vmem>>, vector<1x1x1x8x4x8xf32>
    %142 = vector.shape_cast %141 : vector<1x1x1x8x4x8xf32> to vector<8x4x8xf32>
    %c0_379 = arith.constant 0 : index
    %c188 = arith.constant 188 : index
    %c0_380 = arith.constant 0 : index
    %143 = vector.load %arg7[%c0_379, %c188, %c0_380] : memref<8x196x8xf32, #tpu.memory_space<vmem>>, vector<8x4x8xf32>
    tpu.vector_store %arg7[%c0_379, %c188, %c0_380], %142 {strides = array<i32>} : memref<8x196x8xf32, #tpu.memory_space<vmem>>, vector<8x4x8xf32>,
    %c0_381 = arith.constant 0 : index
    %c0_382 = arith.constant 0 : index
    %c0_383 = arith.constant 0 : index
    %c3_384 = arith.constant 3 : index
    %c0_385 = arith.constant 0 : index
    %c3_386 = arith.constant 3 : index
    %144 = vector.load %arg1[%c0_381, %c0_382, %c0_383, %c3_384, %c0_385, %c3_386] : memref<1x2x2x11x4x11xf32, #tpu.memory_space<vmem>>, vector<1x1x1x8x4x8xf32>
    %145 = vector.shape_cast %144 : vector<1x1x1x8x4x8xf32> to vector<8x4x8xf32>
    %c0_387 = arith.constant 0 : index
    %c192 = arith.constant 192 : index
    %c0_388 = arith.constant 0 : index
    %146 = vector.load %arg7[%c0_387, %c192, %c0_388] : memref<8x196x8xf32, #tpu.memory_space<vmem>>, vector<8x4x8xf32>
    tpu.vector_store %arg7[%c0_387, %c192, %c0_388], %145 {strides = array<i32>} : memref<8x196x8xf32, #tpu.memory_space<vmem>>, vector<8x4x8xf32>,
    %c0_389 = arith.constant 0 : index
    %c0_390 = arith.constant 0 : index
    %147 = vector.load %arg2[%c0_389, %c0_390] : memref<4x196xf32, #tpu.memory_space<vmem>>, vector<4x196xf32>
    %148 = vector.shape_cast %147 : vector<4x196xf32> to vector<1x4x196xf32>
    %149 = vector.shape_cast %148 : vector<1x4x196xf32> to vector<1x4x196xf32>
    %150 = vector.broadcast %149 : vector<1x4x196xf32> to vector<8x4x196xf32>
    %c0_391 = arith.constant 0 : index
    %c0_392 = arith.constant 0 : index
    %c0_393 = arith.constant 0 : index
    %151 = vector.load %arg7[%c0_391, %c0_392, %c0_393] : memref<8x196x8xf32, #tpu.memory_space<vmem>>, vector<8x196x8xf32>
    %cst = arith.constant dense<0.000000e+00> : vector<8x4x8xf32>
    %152 = tpu.matmul %150, %151, %cst {dimension_numbers = #tpu.dot_dimension_numbers<[2], [1], [1], [2], [0, 0, 0, 1, 1, 2], [0], [0]>} : vector<8x4x196xf32>, vector<8x196x8xf32>, vector<8x4x8xf32> -> vector<8x4x8xf32>
    %c0_394 = arith.constant 0 : index
    %c0_395 = arith.constant 0 : index
    %153 = vector.load %arg3[%c0_394, %c0_395] : memref<4x1xf32, #tpu.memory_space<vmem>>, vector<4x1xf32>
    %154 = vector.shape_cast %153 : vector<4x1xf32> to vector<1x4x1xf32>
    %155 = vector.broadcast %154 : vector<1x4x1xf32> to vector<8x4x8xf32>
    %156 = arith.addf %152, %155 : vector<8x4x8xf32>
    %c0_396 = arith.constant 0 : index
    %c0_397 = arith.constant 0 : index
    %c0_398 = arith.constant 0 : index
    %c0_399 = arith.constant 0 : index
    %157 = vector.load %arg4[%c0_396, %c0_397, %c0_398, %c0_399] : memref<1x8x8x8xf32, #tpu.memory_space<vmem>>, vector<1x8x4x8xf32>
    %158 = vector.shape_cast %157 : vector<1x8x4x8xf32> to vector<8x4x8xf32>
    %159 = vector.shape_cast %156 : vector<8x4x8xf32> to vector<1x8x4x8xf32>
    tpu.vector_store %arg4[%c0_396, %c0_397, %c0_398, %c0_399], %159 {strides = array<i32>} : memref<1x8x8x8xf32, #tpu.memory_space<vmem>>, vector<1x8x4x8xf32>,
    %c0_400 = arith.constant 0 : index
    %c1_401 = arith.constant 1 : index
    %c1_402 = arith.constant 1 : index
    %c1_403 = arith.constant 1 : index
    %c0_404 = arith.constant 0 : index
    %c1_405 = arith.constant 1 : index
    %160 = vector.load %arg1[%c0_400, %c1_401, %c1_402, %c1_403, %c0_404, %c1_405] : memref<1x2x2x11x4x11xf32, #tpu.memory_space<vmem>>, vector<1x1x1x8x4x8xf32>
    %161 = vector.shape_cast %160 : vector<1x1x1x8x4x8xf32> to vector<8x4x8xf32>
    %c0_406 = arith.constant 0 : index
    %c1_407 = arith.constant 1 : index
    %c0_408 = arith.constant 0 : index
    %c1_409 = arith.constant 1 : index
    %c0_410 = arith.constant 0 : index
    %c2_411 = arith.constant 2 : index
    %162 = vector.load %arg1[%c0_406, %c1_407, %c0_408, %c1_409, %c0_410, %c2_411] : memref<1x2x2x11x4x11xf32, #tpu.memory_space<vmem>>, vector<1x1x1x8x4x8xf32>
    %163 = vector.shape_cast %162 : vector<1x1x1x8x4x8xf32> to vector<8x4x8xf32>
    %c0_412 = arith.constant 0 : index
    %c0_413 = arith.constant 0 : index
    %c1_414 = arith.constant 1 : index
    %c2_415 = arith.constant 2 : index
    %c0_416 = arith.constant 0 : index
    %c1_417 = arith.constant 1 : index
    %164 = vector.load %arg1[%c0_412, %c0_413, %c1_414, %c2_415, %c0_416, %c1_417] : memref<1x2x2x11x4x11xf32, #tpu.memory_space<vmem>>, vector<1x1x1x8x4x8xf32>
    %165 = vector.shape_cast %164 : vector<1x1x1x8x4x8xf32> to vector<8x4x8xf32>
    %c0_418 = arith.constant 0 : index
    %c0_419 = arith.constant 0 : index
    %c0_420 = arith.constant 0 : index
    %c2_421 = arith.constant 2 : index
    %c0_422 = arith.constant 0 : index
    %c2_423 = arith.constant 2 : index
    %166 = vector.load %arg1[%c0_418, %c0_419, %c0_420, %c2_421, %c0_422, %c2_423] : memref<1x2x2x11x4x11xf32, #tpu.memory_space<vmem>>, vector<1x1x1x8x4x8xf32>
    %167 = vector.shape_cast %166 : vector<1x1x1x8x4x8xf32> to vector<8x4x8xf32>
    %168 = arith.maximumf %161, %163 : vector<8x4x8xf32>
    %169 = arith.maximumf %165, %167 : vector<8x4x8xf32>
    %170 = arith.maximumf %168, %169 : vector<8x4x8xf32>
    %c0_424 = arith.constant 0 : index
    %c0_425 = arith.constant 0 : index
    %c4_426 = arith.constant 4 : index
    %c0_427 = arith.constant 0 : index
    %171 = vector.load %arg4[%c0_424, %c0_425, %c4_426, %c0_427] : memref<1x8x8x8xf32, #tpu.memory_space<vmem>>, vector<1x8x4x8xf32>
    %172 = vector.shape_cast %171 : vector<1x8x4x8xf32> to vector<8x4x8xf32>
    %173 = vector.shape_cast %170 : vector<8x4x8xf32> to vector<1x8x4x8xf32>
    tpu.vector_store %arg4[%c0_424, %c0_425, %c4_426, %c0_427], %173 {strides = array<i32>} : memref<1x8x8x8xf32, #tpu.memory_space<vmem>>, vector<1x8x4x8xf32>,
    %c0_i32 = arith.constant 0 : i32
    %174 = arith.cmpi eq, %arg0, %c0_i32 : i32
    %175 = arith.extui %174 : i1 to i32
    %c0_i32_428 = arith.constant 0 : i32
    %176 = arith.cmpi ne, %175, %c0_i32_428 : i32
    scf.if %176 {
      %cst_447 = arith.constant 0.000000e+00 : f32
      %190 = vector.broadcast %cst_447 : f32 to vector<1x8x1xf32>
      %c0_448 = arith.constant 0 : index
      %c0_449 = arith.constant 0 : index
      %c0_450 = arith.constant 0 : index
      %191 = vector.load %arg5[%c0_448, %c0_449, %c0_450] : memref<1x8x1xf32, #tpu.memory_space<vmem>>, vector<1x8x1xf32>
      tpu.vector_store %arg5[%c0_448, %c0_449, %c0_450], %190 {strides = array<i32>} : memref<1x8x1xf32, #tpu.memory_space<vmem>>, vector<1x8x1xf32>,
      %cst_451 = arith.constant 0.000000e+00 : f32
      %192 = vector.broadcast %cst_451 : f32 to vector<1x8x1xf32>
      %c0_452 = arith.constant 0 : index
      %c0_453 = arith.constant 0 : index
      %c0_454 = arith.constant 0 : index
      %193 = vector.load %arg6[%c0_452, %c0_453, %c0_454] : memref<1x8x1xf32, #tpu.memory_space<vmem>>, vector<1x8x1xf32>
      tpu.vector_store %arg6[%c0_452, %c0_453, %c0_454], %192 {strides = array<i32>} : memref<1x8x1xf32, #tpu.memory_space<vmem>>, vector<1x8x1xf32>,
    } else {
    }
    %c0_429 = arith.constant 0 : index
    %c0_430 = arith.constant 0 : index
    %c0_431 = arith.constant 0 : index
    %c0_432 = arith.constant 0 : index
    %177 = vector.load %arg4[%c0_429, %c0_430, %c0_431, %c0_432] : memref<1x8x8x8xf32, #tpu.memory_space<vmem>>, vector<1x8x8x8xf32>
    %178 = vector.shape_cast %177 : vector<1x8x8x8xf32> to vector<8x8x8xf32>
    %c0_433 = arith.constant 0 : index
    %c0_434 = arith.constant 0 : index
    %c0_435 = arith.constant 0 : index
    %179 = vector.load %arg5[%c0_433, %c0_434, %c0_435] : memref<1x8x1xf32, #tpu.memory_space<vmem>>, vector<1x8x1xf32>
    %cst_436 = arith.constant dense<0.000000e+00> : vector<8xf32>
    %180 = vector.multi_reduction <add>, %178, %cst_436 [0, 2] : vector<8x8x8xf32> to vector<8xf32>
    %181 = vector.shape_cast %180 : vector<8xf32> to vector<1x8x1xf32>
    %182 = arith.addf %179, %181 : vector<1x8x1xf32>
    %c0_437 = arith.constant 0 : index
    %c0_438 = arith.constant 0 : index
    %c0_439 = arith.constant 0 : index
    %183 = vector.load %arg5[%c0_437, %c0_438, %c0_439] : memref<1x8x1xf32, #tpu.memory_space<vmem>>, vector<1x8x1xf32>
    tpu.vector_store %arg5[%c0_437, %c0_438, %c0_439], %182 {strides = array<i32>} : memref<1x8x1xf32, #tpu.memory_space<vmem>>, vector<1x8x1xf32>,
    %c0_440 = arith.constant 0 : index
    %c0_441 = arith.constant 0 : index
    %c0_442 = arith.constant 0 : index
    %184 = vector.load %arg6[%c0_440, %c0_441, %c0_442] : memref<1x8x1xf32, #tpu.memory_space<vmem>>, vector<1x8x1xf32>
    %185 = arith.mulf %178, %178 : vector<8x8x8xf32>
    %cst_443 = arith.constant dense<0.000000e+00> : vector<8xf32>
    %186 = vector.multi_reduction <add>, %185, %cst_443 [0, 2] : vector<8x8x8xf32> to vector<8xf32>
    %187 = vector.shape_cast %186 : vector<8xf32> to vector<1x8x1xf32>
    %188 = arith.addf %184, %187 : vector<1x8x1xf32>
    %c0_444 = arith.constant 0 : index
    %c0_445 = arith.constant 0 : index
    %c0_446 = arith.constant 0 : index
    %189 = vector.load %arg6[%c0_444, %c0_445, %c0_446] : memref<1x8x1xf32, #tpu.memory_space<vmem>>, vector<1x8x1xf32>
    tpu.vector_store %arg6[%c0_444, %c0_445, %c0_446], %188 {strides = array<i32>} : memref<1x8x1xf32, #tpu.memory_space<vmem>>, vector<1x8x1xf32>,
    return
  }
  func.func @transform_0(%arg0: i32) -> (i32, i32, i32, i32, i32, i32) {
    %c0_i32 = arith.constant 0 : i32
    %c0_i32_0 = arith.constant 0 : i32
    %c0_i32_1 = arith.constant 0 : i32
    %c0_i32_2 = arith.constant 0 : i32
    %c0_i32_3 = arith.constant 0 : i32
    %c0_i32_4 = arith.constant 0 : i32
    return %arg0, %c0_i32, %c0_i32_0, %c0_i32_1, %c0_i32_2, %c0_i32_3 : i32, i32, i32, i32, i32, i32
  }
  func.func @transform_1(%arg0: i32) -> (i32, i32) {
    %c0_i32 = arith.constant 0 : i32
    %c0_i32_0 = arith.constant 0 : i32
    %c0_i32_1 = arith.constant 0 : i32
    return %c0_i32, %c0_i32_0 : i32, i32
  }
  func.func @transform_2(%arg0: i32) -> (i32, i32) {
    %c0_i32 = arith.constant 0 : i32
    %c0_i32_0 = arith.constant 0 : i32
    %c0_i32_1 = arith.constant 0 : i32
    return %c0_i32, %c0_i32_0 : i32, i32
  }
  func.func @transform_3(%arg0: i32) -> (i32, i32, i32, i32) {
    %c0_i32 = arith.constant 0 : i32
    %c0_i32_0 = arith.constant 0 : i32
    %c0_i32_1 = arith.constant 0 : i32
    %c0_i32_2 = arith.constant 0 : i32
    return %arg0, %c0_i32, %c0_i32_0, %c0_i32_1 : i32, i32, i32, i32
  }
  func.func @transform_4(%arg0: i32) -> (i32, i32, i32) {
    %c0_i32 = arith.constant 0 : i32
    %c0_i32_0 = arith.constant 0 : i32
    %c0_i32_1 = arith.constant 0 : i32
    %c0_i32_2 = arith.constant 0 : i32
    return %c0_i32, %c0_i32_0, %c0_i32_1 : i32, i32, i32
  }
  func.func @transform_5(%arg0: i32) -> (i32, i32, i32) {
    %c0_i32 = arith.constant 0 : i32
    %c0_i32_0 = arith.constant 0 : i32
    %c0_i32_1 = arith.constant 0 : i32
    %c0_i32_2 = arith.constant 0 : i32
    return %c0_i32, %c0_i32_0, %c0_i32_1 : i32, i32, i32
  }
}

</mosaic_0001>

<bundles_post_ra>
// kernel: tpu_custom_call.1
= control target key start
LH: loop header
LB: loop body
LE: loop exit
PB: predicated region body
PF: predicated region fallthrough
CT: control target
= control target key end

     0   :  { %11 = vsyncpa [#allocation4], 0  ;;  %s5722_s0 = inlined_call_operand.hbm [shape: f32[2,2,2,11,4,11], index: 0, kind: input, shape index: {}]   ;;  %s5723_s1 = inlined_call_operand.vmem [shape: f32[4,196], index: 1, kind: input, shape index: {}]   ;;  %s5724_s2 = inlined_call_operand.vmem [shape: f32[4,1], index: 2, kind: input, shape index: {}]   ;;  %s5725_s3 = inlined_call_operand.hbm [shape: f32[2,8,8,8], index: 3, kind: output, shape index: {0}]   ;;  %s5726_s4 = inlined_call_operand.vmem [shape: f32[1,8,1], index: 4, kind: output, shape index: {1}]   ;;  %s5727_s5 = inlined_call_operand.vmem [shape: f32[1,8,1], index: 5, kind: output, shape index: {2}]  }
   0x1   :  { %13 = vsyncpa [#allocation4 + $0x1], 0 }
   0x2   :  { %14 = vsyncpa [#allocation5], 0 }
   0x3   :  { %16 = vsyncpa [#allocation5 + $0x1], 0  ;;  %s4199_s18 = smov 0   ;;  %s4201_s19 = smov 0  }
   0x4   :  { %s4203_s20 = smov 0   ;;  %s4205_s21 = smov 0  }
   0x5 LB: > { %s4220_s22 = sadd.s32 4294967295, %s4154_s21   ;;  %s3285_s23 = sadd.s32 4294967294, %s4154_s21   ;;  %s4154_s21 = sphi %s4205_s21, %s5739_s21   ;;  %s4150_s20 = sphi %s4203_s20, %s5738_s20   ;;  %s4146_s19 = sphi %s4201_s19, %s5737_s19   ;;  %s4142_s18 = sphi %s4199_s18, %s5736_s18  }
   0x6   : > { %s4224_s24 = sadd.s32 1, %s4154_s21   ;;  %s29_s25 = sadd.s32 1, %s4150_s20 }
   0x7   : > { %s26_s26 = ssub.s32 %s4154_s21, %s4224_s24  ;;  %p36_p0 = scmp.ne.s32.totalorder %s4150_s20, %s4146_s19 }
   0x8   : > { %p27_p1 = scmp.eq.s32.totalorder %s26_s26, 0  ;;  %p37_p2 = scmp.eq.s32.totalorder %s4154_s21, 0 }
   0x9   : > { %p42_p3 = scmp.ne.s32.totalorder %s4146_s19, %s4142_s18  ;;  %p43_p4 = scmp.eq.s32.totalorder %s4220_s22, 0 }
   0xa   : > { %s4236_s27 = scalar_select %p27_p1, %s4150_s20, %s29_s25  }
   0xb   : > { %p38_p5 = por %p37_p2, %p36_p0  ;;  %p4238_p6 = por %p43_p4, %p42_p3 }
   0xc   : > { %p108_p7 = scmp.eq.s32.totalorder %s4220_s22, 1  ;;  %p114_p8 = scmp.eq.s32.totalorder %s3285_s23, 1 }
   0xd   : > { %p4009_p10 = scmp.lt.s32.totalorder %s4154_s21, 2  ;;  %s182_s6 = sand.u32 1, %s4150_s20  }
   0xe   : > { %p4245_p11 = por %p108_p7, %p36_p0  ;;  %p4249_p12 = por %p114_p8, %p42_p3 }
   0xf   : > { %s3995_s7 = smul.u32 2816, %s4154_s21  ;;  %p4260_p13 = pnand %p4009_p10, %p38_p5 }
  0x10   : > { %s5730_s29 = scalar_select %p4245_p11, 1, 0 }
  0x11   : > { %s5731_s30 = scalar_select %p4249_p12, 1, 0 }
  0x12   : > { %s3994_s8 = smul.u32 176, %s182_s6  ;;  %s4258_s11 = scalar_lea.hbm %s5722_s0, %s3995_s7 }
  0x13   : > { %s4266_s15 = scalar_lea.sflag [#allocation4], %s182_s6  ;;  %s4058_s16 = scalar_lea.hbm %s4258_s11, 2816 }
  0x14   : > { %s186_s13 = scalar_lea.vmem [#allocation3], %s3994_s8  ;;  %p4059_p0 = scmp.ne.s32.totalorder %s4258_s11, %s4058_s16 }
  0x15   : > { %s193_s14 = sshll.u32 %s186_s13, 4  ;;  %p4060_p1 = pneg %p4260_p13  ;;  %s4264_s14 = int_to_ptr.vmem [resolvable:$true] %s193_s14 }
  0x16   : > { %s4063_s25 = scalar_lea.hbm %s5722_s0, 5632  ;;  %p4064_p4 = scmp.lt.u32.totalorder %s4258_s11, %s5722_s0 }
  0x17   : > { %p4061_p2 = pnand %p4060_p1, %p4059_p0  ;;  %p4065_p5 = scmp.lt.u32.totalorder %s4063_s25, %s4058_s16 }
  0x18   : > { %p4067_p8 = scmp.lt.u32.totalorder %s4058_s16, %s4258_s11 }
  0x19   : > { %p4062_p3 = pneg %p4061_p2  ;;  %p4066_p7 = por %p4065_p5, %p4064_p4 }
  0x1b   : > { %p4068_p10 = por %p4067_p8, %p4066_p7 }
  0x1d   : > { %p4069_p9 = pnand %p4068_p10, %p4062_p3 }
  0x1f   : > { %4072 = shalt.err (!%p4069_p9)
}
  0x20   : > { %s4073_s6 = scalar_lea.vmem %s4264_s14, 2816  ;;  %s4156_s8 = smov [#allocation3]  }
  0x21   : > { %p4074_p0 = scmp.ne.s32.totalorder %s4264_s14, %s4073_s6  ;;  %s4078_s9 = sshll.u32 %s4156_s8, 4  ;;  %s4079_s9 = int_to_ptr.vmem [resolvable:$false] %s4078_s9 }
  0x22   : > { %s4080_s10 = scalar_lea.vmem %s4079_s9, 5632  ;;  %p4081_p11 = scmp.lt.s32.totalorder %s4264_s14, %s4079_s9 }
  0x23   : > { %p4076_p2 = pnand %p4074_p0, %p4060_p1  ;;  %p4082_p4 = scmp.lt.s32.totalorder %s4080_s10, %s4073_s6 }
  0x25   : > { %p4077_p12 = pneg %p4076_p2  ;;  %p4083_p5 = por %p4082_p4, %p4081_p11 }
  0x27   : > { %p4084_p7 = pnand %p4083_p5, %p4077_p12 }
  0x29   : > { %4087 = shalt.err (!%p4084_p7)
}
  0x2a   : > { %s4157_s13 = smov 64   ;;  %s4158_s16 = smov 4  }
  0x2b   : > { %4004 = dma.hbm_to_vmem [thread:$0]  (!%p4260_p13), %s4258_s11, 2816, %s4264_s14, %s4266_s15, %s4157_s13, %s4157_s13, %s4158_s16  }
  0x2c   : > { %p3289_p9 = scmp.ge.s32.totalorder %s4154_s21, 1  ;;  %p201_p1 = scmp.lt.s32.totalorder %s4154_s21, 3 }
  0x2e   : > { %p202_p3 = pnand %p3289_p9, %p201_p1 }
  0x2f   : > { %s4297_s17 = sand.u32 (!%p202_p3), 1, %s4146_s19  }
  0x30   : > { %205 = sbr.rel (%p202_p3) target bundleno = 1121 (0x461), region = 32  ;;  %s208_s25 = scalar_lea.sflag (!%p202_p3), [#allocation4], %s4297_s17 }
  0x31   : > { %s3996_s23 = smul.u32 (!%p202_p3), 176, %s4297_s17 }
  0x33   : > { %s4301_s26 = scalar_lea.vmem (!%p202_p3), [#allocation3], %s3996_s23 }
  0x37   : > { %4133 = dma.done.wait (%p4238_p6), %s208_s25, 2816  }
  0x38   : > { %4135 = vsyncadd (%p4238_p6), %s208_s25, 4294964480  ;;  %v274_v0 = vld [vmem:[%s4301_s26 + $0x8] sm:$0xf]  ;;  %v272_v1 = vld [vmem:[%s4301_s26] sm:$0xf]  ;;  %s4159_s11 = smov 127  }
  0x39   : > { %292 = vrot.lane.b32.xlu1 %v274_v0, %s4159_s11  ;;  %288 = vrot.lane.b32.xlu0 %v272_v1, %s4159_s11  ;;  %v275_v2 = vld [vmem:[%s4301_s26 + $0xc] sm:$0xf]  ;;  %v273_v3 = vld [vmem:[%s4301_s26 + $0x4] sm:$0xf]  ;;  %v4160_v10 = vmov 0.0|0.0   ;;  %vm246_vm0 = vcmask 60416  }
  0x3a   : > { %v277_v4 = vld [vmem:[%s4301_s26 + $0x14] sm:$0xf]  ;;  %v276_v5 = vld [vmem:[%s4301_s26 + $0x10] sm:$0xf]  ;;  %v279_v6 = vld [vmem:[%s4301_s26 + $0x1c] sm:$0xf]  ;;  %3706 = vmatprep.subr.bf16.mxu0 %v4160_v10  ;;  %3742 = vmatprep.subr.bf16.mxu1 %v4160_v10 }
  0x3b   : > { %v278_v7 = vld [vmem:[%s4301_s26 + $0x18] sm:$0xf]  ;;  %v3300_v8 = vld [vmem:[%s4301_s26 + $0x30] sm:$0xf]  ;;  %v3299_v9 = vld [vmem:[%s4301_s26 + $0x2c] sm:$0xf] }
  0x3c   : > { %v3302_v11 = vld [vmem:[%s4301_s26 + $0x38] sm:$0xf]  ;;  %v3301_v12 = vld [vmem:[%s4301_s26 + $0x34] sm:$0xf]  ;;  %v3304_v13 = vld [vmem:[%s4301_s26 + $0x40] sm:$0xf] }
  0x3d   : > { %294 = vrot.lane.b32.xlu1 %v275_v2, %s4159_s11  ;;  %290 = vrot.lane.b32.xlu0 %v273_v3, %s4159_s11  ;;  %v3303_v14 = vld [vmem:[%s4301_s26 + $0x3c] sm:$0xf]  ;;  %v3306_v15 = vld [vmem:[%s4301_s26 + $0x48] sm:$0xf]  ;;  %s4161_s28 = smov 126   ;;  %s4162_s12 = smov 125  }
  0x3e   : > { %v3305_v16 = vld [vmem:[%s4301_s26 + $0x44] sm:$0xf]  ;;  %v238_v17 = vld [vmem:[%s4301_s26] sm:$0xf]  ;;  %v3291_v18 = vld [vmem:[%s4301_s26 + $0x2c] sm:$0xf] }
  0x3f   : > { %247 = vst.msk [vmem:[#allocation2] sm:$0xf] %vm246_vm0, %v238_v17  ;;  %264 = vst.msk [vmem:[#allocation2 + $0x4] sm:$0xf] %vm246_vm0, %v3291_v18  ;;  %v239_v19 = vld [vmem:[%s4301_s26 + $0x4] sm:$0xf] }
  0x40   : > { %v3292_v20 = vld [vmem:[%s4301_s26 + $0x30] sm:$0xf]  ;;  %248 = vst.msk [vmem:[#allocation2 + $0xc8] sm:$0xf] %vm246_vm0, %v239_v19  ;;  %v369_v21 = vld [vmem:[%s4301_s26 + $0x4] sm:$0xf] }
  0x41   : > { %298 = vrot.lane.b32.xlu1 %v277_v4, %s4159_s11  ;;  %296 = vrot.lane.b32.xlu0 %v276_v5, %s4159_s11  ;;  %265 = vst.msk [vmem:[#allocation2 + $0xcc] sm:$0xf] %vm246_vm0, %v3292_v20  ;;  %v368_v22 = vld [vmem:[%s4301_s26] sm:$0xf]  ;;  %v240_v23 = vld [vmem:[%s4301_s26 + $0x8] sm:$0xf] }
  0x42   : > { %249 = vst.msk [vmem:[#allocation2 + $0x190] sm:$0xf] %vm246_vm0, %v240_v23  ;;  %v3293_v24 = vld [vmem:[%s4301_s26 + $0x34] sm:$0xf]  ;;  %v241_v25 = vld [vmem:[%s4301_s26 + $0xc] sm:$0xf] }
  0x43   : > { %v3294_v26 = vld [vmem:[%s4301_s26 + $0x38] sm:$0xf]  ;;  %v371_v27 = vld [vmem:[%s4301_s26 + $0xc] sm:$0xf]  ;;  %266 = vst.msk [vmem:[#allocation2 + $0x194] sm:$0xf] %vm246_vm0, %v3293_v24 }
  0x44   : > { %250 = vst.msk [vmem:[#allocation2 + $0x258] sm:$0xf] %vm246_vm0, %v241_v25  ;;  %267 = vst.msk [vmem:[#allocation2 + $0x25c] sm:$0xf] %vm246_vm0, %v3294_v26  ;;  %v242_v28 = vld [vmem:[%s4301_s26 + $0x10] sm:$0xf] }
  0x45   : > { %302 = vrot.lane.b32.xlu1 %v279_v6, %s4159_s11  ;;  %300 = vrot.lane.b32.xlu0 %v278_v7, %s4159_s11  ;;  %251 = vst.msk [vmem:[#allocation2 + $0x320] sm:$0xf] %vm246_vm0, %v242_v28  ;;  %v3295_v29 = vld [vmem:[%s4301_s26 + $0x3c] sm:$0xf]  ;;  %v243_v30 = vld [vmem:[%s4301_s26 + $0x14] sm:$0xf] }
  0x46   : > { %v370_v31 = vld [vmem:[%s4301_s26 + $0x8] sm:$0xf]  ;;  %268 = vst.msk [vmem:[#allocation2 + $0x324] sm:$0xf] %vm246_vm0, %v3295_v29  ;;  %252 = vst.msk [vmem:[#allocation2 + $0x3e8] sm:$0xf] %vm246_vm0, %v243_v30 }
  0x47   : > { %v3296_v32 = vld [vmem:[%s4301_s26 + $0x40] sm:$0xf]  ;;  %v244_v33 = vld [vmem:[%s4301_s26 + $0x18] sm:$0xf]  ;;  %v3297_v34 = vld [vmem:[%s4301_s26 + $0x44] sm:$0xf] }
  0x48   : > { %269 = vst.msk [vmem:[#allocation2 + $0x3ec] sm:$0xf] %vm246_vm0, %v3296_v32  ;;  %253 = vst.msk [vmem:[#allocation2 + $0x4b0] sm:$0xf] %vm246_vm0, %v244_v33  ;;  %v245_v35 = vld [vmem:[%s4301_s26 + $0x1c] sm:$0xf] }
  0x49   : > { %338 = vrot.lane.b32.xlu1 %v3300_v8, %s4159_s11  ;;  %336 = vrot.lane.b32.xlu0 %v3299_v9, %s4159_s11  ;;  %270 = vst.msk [vmem:[#allocation2 + $0x4b4] sm:$0xf] %vm246_vm0, %v3297_v34  ;;  %254 = vst.msk [vmem:[#allocation2 + $0x578] sm:$0xf] %vm246_vm0, %v245_v35  ;;  %v3298_v36 = vld [vmem:[%s4301_s26 + $0x48] sm:$0xf] }
  0x4a   : > { %271 = vst.msk [vmem:[#allocation2 + $0x57c] sm:$0xf] %vm246_vm0, %v3298_v36  ;;  %v373_v37 = vld [vmem:[%s4301_s26 + $0x14] sm:$0xf]  ;;  %v372_v38 = vld [vmem:[%s4301_s26 + $0x10] sm:$0xf] }
  0x4b   : > { %v375_v39 = vld [vmem:[%s4301_s26 + $0x1c] sm:$0xf]  ;;  %v374_v40 = vld [vmem:[%s4301_s26 + $0x18] sm:$0xf]  ;;  %v3308_v41 = vld [vmem:[%s4301_s26 + $0x30] sm:$0xf] }
  0x4c   : > { %v3307_v42 = vld [vmem:[%s4301_s26 + $0x2c] sm:$0xf]  ;;  %v3310_v43 = vld [vmem:[%s4301_s26 + $0x38] sm:$0xf]  ;;  %v3309_v44 = vld [vmem:[%s4301_s26 + $0x34] sm:$0xf] }
  0x4d   : > { %342 = vrot.lane.b32.xlu1 %v3302_v11, %s4159_s11  ;;  %340 = vrot.lane.b32.xlu0 %v3301_v12, %s4159_s11  ;;  %v3315_v45 = vld [vmem:[%s4301_s26 + $0x58] sm:$0xf]  ;;  %v3316_v46 = vld [vmem:[%s4301_s26 + $0x5c] sm:$0xf]  ;;  %vm2365_vm1 = vcmask 556032   ;;  %vm2368_vm2 = vcmask 1043456  }
  0x4e   : > { %521 = vst.msk [vmem:[#allocation2 + $0x1c] sm:$0xf] %vm246_vm0, %v3315_v45  ;;  %522 = vst.msk [vmem:[#allocation2 + $0xe4] sm:$0xf] %vm246_vm0, %v3316_v46  ;;  %v3312_v47 = vld [vmem:[%s4301_s26 + $0x40] sm:$0xf] }
  0x4f   : > { %v3311_v48 = vld [vmem:[%s4301_s26 + $0x3c] sm:$0xf]  ;;  %v3317_v49 = vld [vmem:[%s4301_s26 + $0x60] sm:$0xf]  ;;  %v3318_v50 = vld [vmem:[%s4301_s26 + $0x64] sm:$0xf] }
  0x50   : > { %523 = vst.msk [vmem:[#allocation2 + $0x1ac] sm:$0xf] %vm246_vm0, %v3317_v49  ;;  %v3314_v51 = vld [vmem:[%s4301_s26 + $0x48] sm:$0xf]  ;;  %v3313_v52 = vld [vmem:[%s4301_s26 + $0x44] sm:$0xf] }
  0x51   : > { %346 = vrot.lane.b32.xlu1 %v3304_v13, %s4159_s11  ;;  %344 = vrot.lane.b32.xlu0 %v3303_v14, %s4159_s11  ;;  %524 = vst.msk [vmem:[#allocation2 + $0x274] sm:$0xf] %vm246_vm0, %v3318_v50  ;;  %v3319_v53 = vld [vmem:[%s4301_s26 + $0x68] sm:$0xf]  ;;  %v3320_v54 = vld [vmem:[%s4301_s26 + $0x6c] sm:$0xf] }
  0x52   : > { %v465_v55 = vld [vmem:[%s4301_s26 + $0x4] sm:$0xf]  ;;  %v464_v56 = vld [vmem:[%s4301_s26] sm:$0xf]  ;;  %525 = vst.msk [vmem:[#allocation2 + $0x33c] sm:$0xf] %vm246_vm0, %v3319_v53 }
  0x53   : > { %526 = vst.msk [vmem:[#allocation2 + $0x404] sm:$0xf] %vm246_vm0, %v3320_v54  ;;  %v3321_v57 = vld [vmem:[%s4301_s26 + $0x70] sm:$0xf]  ;;  %v3322_v58 = vld [vmem:[%s4301_s26 + $0x74] sm:$0xf] }
  0x54   : > { %v467_v59 = vld [vmem:[%s4301_s26 + $0xc] sm:$0xf]  ;;  %v466_v60 = vld [vmem:[%s4301_s26 + $0x8] sm:$0xf]  ;;  %527 = vst.msk [vmem:[#allocation2 + $0x4cc] sm:$0xf] %vm246_vm0, %v3321_v57 }
  0x55   : > { %350 = vrot.lane.b32.xlu1 %v3306_v15, %s4159_s11  ;;  %348 = vrot.lane.b32.xlu0 %v3305_v16, %s4159_s11  ;;  %528 = vst.msk [vmem:[#allocation2 + $0x594] sm:$0xf] %vm246_vm0, %v3322_v58  ;;  %v3323_v61 = vld [vmem:[%s4301_s26 + $0x84] sm:$0xf]  ;;  %v3324_v62 = vld [vmem:[%s4301_s26 + $0x88] sm:$0xf] }
  0x56   : > { %538 = vst.msk [vmem:[#allocation2 + $0x20] sm:$0xf] %vm246_vm0, %v3323_v61  ;;  %539 = vst.msk [vmem:[#allocation2 + $0xe8] sm:$0xf] %vm246_vm0, %v3324_v62  ;;  %v469_v63 = vld [vmem:[%s4301_s26 + $0x14] sm:$0xf] }
  0x57   : > { %v468_v0 = vld [vmem:[%s4301_s26 + $0x10] sm:$0xf]  ;;  %v3325_v1 = vld [vmem:[%s4301_s26 + $0x8c] sm:$0xf]  ;;  %v471_v3 = vld [vmem:[%s4301_s26 + $0x1c] sm:$0xf] }
  0x58   : > { %540 = vst.msk [vmem:[#allocation2 + $0x1b0] sm:$0xf] %vm246_vm0, %v3325_v1  ;;  %v3326_v2 = vld [vmem:[%s4301_s26 + $0x90] sm:$0xf]  ;;  %v470_v4 = vld [vmem:[%s4301_s26 + $0x18] sm:$0xf] }
  0x59   : > { %386 = vrot.lane.b32.xlu1 %v369_v21, %s4161_s28  ;;  %384 = vrot.lane.b32.xlu0 %v368_v22, %s4161_s28  ;;  %541 = vst.msk [vmem:[#allocation2 + $0x278] sm:$0xf] %vm246_vm0, %v3326_v2  ;;  %v3327_v5 = vld [vmem:[%s4301_s26 + $0x94] sm:$0xf]  ;;  %v3328_v6 = vld [vmem:[%s4301_s26 + $0x98] sm:$0xf] }
  0x5a   : > { %v3332_v7 = vld [vmem:[%s4301_s26 + $0x5c] sm:$0xf]  ;;  %v3331_v8 = vld [vmem:[%s4301_s26 + $0x58] sm:$0xf]  ;;  %542 = vst.msk [vmem:[#allocation2 + $0x340] sm:$0xf] %vm246_vm0, %v3327_v5 }
  0x5b   : > { %543 = vst.msk [vmem:[#allocation2 + $0x408] sm:$0xf] %vm246_vm0, %v3328_v6  ;;  %v3329_v9 = vld [vmem:[%s4301_s26 + $0x9c] sm:$0xf]  ;;  %v3330_v11 = vld [vmem:[%s4301_s26 + $0xa0] sm:$0xf] }
  0x5c   : > { %v3334_v12 = vld [vmem:[%s4301_s26 + $0x64] sm:$0xf]  ;;  %v3333_v13 = vld [vmem:[%s4301_s26 + $0x60] sm:$0xf]  ;;  %544 = vst.msk [vmem:[#allocation2 + $0x4d0] sm:$0xf] %vm246_vm0, %v3329_v9 }
  0x5d   : > { %390 = vrot.lane.b32.xlu1 %v371_v27, %s4161_s28  ;;  %388 = vrot.lane.b32.xlu0 %v370_v31, %s4161_s28  ;;  %545 = vst.msk [vmem:[#allocation2 + $0x598] sm:$0xf] %vm246_vm0, %v3330_v11  ;;  %v3336_v14 = vld [vmem:[%s4301_s26 + $0x6c] sm:$0xf]  ;;  %v3335_v15 = vld [vmem:[%s4301_s26 + $0x68] sm:$0xf] }
  0x5e   : > { %v3338_v16 = vld [vmem:[%s4301_s26 + $0x74] sm:$0xf]  ;;  %v3337_v17 = vld [vmem:[%s4301_s26 + $0x70] sm:$0xf]  ;;  %v3340_v18 = vld [vmem:[%s4301_s26 + $0x88] sm:$0xf] }
  0x5f   : > { %v3339_v19 = vld [vmem:[%s4301_s26 + $0x84] sm:$0xf]  ;;  %v3342_v20 = vld [vmem:[%s4301_s26 + $0x90] sm:$0xf]  ;;  %v3341_v21 = vld [vmem:[%s4301_s26 + $0x8c] sm:$0xf] }
  0x60   : > { %v3344_v22 = vld [vmem:[%s4301_s26 + $0x98] sm:$0xf]  ;;  %v3343_v23 = vld [vmem:[%s4301_s26 + $0x94] sm:$0xf]  ;;  %v3346_v24 = vld [vmem:[%s4301_s26 + $0xa0] sm:$0xf] }
  0x61   : > { %394 = vrot.lane.b32.xlu1 %v373_v37, %s4161_s28  ;;  %392 = vrot.lane.b32.xlu0 %v372_v38, %s4161_s28  ;;  %v3345_v25 = vld [vmem:[%s4301_s26 + $0x9c] sm:$0xf]  ;;  %v3347_v27 = vld [vmem:[%s4301_s26 + $0x58] sm:$0xf]  ;;  %s3290_s16 = sshll.u32 %s4297_s17, 6  ;;  %p3699_p6 = scmp.ne.s32.totalorder %s4220_s22, 0 }
  0x62   : > { %v3348_v26 = vld [vmem:[%s4301_s26 + $0x5c] sm:$0xf]  ;;  %v3350_v28 = vld [vmem:[%s4301_s26 + $0x64] sm:$0xf]  ;;  %v3349_v29 = vld [vmem:[%s4301_s26 + $0x60] sm:$0xf] }
  0x63   : > { %v3352_v32 = vld [vmem:[%s4301_s26 + $0x6c] sm:$0xf]  ;;  %v3351_v33 = vld [vmem:[%s4301_s26 + $0x68] sm:$0xf]  ;;  %v3354_v36 = vld [vmem:[%s4301_s26 + $0x74] sm:$0xf] }
  0x64   : > { %v3353_v37 = vld [vmem:[%s4301_s26 + $0x70] sm:$0xf]  ;;  %v3357_v45 = vld [vmem:[%s4301_s26 + $0x8c] sm:$0xf]  ;;  %v3372_v50 = vld [vmem:[%s4301_s26 + $0x8] sm:$0xf] }
  0x65   : > { %398 = vrot.lane.b32.xlu1 %v375_v39, %s4161_s28  ;;  %396 = vrot.lane.b32.xlu0 %v374_v40, %s4161_s28  ;;  %v3356_v40 = vld [vmem:[%s4301_s26 + $0x88] sm:$0xf]  ;;  %v3379_v49 = vld [vmem:[%s4301_s26 + $0x30] sm:$0xf]  ;;  %796 = vst.msk [vmem:[#allocation2 + $0x100] sm:$0xf] %vm246_vm0, %v3372_v50 }
  0x66   : > { %812 = vst.msk [vmem:[#allocation2 + $0x3c] sm:$0xf] %vm246_vm0, %v3379_v49  ;;  %v3359_v53 = vld [vmem:[%s4301_s26 + $0x94] sm:$0xf]  ;;  %v2182_v57 = vld [vmem:[#allocation2 + $0xc8] sm:$0xff]  ;;  %s5594_s23 = scalar_lea.vmem [#allocation6], %s3290_s16 }
  0x67   : > { %v3362_v58 = vld [vmem:[%s4301_s26 + $0xa0] sm:$0xf]  ;;  %v3364_v2 = vld [vmem:[%s4301_s26 + $0x5c] sm:$0xf]  ;;  %v3388_v6 = vld [vmem:[%s4301_s26 + $0x8] sm:$0xf] }
  0x68   : > { %v3396_v11 = vld [vmem:[%s4301_s26 + $0x34] sm:$0xf]  ;;  %v3484_v49 = vld [vmem:[%s4301_s26 + $0xc] sm:$0xf]  ;;  %v3492_v50 = vld [vmem:[%s4301_s26 + $0x38] sm:$0xf] }
  0x69   : > { %434 = vrot.lane.b32.xlu1 %v3308_v41, %s4161_s28  ;;  %432 = vrot.lane.b32.xlu0 %v3307_v42, %s4161_s28  ;;  %v3355_v41 = vld [vmem:[%s4301_s26 + $0x84] sm:$0xf]  ;;  %1344 = vst.msk [vmem:[#allocation2 + $0x138] sm:$0xf] %vm246_vm0, %v3484_v49  ;;  %1361 = vst.msk [vmem:[#allocation2 + $0x13c] sm:$0xf] %vm246_vm0, %v3492_v50 }
  0x6a   : > { %v3620_v50 = vld [vmem:[%s4301_s26 + $0x3c] sm:$0xf]  ;;  %vm3125_vm3 = vcmask (!%p3699_p6), 7168  }
  0x6d   : > { %438 = vrot.lane.b32.xlu1 %v3310_v43, %s4161_s28  ;;  %436 = vrot.lane.b32.xlu0 %v3309_v44, %s4161_s28  ;;  %v3358_v44 = vld [vmem:[%s4301_s26 + $0x90] sm:$0xf] }
  0x71   : > { %442 = vrot.lane.b32.xlu1 %v3312_v47, %s4161_s28  ;;  %440 = vrot.lane.b32.xlu0 %v3311_v48, %s4161_s28  ;;  %v3371_v48 = vld [vmem:[%s4301_s26 + $0x4] sm:$0xf] }
  0x72   : > { %795 = vst.msk [vmem:[#allocation2 + $0x38] sm:$0xf] %vm246_vm0, %v3371_v48  ;;  %v3491_v48 = vld [vmem:[%s4301_s26 + $0x34] sm:$0xf] }
  0x73   : > { %1360 = vst.msk [vmem:[#allocation2 + $0x74] sm:$0xf] %vm246_vm0, %v3491_v48 }
  0x75   : > { %446 = vrot.lane.b32.xlu1 %v3314_v51, %s4161_s28  ;;  %444 = vrot.lane.b32.xlu0 %v3313_v52, %s4161_s28  ;;  %v3380_v51 = vld [vmem:[%s4301_s26 + $0x34] sm:$0xf]  ;;  %v3360_v52 = vld [vmem:[%s4301_s26 + $0x98] sm:$0xf] }
  0x76   : > { %813 = vst.msk [vmem:[#allocation2 + $0x104] sm:$0xf] %vm246_vm0, %v3380_v51  ;;  %v3476_v51 = vld [vmem:[%s4301_s26 + $0x60] sm:$0xf] }
  0x79   : > { %482 = vrot.lane.b32.xlu1 %v465_v55, %s4162_s12  ;;  %480 = vrot.lane.b32.xlu0 %v464_v56, %s4162_s12  ;;  %v2157_v56 = vld [vmem:[#allocation2] sm:$0xff] }
  0x7d   : > { %486 = vrot.lane.b32.xlu1 %v467_v59, %s4162_s12  ;;  %484 = vrot.lane.b32.xlu0 %v466_v60, %s4162_s12  ;;  %v3361_v59 = vld [vmem:[%s4301_s26 + $0x9c] sm:$0xf] }
  0x81   : > { %490 = vrot.lane.b32.xlu1 %v469_v63, %s4162_s12  ;;  %488 = vrot.lane.b32.xlu0 %v468_v0, %s4162_s12 }
  0x85   : > { %494 = vrot.lane.b32.xlu1 %v471_v3, %s4162_s12  ;;  %492 = vrot.lane.b32.xlu0 %v470_v4, %s4162_s12  ;;  %v3363_v3 = vld [vmem:[%s4301_s26 + $0x58] sm:$0xf] }
  0x89   : > { %564 = vrot.lane.b32.xlu1 %v3332_v7, %s4159_s11  ;;  %562 = vrot.lane.b32.xlu0 %v3331_v8, %s4159_s11  ;;  %v3387_v7 = vld [vmem:[%s4301_s26 + $0x4] sm:$0xf] }
  0x8d   : > { %568 = vrot.lane.b32.xlu1 %v3334_v12, %s4159_s11  ;;  %566 = vrot.lane.b32.xlu0 %v3333_v13, %s4159_s11  ;;  %v3395_v12 = vld [vmem:[%s4301_s26 + $0x30] sm:$0xf] }
  0x91   : > { %572 = vrot.lane.b32.xlu1 %v3336_v14, %s4159_s11  ;;  %570 = vrot.lane.b32.xlu0 %v3335_v15, %s4159_s11  ;;  %v3427_v15 = vld [vmem:[%s4301_s26 + $0x5c] sm:$0xf] }
  0x92   : > { %1069 = vst.msk [vmem:[#allocation2 + $0x54] sm:$0xf] %vm246_vm0, %v3427_v15  ;;  %v3523_v15 = vld [vmem:[%s4301_s26 + $0x34] sm:$0xf] }
  0x95   : > { %576 = vrot.lane.b32.xlu1 %v3338_v16, %s4159_s11  ;;  %574 = vrot.lane.b32.xlu0 %v3337_v17, %s4159_s11  ;;  %v3428_v16 = vld [vmem:[%s4301_s26 + $0x60] sm:$0xf]  ;;  %v3404_v17 = vld [vmem:[%s4301_s26 + $0x8] sm:$0xf] }
  0x96   : > { %1070 = vst.msk [vmem:[#allocation2 + $0x11c] sm:$0xf] %vm246_vm0, %v3428_v16 }
  0x99   : > { %612 = vrot.lane.b32.xlu1 %v3340_v18, %s4159_s11  ;;  %610 = vrot.lane.b32.xlu0 %v3339_v19, %s4159_s11  ;;  %v3403_v18 = vld [vmem:[%s4301_s26 + $0x4] sm:$0xf] }
  0x9d   : > { %616 = vrot.lane.b32.xlu1 %v3342_v20, %s4159_s11  ;;  %614 = vrot.lane.b32.xlu0 %v3341_v21, %s4159_s11  ;;  %v3435_v21 = vld [vmem:[%s4301_s26 + $0x88] sm:$0xf] }
  0x9e   : > { %1086 = vst.msk [vmem:[#allocation2 + $0x58] sm:$0xf] %vm246_vm0, %v3435_v21 }
  0xa1   : > { %620 = vrot.lane.b32.xlu1 %v3344_v22, %s4159_s11  ;;  %618 = vrot.lane.b32.xlu0 %v3343_v23, %s4159_s11  ;;  %v3436_v22 = vld [vmem:[%s4301_s26 + $0x8c] sm:$0xf]  ;;  %v3412_v23 = vld [vmem:[%s4301_s26 + $0x34] sm:$0xf] }
  0xa2   : > { %1087 = vst.msk [vmem:[#allocation2 + $0x120] sm:$0xf] %vm246_vm0, %v3436_v22  ;;  %v3556_v22 = vld [vmem:[%s4301_s26 + $0x64] sm:$0xf] }
  0xa5   : > { %624 = vrot.lane.b32.xlu1 %v3346_v24, %s4159_s11  ;;  %622 = vrot.lane.b32.xlu0 %v3345_v25, %s4159_s11  ;;  %v3411_v24 = vld [vmem:[%s4301_s26 + $0x30] sm:$0xf] }
  0xa9   : > { %660 = vrot.lane.b32.xlu1 %v3348_v26, %s4161_s28  ;;  %658 = vrot.lane.b32.xlu0 %v3347_v27, %s4161_s28  ;;  %v3420_v27 = vld [vmem:[%s4301_s26 + $0x8] sm:$0xf] }
  0xab   : > { %v293_v30 = vpop.permute.xlu1 %292  ;;  %v289_v31 = vpop.permute.xlu0 %288 }
  0xac   : > { %314 = vst.msk [vmem:[#allocation2 + $0x198] sm:$0xf] %vm246_vm0, %v293_v30  ;;  %312 = vst.msk [vmem:[#allocation2 + $0x8] sm:$0xf] %vm246_vm0, %v289_v31  ;;  %v3444_v31 = vld [vmem:[%s4301_s26 + $0x60] sm:$0xf] }
  0xad   : > { %664 = vrot.lane.b32.xlu1 %v3350_v28, %s4161_s28  ;;  %662 = vrot.lane.b32.xlu0 %v3349_v29, %s4161_s28  ;;  %v3419_v28 = vld [vmem:[%s4301_s26 + $0x4] sm:$0xf] }
  0xaf   : > { %v295_v34 = vpop.permute.xlu1 %294  ;;  %v291_v35 = vpop.permute.xlu0 %290 }
  0xb0   : > { %315 = vst.msk [vmem:[#allocation2 + $0x260] sm:$0xf] %vm246_vm0, %v295_v34  ;;  %313 = vst.msk [vmem:[#allocation2 + $0xd0] sm:$0xf] %vm246_vm0, %v291_v35  ;;  %v3452_v35 = vld [vmem:[%s4301_s26 + $0x8c] sm:$0xf] }
  0xb1   : > { %668 = vrot.lane.b32.xlu1 %v3352_v32, %s4161_s28  ;;  %666 = vrot.lane.b32.xlu0 %v3351_v33, %s4161_s28  ;;  %v3443_v32 = vld [vmem:[%s4301_s26 + $0x5c] sm:$0xf] }
  0xb3   : > { %v299_v38 = vpop.permute.xlu1 %298  ;;  %v297_v39 = vpop.permute.xlu0 %296 }
  0xb4   : > { %317 = vst.msk [vmem:[#allocation2 + $0x3f0] sm:$0xf] %vm246_vm0, %v299_v38  ;;  %316 = vst.msk [vmem:[#allocation2 + $0x328] sm:$0xf] %vm246_vm0, %v297_v39  ;;  %v3460_v39 = vld [vmem:[%s4301_s26 + $0x60] sm:$0xf] }
  0xb5   : > { %672 = vrot.lane.b32.xlu1 %v3354_v36, %s4161_s28  ;;  %670 = vrot.lane.b32.xlu0 %v3353_v37, %s4161_s28  ;;  %v3451_v36 = vld [vmem:[%s4301_s26 + $0x88] sm:$0xf] }
  0xb7   : > { %v303_v42 = vpop.permute.xlu1 %302  ;;  %v301_v43 = vpop.permute.xlu0 %300 }
  0xb8   : > { %319 = vst.msk [vmem:[#allocation2 + $0x580] sm:$0xf] %vm246_vm0, %v303_v42  ;;  %318 = vst.msk [vmem:[#allocation2 + $0x4b8] sm:$0xf] %vm246_vm0, %v301_v43  ;;  %v3468_v43 = vld [vmem:[%s4301_s26 + $0x8c] sm:$0xf] }
  0xb9   : > { %708 = vrot.lane.b32.xlu1 %v3356_v40, %s4161_s28  ;;  %706 = vrot.lane.b32.xlu0 %v3355_v41, %s4161_s28  ;;  %v3459_v40 = vld [vmem:[%s4301_s26 + $0x5c] sm:$0xf] }
  0xbb   : > { %v339_v46 = vpop.permute.xlu1 %338  ;;  %v337_v47 = vpop.permute.xlu0 %336 }
  0xbc   : > { %361 = vst.msk [vmem:[#allocation2 + $0xd4] sm:$0xf] %vm246_vm0, %v339_v46  ;;  %360 = vst.msk [vmem:[#allocation2 + $0xc] sm:$0xf] %vm246_vm0, %v337_v47  ;;  %v3483_v47 = vld [vmem:[%s4301_s26 + $0x8] sm:$0xf] }
  0xbd   : > { %712 = vrot.lane.b32.xlu1 %v3358_v44, %s4161_s28  ;;  %710 = vrot.lane.b32.xlu0 %v3357_v45, %s4161_s28  ;;  %v3467_v44 = vld [vmem:[%s4301_s26 + $0x88] sm:$0xf]  ;;  %1343 = vst.msk [vmem:[#allocation2 + $0x70] sm:$0xf] %vm246_vm0, %v3483_v47  ;;  %v3611_v47 = vld [vmem:[%s4301_s26 + $0xc] sm:$0xf] }
  0xbf   : > { %v343_v54 = vpop.permute.xlu1 %342  ;;  %v341_v55 = vpop.permute.xlu0 %340 }
  0xc0   : > { %363 = vst.msk [vmem:[#allocation2 + $0x264] sm:$0xf] %vm246_vm0, %v343_v54  ;;  %362 = vst.msk [vmem:[#allocation2 + $0x19c] sm:$0xf] %vm246_vm0, %v341_v55  ;;  %v3500_v55 = vld [vmem:[%s4301_s26 + $0xc] sm:$0xf] }
  0xc1   : > { %716 = vrot.lane.b32.xlu1 %v3360_v52, %s4161_s28  ;;  %714 = vrot.lane.b32.xlu0 %v3359_v53, %s4161_s28  ;;  %v3475_v52 = vld [vmem:[%s4301_s26 + $0x5c] sm:$0xf] }
  0xc3   : > { %v347_v60 = vpop.permute.xlu1 %346  ;;  %v345_v61 = vpop.permute.xlu0 %344  ;;  %v2158_v62 = vld [vmem:[#allocation2 + $0x8] sm:$0xff]  ;;  %v2183_v63 = vld [vmem:[#allocation2 + $0xd0] sm:$0xff] }
  0xc4   : > { %365 = vst.msk [vmem:[#allocation2 + $0x3f4] sm:$0xf] %vm246_vm0, %v347_v60  ;;  %364 = vst.msk [vmem:[#allocation2 + $0x32c] sm:$0xf] %vm246_vm0, %v345_v61  ;;  %v3707_v0 = vpack.c.bf16 %v2158_v62, %v2157_v56  ;;  %v3743_v1 = vpack.c.bf16 %v2183_v63, %v2182_v57  ;;  %v3499_v56 = vld [vmem:[%s4301_s26 + $0x8] sm:$0xf] }
  0xc5   : > { %720 = vrot.lane.b32.xlu1 %v3362_v58, %s4161_s28  ;;  %718 = vrot.lane.b32.xlu0 %v3361_v59, %s4161_s28 }
  0xc6   : > { %3708 = vmatpush1.bf16.msra.mxu0 %v3707_v0  ;;  %3744 = vmatpush1.bf16.msra.mxu1 %v3743_v1  ;;  %v3508_v1 = vld [vmem:[%s4301_s26 + $0x38] sm:$0xf] }
  0xc7   : > { %v351_v4 = vpop.permute.xlu1 %350  ;;  %v349_v5 = vpop.permute.xlu0 %348  ;;  %3709 = vmatprep.subr.bf16.mxu0 %v4160_v10  ;;  %3745 = vmatprep.subr.bf16.mxu1 %v4160_v10 }
  0xc8   : > { %367 = vst.msk [vmem:[#allocation2 + $0x584] sm:$0xf] %vm246_vm0, %v351_v4  ;;  %366 = vst.msk [vmem:[#allocation2 + $0x4bc] sm:$0xf] %vm246_vm0, %v349_v5  ;;  %v3539_v5 = vld [vmem:[%s4301_s26 + $0x60] sm:$0xf] }
  0xc9   : > { %756 = vrot.lane.b32.xlu1 %v3364_v2, %s4162_s12  ;;  %754 = vrot.lane.b32.xlu0 %v3363_v3, %s4162_s12  ;;  %v3507_v2 = vld [vmem:[%s4301_s26 + $0x34] sm:$0xf]  ;;  %1617 = vst.msk [vmem:[#allocation2 + $0x8c] sm:$0xf] %vm246_vm0, %v3539_v5  ;;  %v3382_v5 = vld [vmem:[%s4301_s26 + $0x3c] sm:$0xf] }
  0xca   : > { %815 = vst.msk [vmem:[#allocation2 + $0x294] sm:$0xf] %vm246_vm0, %v3382_v5 }
  0xcb   : > { %v387_v8 = vpop.permute.xlu1 %386  ;;  %v385_v9 = vpop.permute.xlu0 %384 }
  0xcc   : > { %409 = vst.msk [vmem:[#allocation2 + $0xd8] sm:$0xf] %vm246_vm0, %v387_v8  ;;  %408 = vst.msk [vmem:[#allocation2 + $0x10] sm:$0xf] %vm246_vm0, %v385_v9  ;;  %v3515_v8 = vld [vmem:[%s4301_s26 + $0x8] sm:$0xf] }
  0xcd   : > { %838 = vrot.lane.b32.xlu1 %v3388_v6, %s4159_s11  ;;  %836 = vrot.lane.b32.xlu0 %v3387_v7, %s4159_s11  ;;  %v3540_v6 = vld [vmem:[%s4301_s26 + $0x64] sm:$0xf]  ;;  %v3516_v7 = vld [vmem:[%s4301_s26 + $0xc] sm:$0xf] }
  0xce   : > { %1618 = vst.msk [vmem:[#allocation2 + $0x154] sm:$0xf] %vm246_vm0, %v3540_v6 }
  0xcf   : > { %v391_v13 = vpop.permute.xlu1 %390  ;;  %v389_v14 = vpop.permute.xlu0 %388 }
  0xd0   : > { %411 = vst.msk [vmem:[#allocation2 + $0x268] sm:$0xf] %vm246_vm0, %v391_v13  ;;  %410 = vst.msk [vmem:[#allocation2 + $0x1a0] sm:$0xf] %vm246_vm0, %v389_v14  ;;  %v3548_v13 = vld [vmem:[%s4301_s26 + $0x90] sm:$0xf] }
  0xd1   : > { %886 = vrot.lane.b32.xlu1 %v3396_v11, %s4159_s11  ;;  %884 = vrot.lane.b32.xlu0 %v3395_v12, %s4159_s11  ;;  %v3547_v12 = vld [vmem:[%s4301_s26 + $0x8c] sm:$0xf]  ;;  %1635 = vst.msk [vmem:[#allocation2 + $0x158] sm:$0xf] %vm246_vm0, %v3548_v13  ;;  %v3524_v14 = vld [vmem:[%s4301_s26 + $0x38] sm:$0xf] }
  0xd2   : > { %1634 = vst.msk [vmem:[#allocation2 + $0x90] sm:$0xf] %vm246_vm0, %v3547_v12  ;;  %v3643_v12 = vld [vmem:[%s4301_s26 + $0xc] sm:$0xf] }
  0xd3   : > { %v395_v19 = vpop.permute.xlu1 %394  ;;  %v393_v20 = vpop.permute.xlu0 %392 }
  0xd4   : > { %413 = vst.msk [vmem:[#allocation2 + $0x3f8] sm:$0xf] %vm246_vm0, %v395_v19  ;;  %412 = vst.msk [vmem:[#allocation2 + $0x330] sm:$0xf] %vm246_vm0, %v393_v20  ;;  %v3531_v19 = vld [vmem:[%s4301_s26 + $0x8] sm:$0xf] }
  0xd5   : > { %934 = vrot.lane.b32.xlu1 %v3404_v17, %s4161_s28  ;;  %932 = vrot.lane.b32.xlu0 %v3403_v18, %s4161_s28  ;;  %v3532_v18 = vld [vmem:[%s4301_s26 + $0xc] sm:$0xf] }
  0xd7   : > { %v399_v25 = vpop.permute.xlu1 %398  ;;  %v397_v26 = vpop.permute.xlu0 %396 }
  0xd8   : > { %415 = vst.msk [vmem:[#allocation2 + $0x588] sm:$0xf] %vm246_vm0, %v399_v25  ;;  %414 = vst.msk [vmem:[#allocation2 + $0x4c0] sm:$0xf] %vm246_vm0, %v397_v26  ;;  %v3564_v26 = vld [vmem:[%s4301_s26 + $0x90] sm:$0xf] }
  0xd9   : > { %982 = vrot.lane.b32.xlu1 %v3412_v23, %s4161_s28  ;;  %980 = vrot.lane.b32.xlu0 %v3411_v24, %s4161_s28  ;;  %v3555_v23 = vld [vmem:[%s4301_s26 + $0x60] sm:$0xf] }
  0xdb   : > { %v435_v29 = vpop.permute.xlu1 %434  ;;  %v433_v30 = vpop.permute.xlu0 %432 }
  0xdc   : > { %457 = vst.msk [vmem:[#allocation2 + $0xdc] sm:$0xf] %vm246_vm0, %v435_v29  ;;  %456 = vst.msk [vmem:[#allocation2 + $0x14] sm:$0xf] %vm246_vm0, %v433_v30  ;;  %v3595_v30 = vld [vmem:[%s4301_s26 + $0xc] sm:$0xf] }
  0xdd   : > { %1030 = vrot.lane.b32.xlu1 %v3420_v27, %s4162_s12  ;;  %1028 = vrot.lane.b32.xlu0 %v3419_v28, %s4162_s12  ;;  %v3563_v27 = vld [vmem:[%s4301_s26 + $0x8c] sm:$0xf]  ;;  %1891 = vst.msk [vmem:[#allocation2 + $0xa8] sm:$0xf] %vm246_vm0, %v3595_v30 }
  0xde   : > { %v3405_v30 = vld [vmem:[%s4301_s26 + $0xc] sm:$0xf] }
  0xdf   : > { %v439_v33 = vpop.permute.xlu1 %438  ;;  %v437_v34 = vpop.permute.xlu0 %436 }
  0xe0   : > { %459 = vst.msk [vmem:[#allocation2 + $0x26c] sm:$0xf] %vm246_vm0, %v439_v33  ;;  %458 = vst.msk [vmem:[#allocation2 + $0x1a4] sm:$0xf] %vm246_vm0, %v437_v34  ;;  %v3604_v33 = vld [vmem:[%s4301_s26 + $0x3c] sm:$0xf] }
  0xe1   : > { %1112 = vrot.lane.b32.xlu1 %v3444_v31, %s4159_s11  ;;  %1110 = vrot.lane.b32.xlu0 %v3443_v32, %s4159_s11  ;;  %v3603_v31 = vld [vmem:[%s4301_s26 + $0x38] sm:$0xf]  ;;  %v3596_v32 = vld [vmem:[%s4301_s26 + $0x10] sm:$0xf]  ;;  %1909 = vst.msk [vmem:[#allocation2 + $0x174] sm:$0xf] %vm246_vm0, %v3604_v33 }
  0xe2   : > { %1908 = vst.msk [vmem:[#allocation2 + $0xac] sm:$0xf] %vm246_vm0, %v3603_v31  ;;  %1892 = vst.msk [vmem:[#allocation2 + $0x170] sm:$0xf] %vm246_vm0, %v3596_v32  ;;  %v3572_v34 = vld [vmem:[%s4301_s26 + $0x64] sm:$0xf] }
  0xe3   : > { %v443_v37 = vpop.permute.xlu1 %442  ;;  %v441_v38 = vpop.permute.xlu0 %440  ;;  %v2159_v57 = vld [vmem:[#allocation2 + $0x10] sm:$0xff]  ;;  %v2184_v61 = vld [vmem:[#allocation2 + $0xd8] sm:$0xff] }
  0xe4   : > { %461 = vst.msk [vmem:[#allocation2 + $0x3fc] sm:$0xf] %vm246_vm0, %v443_v37  ;;  %460 = vst.msk [vmem:[#allocation2 + $0x334] sm:$0xf] %vm246_vm0, %v441_v38  ;;  %v3580_v38 = vld [vmem:[%s4301_s26 + $0x90] sm:$0xf] }
  0xe5   : > { %1160 = vrot.lane.b32.xlu1 %v3452_v35, %s4159_s11  ;;  %1158 = vrot.lane.b32.xlu0 %v3451_v36, %s4159_s11  ;;  %v3571_v35 = vld [vmem:[%s4301_s26 + $0x60] sm:$0xf]  ;;  %v3437_v33 = vld [vmem:[%s4301_s26 + $0x90] sm:$0xf] }
  0xe6   : > { %1088 = vst.msk [vmem:[#allocation2 + $0x1e8] sm:$0xf] %vm246_vm0, %v3437_v33  ;;  %v3542_v33 = vld [vmem:[%s4301_s26 + $0x6c] sm:$0xf] }
  0xe7   : > { %v447_v41 = vpop.permute.xlu1 %446  ;;  %v445_v42 = vpop.permute.xlu0 %444  ;;  %1620 = vst.msk [vmem:[#allocation2 + $0x2e4] sm:$0xf] %vm246_vm0, %v3542_v33  ;;  %v3622_v33 = vld [vmem:[%s4301_s26 + $0x44] sm:$0xf] }
  0xe8   : > { %463 = vst.msk [vmem:[#allocation2 + $0x58c] sm:$0xf] %vm246_vm0, %v447_v41  ;;  %462 = vst.msk [vmem:[#allocation2 + $0x4c4] sm:$0xf] %vm246_vm0, %v445_v42  ;;  %v3588_v42 = vld [vmem:[%s4301_s26 + $0x64] sm:$0xf] }
  0xe9   : > { %1208 = vrot.lane.b32.xlu1 %v3460_v39, %s4161_s28  ;;  %1206 = vrot.lane.b32.xlu0 %v3459_v40, %s4161_s28  ;;  %v3579_v39 = vld [vmem:[%s4301_s26 + $0x8c] sm:$0xf] }
  0xeb   : > { %v483_v45 = vpop.permute.xlu1 %482  ;;  %v481_v46 = vpop.permute.xlu0 %480 }
  0xec   : > { %505 = vst.msk [vmem:[#allocation2 + $0xe0] sm:$0xf] %vm246_vm0, %v483_v45  ;;  %504 = vst.msk [vmem:[#allocation2 + $0x18] sm:$0xf] %vm246_vm0, %v481_v46  ;;  %v3612_v46 = vld [vmem:[%s4301_s26 + $0x10] sm:$0xf] }
  0xed   : > { %1256 = vrot.lane.b32.xlu1 %v3468_v43, %s4161_s28  ;;  %1254 = vrot.lane.b32.xlu0 %v3467_v44, %s4161_s28  ;;  %v3587_v43 = vld [vmem:[%s4301_s26 + $0x60] sm:$0xf] }
  0xef   : > { %v487_v53 = vpop.permute.xlu1 %486  ;;  %v485_v54 = vpop.permute.xlu0 %484 }
  0xf0   : > { %507 = vst.msk [vmem:[#allocation2 + $0x270] sm:$0xf] %vm246_vm0, %v487_v53  ;;  %506 = vst.msk [vmem:[#allocation2 + $0x1a8] sm:$0xf] %vm246_vm0, %v485_v54  ;;  %v3628_v54 = vld [vmem:[%s4301_s26 + $0x10] sm:$0xf] }
  0xf1   : > { %1304 = vrot.lane.b32.xlu1 %v3476_v51, %s4162_s12  ;;  %1302 = vrot.lane.b32.xlu0 %v3475_v52, %s4162_s12  ;;  %v3619_v51 = vld [vmem:[%s4301_s26 + $0x38] sm:$0xf] }
  0xf3   : > { %v491_v58 = vpop.permute.xlu1 %490  ;;  %v489_v59 = vpop.permute.xlu0 %488  ;;  %v2160_v60 = vld [vmem:[#allocation2 + $0x18] sm:$0xff]  ;;  %v2185_v62 = vld [vmem:[#allocation2 + $0xe0] sm:$0xff] }
  0xf4   : > { %509 = vst.msk [vmem:[#allocation2 + $0x400] sm:$0xf] %vm246_vm0, %v491_v58  ;;  %508 = vst.msk [vmem:[#allocation2 + $0x338] sm:$0xf] %vm246_vm0, %v489_v59  ;;  %v3710_v63 = vpack.c.bf16 %v2160_v60, %v2159_v57  ;;  %v3746_v0 = vpack.c.bf16 %v2185_v62, %v2184_v61 }
  0xf5   : > { %1386 = vrot.lane.b32.xlu1 %v3500_v55, %s4159_s11  ;;  %1384 = vrot.lane.b32.xlu0 %v3499_v56, %s4159_s11  ;;  %v3627_v55 = vld [vmem:[%s4301_s26 + $0xc] sm:$0xf] }
  0xf6   : > { %3711 = vmatpush1.bf16.msra.mxu0 %v3710_v63  ;;  %3747 = vmatpush1.bf16.msra.mxu1 %v3746_v0  ;;  %v3373_v0 = vld [vmem:[%s4301_s26 + $0xc] sm:$0xf] }
  0xf7   : > { %v495_v3 = vpop.permute.xlu1 %494  ;;  %v493_v4 = vpop.permute.xlu0 %492  ;;  %3712 = vmatprep.subr.bf16.mxu0 %v4160_v10  ;;  %3748 = vmatprep.subr.bf16.mxu1 %v4160_v10  ;;  %797 = vst.msk [vmem:[#allocation2 + $0x1c8] sm:$0xf] %vm246_vm0, %v3373_v0 }
  0xf8   : > { %511 = vst.msk [vmem:[#allocation2 + $0x590] sm:$0xf] %vm246_vm0, %v495_v3  ;;  %510 = vst.msk [vmem:[#allocation2 + $0x4c8] sm:$0xf] %vm246_vm0, %v493_v4  ;;  %v3636_v3 = vld [vmem:[%s4301_s26 + $0x3c] sm:$0xf] }
  0xf9   : > { %1434 = vrot.lane.b32.xlu1 %v3508_v1, %s4159_s11  ;;  %1432 = vrot.lane.b32.xlu0 %v3507_v2, %s4159_s11  ;;  %v3381_v1 = vld [vmem:[%s4301_s26 + $0x38] sm:$0xf]  ;;  %v3374_v2 = vld [vmem:[%s4301_s26 + $0x10] sm:$0xf] }
  0xfa   : > { %v3635_v4 = vld [vmem:[%s4301_s26 + $0x38] sm:$0xf]  ;;  %814 = vst.msk [vmem:[#allocation2 + $0x1cc] sm:$0xf] %vm246_vm0, %v3381_v1  ;;  %798 = vst.msk [vmem:[#allocation2 + $0x290] sm:$0xf] %vm246_vm0, %v3374_v2 }
  0xfb   : > { %v565_v9 = vpop.permute.xlu1 %564  ;;  %v563_v11 = vpop.permute.xlu0 %562 }
  0xfc   : > { %587 = vst.msk [vmem:[#allocation2 + $0xec] sm:$0xf] %vm246_vm0, %v565_v9  ;;  %586 = vst.msk [vmem:[#allocation2 + $0x24] sm:$0xf] %vm246_vm0, %v563_v11  ;;  %v3644_v11 = vld [vmem:[%s4301_s26 + $0x10] sm:$0xf] }
  0xfd   : > { %1482 = vrot.lane.b32.xlu1 %v3516_v7, %s4161_s28  ;;  %1480 = vrot.lane.b32.xlu0 %v3515_v8, %s4161_s28  ;;  %v4736_v8 = vld [vmem:[%s5723_s1] sm:$0xff] }
  0xfe   : > { %v4742_v9 = vcombine.high %v4736_v8, %v4736_v8 }
  0xff   : > { %v569_v16 = vpop.permute.xlu1 %568  ;;  %v567_v17 = vpop.permute.xlu0 %566 }
 0x100   : > { %589 = vst.msk [vmem:[#allocation2 + $0x27c] sm:$0xf] %vm246_vm0, %v569_v16  ;;  %588 = vst.msk [vmem:[#allocation2 + $0x1b4] sm:$0xf] %vm246_vm0, %v567_v17  ;;  %3652 = vmatprep.mubr.msk.f32.mxu0 %vm2365_vm1, %v4742_v9  ;;  %3654 = vmatprep.mubr.msk.f32.mxu1 %vm2365_vm1, %v4742_v9  ;;  %v3365_v16 = vld [vmem:[%s4301_s26 + $0x60] sm:$0xf] }
 0x101   : > { %1530 = vrot.lane.b32.xlu1 %v3524_v14, %s4161_s28  ;;  %1528 = vrot.lane.b32.xlu0 %v3523_v15, %s4161_s28  ;;  %v3366_v15 = vld [vmem:[%s4301_s26 + $0x64] sm:$0xf] }
 0x103   : > { %v573_v20 = vpop.permute.xlu1 %572  ;;  %v571_v21 = vpop.permute.xlu0 %570  ;;  %v2161_v56 = vld [vmem:[#allocation2 + $0x20] sm:$0xff]  ;;  %v2186_v60 = vld [vmem:[#allocation2 + $0xe8] sm:$0xff] }
 0x104   : > { %591 = vst.msk [vmem:[#allocation2 + $0x40c] sm:$0xf] %vm246_vm0, %v573_v20  ;;  %590 = vst.msk [vmem:[#allocation2 + $0x344] sm:$0xf] %vm246_vm0, %v571_v21  ;;  %v3389_v20 = vld [vmem:[%s4301_s26 + $0xc] sm:$0xf] }
 0x105   : > { %1578 = vrot.lane.b32.xlu1 %v3532_v18, %s4162_s12  ;;  %1576 = vrot.lane.b32.xlu0 %v3531_v19, %s4162_s12  ;;  %v3390_v19 = vld [vmem:[%s4301_s26 + $0x10] sm:$0xf] }
 0x107   : > { %v577_v24 = vpop.permute.xlu1 %576  ;;  %v575_v25 = vpop.permute.xlu0 %574 }
 0x108   : > { %593 = vst.msk [vmem:[#allocation2 + $0x59c] sm:$0xf] %vm246_vm0, %v577_v24  ;;  %592 = vst.msk [vmem:[#allocation2 + $0x4d4] sm:$0xf] %vm246_vm0, %v575_v25  ;;  %v3397_v24 = vld [vmem:[%s4301_s26 + $0x38] sm:$0xf] }
 0x109   : > { %1660 = vrot.lane.b32.xlu1 %v3556_v22, %s4159_s11  ;;  %1658 = vrot.lane.b32.xlu0 %v3555_v23, %s4159_s11  ;;  %v3398_v23 = vld [vmem:[%s4301_s26 + $0x3c] sm:$0xf] }
 0x10b   : > { %v613_v28 = vpop.permute.xlu1 %612  ;;  %v611_v29 = vpop.permute.xlu0 %610 }
 0x10c   : > { %635 = vst.msk [vmem:[#allocation2 + $0xf0] sm:$0xf] %vm246_vm0, %v613_v28  ;;  %634 = vst.msk [vmem:[#allocation2 + $0x28] sm:$0xf] %vm246_vm0, %v611_v29  ;;  %v3430_v28 = vld [vmem:[%s4301_s26 + $0x68] sm:$0xf] }
 0x10d   : > { %1708 = vrot.lane.b32.xlu1 %v3564_v26, %s4159_s11  ;;  %1706 = vrot.lane.b32.xlu0 %v3563_v27, %s4159_s11  ;;  %v3429_v27 = vld [vmem:[%s4301_s26 + $0x64] sm:$0xf]  ;;  %1072 = vst.msk [vmem:[#allocation2 + $0x2ac] sm:$0xf] %vm246_vm0, %v3430_v28  ;;  %v3406_v29 = vld [vmem:[%s4301_s26 + $0x10] sm:$0xf] }
 0x10e   : > { %1071 = vst.msk [vmem:[#allocation2 + $0x1e4] sm:$0xf] %vm246_vm0, %v3429_v27  ;;  %v3510_v28 = vld [vmem:[%s4301_s26 + $0x40] sm:$0xf] }
 0x10f   : > { %v617_v36 = vpop.permute.xlu1 %616  ;;  %v615_v37 = vpop.permute.xlu0 %614 }
 0x110   : > { %637 = vst.msk [vmem:[#allocation2 + $0x280] sm:$0xf] %vm246_vm0, %v617_v36  ;;  %636 = vst.msk [vmem:[#allocation2 + $0x1b8] sm:$0xf] %vm246_vm0, %v615_v37  ;;  %v3413_v36 = vld [vmem:[%s4301_s26 + $0x38] sm:$0xf] }
 0x111   : > { %1756 = vrot.lane.b32.xlu1 %v3572_v34, %s4161_s28  ;;  %1754 = vrot.lane.b32.xlu0 %v3571_v35, %s4161_s28  ;;  %v3438_v34 = vld [vmem:[%s4301_s26 + $0x94] sm:$0xf]  ;;  %v3414_v35 = vld [vmem:[%s4301_s26 + $0x3c] sm:$0xf] }
 0x112   : > { %1089 = vst.msk [vmem:[#allocation2 + $0x2b0] sm:$0xf] %vm246_vm0, %v3438_v34  ;;  %v3518_v34 = vld [vmem:[%s4301_s26 + $0x14] sm:$0xf] }
 0x113   : > { %v621_v40 = vpop.permute.xlu1 %620  ;;  %v619_v41 = vpop.permute.xlu0 %618 }
 0x114   : > { %639 = vst.msk [vmem:[#allocation2 + $0x410] sm:$0xf] %vm246_vm0, %v621_v40  ;;  %638 = vst.msk [vmem:[#allocation2 + $0x348] sm:$0xf] %vm246_vm0, %v619_v41  ;;  %v2189_v40 = vld [vmem:[#allocation2 + $0x100] sm:$0xff] }
 0x115   : > { %1804 = vrot.lane.b32.xlu1 %v3580_v38, %s4161_s28  ;;  %1802 = vrot.lane.b32.xlu0 %v3579_v39, %s4161_s28  ;;  %v2164_v39 = vld [vmem:[#allocation2 + $0x38] sm:$0xff]  ;;  %v3422_v41 = vld [vmem:[%s4301_s26 + $0x10] sm:$0xf] }
 0x117   : > { %v625_v44 = vpop.permute.xlu1 %624  ;;  %v623_v45 = vpop.permute.xlu0 %622 }
 0x118   : > { %641 = vst.msk [vmem:[#allocation2 + $0x5a0] sm:$0xf] %vm246_vm0, %v625_v44  ;;  %640 = vst.msk [vmem:[#allocation2 + $0x4d8] sm:$0xf] %vm246_vm0, %v623_v45 }
 0x119   : > { %1852 = vrot.lane.b32.xlu1 %v3588_v42, %s4162_s12  ;;  %1850 = vrot.lane.b32.xlu0 %v3587_v43, %s4162_s12  ;;  %v3421_v42 = vld [vmem:[%s4301_s26 + $0xc] sm:$0xf] }
 0x11b   : > { %v661_v48 = vpop.permute.xlu1 %660  ;;  %v659_v49 = vpop.permute.xlu0 %658 }
 0x11c   : > { %683 = vst.msk [vmem:[#allocation2 + $0xf4] sm:$0xf] %vm246_vm0, %v661_v48  ;;  %682 = vst.msk [vmem:[#allocation2 + $0x2c] sm:$0xf] %vm246_vm0, %v659_v49  ;;  %v3446_v49 = vld [vmem:[%s4301_s26 + $0x68] sm:$0xf] }
 0x11d   : > { %1934 = vrot.lane.b32.xlu1 %v3612_v46, %s4159_s11  ;;  %1932 = vrot.lane.b32.xlu0 %v3611_v47, %s4159_s11 }
 0x11f   : > { %v665_v52 = vpop.permute.xlu1 %664  ;;  %v663_v53 = vpop.permute.xlu0 %662 }
 0x120   : > { %685 = vst.msk [vmem:[#allocation2 + $0x284] sm:$0xf] %vm246_vm0, %v665_v52  ;;  %684 = vst.msk [vmem:[#allocation2 + $0x1bc] sm:$0xf] %vm246_vm0, %v663_v53  ;;  %v3454_v53 = vld [vmem:[%s4301_s26 + $0x94] sm:$0xf] }
 0x121   : > { %1982 = vrot.lane.b32.xlu1 %v3620_v50, %s4159_s11  ;;  %1980 = vrot.lane.b32.xlu0 %v3619_v51, %s4159_s11  ;;  %v3445_v50 = vld [vmem:[%s4301_s26 + $0x64] sm:$0xf] }
 0x123   : > { %v669_v57 = vpop.permute.xlu1 %668  ;;  %v667_v58 = vpop.permute.xlu0 %666  ;;  %v2162_v59 = vld [vmem:[#allocation2 + $0x28] sm:$0xff]  ;;  %v2187_v61 = vld [vmem:[#allocation2 + $0xf0] sm:$0xff] }
 0x124   : > { %687 = vst.msk [vmem:[#allocation2 + $0x414] sm:$0xf] %vm246_vm0, %v669_v57  ;;  %686 = vst.msk [vmem:[#allocation2 + $0x34c] sm:$0xf] %vm246_vm0, %v667_v58  ;;  %v3713_v62 = vpack.c.bf16 %v2162_v59, %v2161_v56  ;;  %v3749_v63 = vpack.c.bf16 %v2187_v61, %v2186_v60  ;;  %v3462_v57 = vld [vmem:[%s4301_s26 + $0x68] sm:$0xf] }
 0x125   : > { %2030 = vrot.lane.b32.xlu1 %v3628_v54, %s4161_s28  ;;  %2028 = vrot.lane.b32.xlu0 %v3627_v55, %s4161_s28  ;;  %v3453_v54 = vld [vmem:[%s4301_s26 + $0x90] sm:$0xf]  ;;  %v3461_v58 = vld [vmem:[%s4301_s26 + $0x64] sm:$0xf] }
 0x126   : > { %3714 = vmatpush1.bf16.msra.mxu0 %v3713_v62  ;;  %3750 = vmatpush1.bf16.msra.mxu1 %v3749_v63  ;;  %v3470_v61 = vld [vmem:[%s4301_s26 + $0x94] sm:$0xf]  ;;  %v3469_v62 = vld [vmem:[%s4301_s26 + $0x90] sm:$0xf] }
 0x127   : > { %v673_v6 = vpop.permute.xlu1 %672  ;;  %v671_v7 = vpop.permute.xlu0 %670  ;;  %3715 = vmatprep.subr.bf16.mxu0 %v4160_v10  ;;  %3751 = vmatprep.subr.bf16.mxu1 %v4160_v10 }
 0x128   : > { %689 = vst.msk [vmem:[#allocation2 + $0x5a4] sm:$0xf] %vm246_vm0, %v673_v6  ;;  %688 = vst.msk [vmem:[#allocation2 + $0x4dc] sm:$0xf] %vm246_vm0, %v671_v7  ;;  %v3485_v7 = vld [vmem:[%s4301_s26 + $0x10] sm:$0xf] }
 0x129   : > { %2078 = vrot.lane.b32.xlu1 %v3636_v3, %s4161_s28  ;;  %2076 = vrot.lane.b32.xlu0 %v3635_v4, %s4161_s28  ;;  %1345 = vst.msk [vmem:[#allocation2 + $0x200] sm:$0xf] %vm246_vm0, %v3485_v7  ;;  %v3574_v7 = vld [vmem:[%s4301_s26 + $0x6c] sm:$0xf] }
 0x12b   : > { %v709_v13 = vpop.permute.xlu1 %708  ;;  %v707_v14 = vpop.permute.xlu0 %706 }
 0x12c   : > { %731 = vst.msk [vmem:[#allocation2 + $0xf8] sm:$0xf] %vm246_vm0, %v709_v13  ;;  %730 = vst.msk [vmem:[#allocation2 + $0x30] sm:$0xf] %vm246_vm0, %v707_v14  ;;  %v3478_v13 = vld [vmem:[%s4301_s26 + $0x68] sm:$0xf] }
 0x12d   : > { %2126 = vrot.lane.b32.xlu1 %v3644_v11, %s4162_s12  ;;  %2124 = vrot.lane.b32.xlu0 %v3643_v12, %s4162_s12  ;;  %v3493_v11 = vld [vmem:[%s4301_s26 + $0x3c] sm:$0xf]  ;;  %v3486_v12 = vld [vmem:[%s4301_s26 + $0x14] sm:$0xf] }
 0x12e   : > { %1362 = vst.msk [vmem:[#allocation2 + $0x204] sm:$0xf] %vm246_vm0, %v3493_v11  ;;  %v3477_v14 = vld [vmem:[%s4301_s26 + $0x64] sm:$0xf]  ;;  %1346 = vst.msk [vmem:[#allocation2 + $0x2c8] sm:$0xf] %vm246_vm0, %v3486_v12 }
 0x12f   : > { %v713_v17 = vpop.permute.xlu1 %712  ;;  %v711_v18 = vpop.permute.xlu0 %710  ;;  %v3573_v11 = vld [vmem:[%s4301_s26 + $0x68] sm:$0xf]  ;;  %v3606_v12 = vld [vmem:[%s4301_s26 + $0x44] sm:$0xf] }
 0x130   : > { %733 = vst.msk [vmem:[#allocation2 + $0x288] sm:$0xf] %vm246_vm0, %v713_v17  ;;  %732 = vst.msk [vmem:[#allocation2 + $0x1c0] sm:$0xf] %vm246_vm0, %v711_v18  ;;  %v3502_v18 = vld [vmem:[%s4301_s26 + $0x14] sm:$0xf] }
 0x131   : > { %760 = vrot.lane.b32.xlu1 %v3366_v15, %s4162_s12  ;;  %758 = vrot.lane.b32.xlu0 %v3365_v16, %s4162_s12  ;;  %v3494_v15 = vld [vmem:[%s4301_s26 + $0x40] sm:$0xf]  ;;  %1911 = vst.msk [vmem:[#allocation2 + $0x304] sm:$0xf] %vm246_vm0, %v3606_v12  ;;  %v3400_v12 = vld [vmem:[%s4301_s26 + $0x44] sm:$0xf] }
 0x132   : > { %1363 = vst.msk [vmem:[#allocation2 + $0x2cc] sm:$0xf] %vm246_vm0, %v3494_v15  ;;  %v3582_v15 = vld [vmem:[%s4301_s26 + $0x98] sm:$0xf] }
 0x133   : > { %v717_v21 = vpop.permute.xlu1 %716  ;;  %v715_v22 = vpop.permute.xlu0 %714 }
 0x134   : > { %735 = vst.msk [vmem:[#allocation2 + $0x418] sm:$0xf] %vm246_vm0, %v717_v21  ;;  %734 = vst.msk [vmem:[#allocation2 + $0x350] sm:$0xf] %vm246_vm0, %v715_v22 }
 0x135   : > { %842 = vrot.lane.b32.xlu1 %v3390_v19, %s4159_s11  ;;  %840 = vrot.lane.b32.xlu0 %v3389_v20, %s4159_s11  ;;  %v3501_v19 = vld [vmem:[%s4301_s26 + $0x10] sm:$0xf] }
 0x137   : > { %v721_v25 = vpop.permute.xlu1 %720  ;;  %v719_v26 = vpop.permute.xlu0 %718 }
 0x138   : > { %737 = vst.msk [vmem:[#allocation2 + $0x5a8] sm:$0xf] %vm246_vm0, %v721_v25  ;;  %736 = vst.msk [vmem:[#allocation2 + $0x4e0] sm:$0xf] %vm246_vm0, %v719_v26 }
 0x139   : > { %890 = vrot.lane.b32.xlu1 %v3398_v23, %s4159_s11  ;;  %888 = vrot.lane.b32.xlu0 %v3397_v24, %s4159_s11 }
 0x13b   : > { %v757_v31 = vpop.permute.xlu1 %756  ;;  %v755_v32 = vpop.permute.xlu0 %754 }
 0x13c   : > { %779 = vst.msk [vmem:[#allocation2 + $0xfc] sm:$0xf] %vm246_vm0, %v757_v31  ;;  %778 = vst.msk [vmem:[#allocation2 + $0x34] sm:$0xf] %vm246_vm0, %v755_v32  ;;  %v3541_v32 = vld [vmem:[%s4301_s26 + $0x68] sm:$0xf] }
 0x13d   : > { %938 = vrot.lane.b32.xlu1 %v3406_v29, %s4161_s28  ;;  %936 = vrot.lane.b32.xlu0 %v3405_v30, %s4161_s28  ;;  %v3509_v29 = vld [vmem:[%s4301_s26 + $0x3c] sm:$0xf]  ;;  %1619 = vst.msk [vmem:[#allocation2 + $0x21c] sm:$0xf] %vm246_vm0, %v3541_v32 }
 0x13f   : > { %v839_v37 = vpop.permute.xlu1 %838  ;;  %v837_v38 = vpop.permute.xlu0 %836 }
 0x140   : > { %861 = vst.msk [vmem:[#allocation2 + $0x108] sm:$0xf] %vm246_vm0, %v839_v37  ;;  %860 = vst.msk [vmem:[#allocation2 + $0x40] sm:$0xf] %vm246_vm0, %v837_v38  ;;  %v3549_v38 = vld [vmem:[%s4301_s26 + $0x94] sm:$0xf] }
 0x141   : > { %986 = vrot.lane.b32.xlu1 %v3414_v35, %s4161_s28  ;;  %984 = vrot.lane.b32.xlu0 %v3413_v36, %s4161_s28  ;;  %v3517_v35 = vld [vmem:[%s4301_s26 + $0x10] sm:$0xf]  ;;  %1636 = vst.msk [vmem:[#allocation2 + $0x220] sm:$0xf] %vm246_vm0, %v3549_v38  ;;  %v3629_v38 = vld [vmem:[%s4301_s26 + $0x14] sm:$0xf] }
 0x143   : > { %v887_v43 = vpop.permute.xlu1 %886  ;;  %v885_v44 = vpop.permute.xlu0 %884  ;;  %v2163_v45 = vld [vmem:[#allocation2 + $0x30] sm:$0xff]  ;;  %v2188_v46 = vld [vmem:[#allocation2 + $0xf8] sm:$0xff] }
 0x144   : > { %909 = vst.msk [vmem:[#allocation2 + $0x10c] sm:$0xf] %vm246_vm0, %v887_v43  ;;  %908 = vst.msk [vmem:[#allocation2 + $0x44] sm:$0xf] %vm246_vm0, %v885_v44  ;;  %v3716_v47 = vpack.c.bf16 %v2164_v39, %v2163_v45  ;;  %v3752_v48 = vpack.c.bf16 %v2189_v40, %v2188_v46  ;;  %v3550_v39 = vld [vmem:[%s4301_s26 + $0x98] sm:$0xf] }
 0x145   : > { %1034 = vrot.lane.b32.xlu1 %v3422_v41, %s4162_s12  ;;  %1032 = vrot.lane.b32.xlu0 %v3421_v42, %s4162_s12  ;;  %1637 = vst.msk [vmem:[#allocation2 + $0x2e8] sm:$0xf] %vm246_vm0, %v3550_v39  ;;  %v3526_v40 = vld [vmem:[%s4301_s26 + $0x40] sm:$0xf]  ;;  %v3525_v41 = vld [vmem:[%s4301_s26 + $0x3c] sm:$0xf] }
 0x146   : > { %3717 = vmatpush1.bf16.msra.mxu0 %v3716_v47  ;;  %3753 = vmatpush1.bf16.msra.mxu1 %v3752_v48  ;;  %v3534_v44 = vld [vmem:[%s4301_s26 + $0x14] sm:$0xf]  ;;  %v3533_v45 = vld [vmem:[%s4301_s26 + $0x10] sm:$0xf] }
 0x147   : > { %v935_v51 = vpop.permute.xlu1 %934  ;;  %v933_v52 = vpop.permute.xlu0 %932  ;;  %3718 = vmatprep.subr.bf16.mxu0 %v4160_v10  ;;  %3754 = vmatprep.subr.bf16.mxu1 %v4160_v10 }
 0x148   : > { %957 = vst.msk [vmem:[#allocation2 + $0x110] sm:$0xf] %vm246_vm0, %v935_v51  ;;  %956 = vst.msk [vmem:[#allocation2 + $0x48] sm:$0xf] %vm246_vm0, %v933_v52 }
 0x149   : > { %1116 = vrot.lane.b32.xlu1 %v3446_v49, %s4159_s11  ;;  %1114 = vrot.lane.b32.xlu0 %v3445_v50, %s4159_s11 }
 0x14b   : > { %v983_v55 = vpop.permute.xlu1 %982  ;;  %v981_v56 = vpop.permute.xlu0 %980  ;;  %v2165_v63 = vld [vmem:[#allocation2 + $0x40] sm:$0xff]  ;;  %v2190_v3 = vld [vmem:[#allocation2 + $0x108] sm:$0xff] }
 0x14c   : > { %1005 = vst.msk [vmem:[#allocation2 + $0x114] sm:$0xf] %vm246_vm0, %v983_v55  ;;  %1004 = vst.msk [vmem:[#allocation2 + $0x4c] sm:$0xf] %vm246_vm0, %v981_v56  ;;  %v3557_v55 = vld [vmem:[%s4301_s26 + $0x68] sm:$0xf] }
 0x14d   : > { %1164 = vrot.lane.b32.xlu1 %v3454_v53, %s4159_s11  ;;  %1162 = vrot.lane.b32.xlu0 %v3453_v54, %s4159_s11  ;;  %v3558_v54 = vld [vmem:[%s4301_s26 + $0x6c] sm:$0xf] }
 0x14f   : > { %v1031_v59 = vpop.permute.xlu1 %1030  ;;  %v1029_v60 = vpop.permute.xlu0 %1028 }
 0x150   : > { %1053 = vst.msk [vmem:[#allocation2 + $0x118] sm:$0xf] %vm246_vm0, %v1031_v59  ;;  %1052 = vst.msk [vmem:[#allocation2 + $0x50] sm:$0xf] %vm246_vm0, %v1029_v60  ;;  %v2196_v59 = vld [vmem:[#allocation2 + $0x138] sm:$0xff] }
 0x151   : > { %1212 = vrot.lane.b32.xlu1 %v3462_v57, %s4161_s28  ;;  %1210 = vrot.lane.b32.xlu0 %v3461_v58, %s4161_s28  ;;  %v2171_v58 = vld [vmem:[#allocation2 + $0x70] sm:$0xff]  ;;  %v3566_v60 = vld [vmem:[%s4301_s26 + $0x98] sm:$0xf] }
 0x153   : > { %v1113_v0 = vpop.permute.xlu1 %1112  ;;  %v1111_v1 = vpop.permute.xlu0 %1110  ;;  %v2166_v2 = vld [vmem:[#allocation2 + $0x48] sm:$0xff]  ;;  %v2191_v4 = vld [vmem:[#allocation2 + $0x110] sm:$0xff] }
 0x154   : > { %1135 = vst.msk [vmem:[#allocation2 + $0x124] sm:$0xf] %vm246_vm0, %v1113_v0  ;;  %1134 = vst.msk [vmem:[#allocation2 + $0x5c] sm:$0xf] %vm246_vm0, %v1111_v1  ;;  %v3719_v5 = vpack.c.bf16 %v2166_v2, %v2165_v63  ;;  %v3755_v6 = vpack.c.bf16 %v2191_v4, %v2190_v3  ;;  %v3597_v4 = vld [vmem:[%s4301_s26 + $0x14] sm:$0xf] }
 0x155   : > { %1260 = vrot.lane.b32.xlu1 %v3470_v61, %s4161_s28  ;;  %1258 = vrot.lane.b32.xlu0 %v3469_v62, %s4161_s28  ;;  %v3565_v61 = vld [vmem:[%s4301_s26 + $0x94] sm:$0xf]  ;;  %1893 = vst.msk [vmem:[#allocation2 + $0x238] sm:$0xf] %vm246_vm0, %v3597_v4 }
 0x156   : > { %3720 = vmatpush1.bf16.msra.mxu0 %v3719_v5  ;;  %3756 = vmatpush1.bf16.msra.mxu1 %v3755_v6  ;;  %v3605_v5 = vld [vmem:[%s4301_s26 + $0x40] sm:$0xf]  ;;  %v3598_v6 = vld [vmem:[%s4301_s26 + $0x18] sm:$0xf] }
 0x157   : > { %v1161_v16 = vpop.permute.xlu1 %1160  ;;  %v1159_v17 = vpop.permute.xlu0 %1158  ;;  %3721 = vmatprep.subr.bf16.mxu0 %v4160_v10  ;;  %3757 = vmatprep.subr.bf16.mxu1 %v4160_v10  ;;  %v2167_v20 = vld [vmem:[#allocation2 + $0x50] sm:$0xff]  ;;  %v2192_v24 = vld [vmem:[#allocation2 + $0x118] sm:$0xff]  ;;  %1910 = vst.msk [vmem:[#allocation2 + $0x23c] sm:$0xf] %vm246_vm0, %v3605_v5  ;;  %1894 = vst.msk [vmem:[#allocation2 + $0x300] sm:$0xf] %vm246_vm0, %v3598_v6 }
 0x158   : > { %1183 = vst.msk [vmem:[#allocation2 + $0x128] sm:$0xf] %vm246_vm0, %v1161_v16  ;;  %1182 = vst.msk [vmem:[#allocation2 + $0x60] sm:$0xf] %vm246_vm0, %v1159_v17  ;;  %v3581_v16 = vld [vmem:[%s4301_s26 + $0x94] sm:$0xf] }
 0x159   : > { %1308 = vrot.lane.b32.xlu1 %v3478_v13, %s4162_s12  ;;  %1306 = vrot.lane.b32.xlu0 %v3477_v14, %s4162_s12  ;;  %v3392_v5 = vld [vmem:[%s4301_s26 + $0x18] sm:$0xf]  ;;  %v3391_v6 = vld [vmem:[%s4301_s26 + $0x14] sm:$0xf] }
 0x15b   : > { %v1209_v21 = vpop.permute.xlu1 %1208  ;;  %v1207_v22 = vpop.permute.xlu0 %1206  ;;  %v2168_v23 = vld [vmem:[#allocation2 + $0x58] sm:$0xff]  ;;  %v2193_v25 = vld [vmem:[#allocation2 + $0x120] sm:$0xff] }
 0x15c   : > { %1231 = vst.msk [vmem:[#allocation2 + $0x12c] sm:$0xf] %vm246_vm0, %v1209_v21  ;;  %1230 = vst.msk [vmem:[#allocation2 + $0x64] sm:$0xf] %vm246_vm0, %v1207_v22  ;;  %v3722_v26 = vpack.c.bf16 %v2168_v23, %v2167_v20  ;;  %v3758_v27 = vpack.c.bf16 %v2193_v25, %v2192_v24  ;;  %v3589_v20 = vld [vmem:[%s4301_s26 + $0x68] sm:$0xf] }
 0x15d   : > { %1390 = vrot.lane.b32.xlu1 %v3502_v18, %s4159_s11  ;;  %1388 = vrot.lane.b32.xlu0 %v3501_v19, %s4159_s11  ;;  %v3590_v19 = vld [vmem:[%s4301_s26 + $0x6c] sm:$0xf] }
 0x15e   : > { %3723 = vmatpush1.bf16.msra.mxu0 %v3722_v26  ;;  %3759 = vmatpush1.bf16.msra.mxu1 %v3758_v27 }
 0x15f   : > { %v1257_v30 = vpop.permute.xlu1 %1256  ;;  %v1255_v31 = vpop.permute.xlu0 %1254  ;;  %3724 = vmatprep.subr.bf16.mxu0 %v4160_v10  ;;  %3760 = vmatprep.subr.bf16.mxu1 %v4160_v10 }
 0x160   : > { %1279 = vst.msk [vmem:[#allocation2 + $0x130] sm:$0xf] %vm246_vm0, %v1257_v30  ;;  %1278 = vst.msk [vmem:[#allocation2 + $0x68] sm:$0xf] %vm246_vm0, %v1255_v31  ;;  %v3613_v30 = vld [vmem:[%s4301_s26 + $0x14] sm:$0xf] }
 0x161   : > { %1438 = vrot.lane.b32.xlu1 %v3510_v28, %s4159_s11  ;;  %1436 = vrot.lane.b32.xlu0 %v3509_v29, %s4159_s11  ;;  %v3614_v29 = vld [vmem:[%s4301_s26 + $0x18] sm:$0xf] }
 0x163   : > { %v1305_v36 = vpop.permute.xlu1 %1304  ;;  %v1303_v37 = vpop.permute.xlu0 %1302  ;;  %v2169_v46 = vld [vmem:[#allocation2 + $0x60] sm:$0xff]  ;;  %v2194_v50 = vld [vmem:[#allocation2 + $0x128] sm:$0xff] }
 0x164   : > { %1327 = vst.msk [vmem:[#allocation2 + $0x134] sm:$0xf] %vm246_vm0, %v1305_v36  ;;  %1326 = vst.msk [vmem:[#allocation2 + $0x6c] sm:$0xf] %vm246_vm0, %v1303_v37  ;;  %v3630_v37 = vld [vmem:[%s4301_s26 + $0x18] sm:$0xf] }
 0x165   : > { %1486 = vrot.lane.b32.xlu1 %v3518_v34, %s4161_s28  ;;  %1484 = vrot.lane.b32.xlu0 %v3517_v35, %s4161_s28  ;;  %v3621_v34 = vld [vmem:[%s4301_s26 + $0x40] sm:$0xf] }
 0x167   : > { %v1387_v42 = vpop.permute.xlu1 %1386  ;;  %v1385_v43 = vpop.permute.xlu0 %1384 }
 0x168   : > { %1409 = vst.msk [vmem:[#allocation2 + $0x140] sm:$0xf] %vm246_vm0, %v1387_v42  ;;  %1408 = vst.msk [vmem:[#allocation2 + $0x78] sm:$0xf] %vm246_vm0, %v1385_v43 }
 0x169   : > { %1534 = vrot.lane.b32.xlu1 %v3526_v40, %s4161_s28  ;;  %1532 = vrot.lane.b32.xlu0 %v3525_v41, %s4161_s28 }
 0x16b   : > { %v1435_v47 = vpop.permute.xlu1 %1434  ;;  %v1433_v48 = vpop.permute.xlu0 %1432  ;;  %v2170_v49 = vld [vmem:[#allocation2 + $0x68] sm:$0xff]  ;;  %v2195_v51 = vld [vmem:[#allocation2 + $0x130] sm:$0xff] }
 0x16c   : > { %1457 = vst.msk [vmem:[#allocation2 + $0x144] sm:$0xf] %vm246_vm0, %v1435_v47  ;;  %1456 = vst.msk [vmem:[#allocation2 + $0x7c] sm:$0xf] %vm246_vm0, %v1433_v48  ;;  %v3725_v52 = vpack.c.bf16 %v2170_v49, %v2169_v46  ;;  %v3761_v53 = vpack.c.bf16 %v2195_v51, %v2194_v50  ;;  %v3638_v47 = vld [vmem:[%s4301_s26 + $0x44] sm:$0xf] }
 0x16d   : > { %1582 = vrot.lane.b32.xlu1 %v3534_v44, %s4162_s12  ;;  %1580 = vrot.lane.b32.xlu0 %v3533_v45, %s4162_s12  ;;  %v3637_v48 = vld [vmem:[%s4301_s26 + $0x40] sm:$0xf]  ;;  %v3375_v49 = vld [vmem:[%s4301_s26 + $0x14] sm:$0xf] }
 0x16e   : > { %3726 = vmatpush1.bf16.msra.mxu0 %v3725_v52  ;;  %3762 = vmatpush1.bf16.msra.mxu1 %v3761_v53  ;;  %799 = vst.msk [vmem:[#allocation2 + $0x358] sm:$0xf] %vm246_vm0, %v3375_v49  ;;  %v3383_v50 = vld [vmem:[%s4301_s26 + $0x40] sm:$0xf]  ;;  %v3376_v51 = vld [vmem:[%s4301_s26 + $0x18] sm:$0xf] }
 0x16f   : > { %v1483_v56 = vpop.permute.xlu1 %1482  ;;  %v1481_v57 = vpop.permute.xlu0 %1480  ;;  %3727 = vmatprep.subr.bf16.mxu0 %v4160_v10  ;;  %3763 = vmatprep.subr.bf16.mxu1 %v4160_v10  ;;  %v3384_v52 = vld [vmem:[%s4301_s26 + $0x44] sm:$0xf]  ;;  %816 = vst.msk [vmem:[#allocation2 + $0x35c] sm:$0xf] %vm246_vm0, %v3383_v50  ;;  %800 = vst.msk [vmem:[#allocation2 + $0x420] sm:$0xf] %vm246_vm0, %v3376_v51 }
 0x170   : > { %1505 = vst.msk [vmem:[#allocation2 + $0x148] sm:$0xf] %vm246_vm0, %v1483_v56  ;;  %1504 = vst.msk [vmem:[#allocation2 + $0x80] sm:$0xf] %vm246_vm0, %v1481_v57  ;;  %v2203_v56 = vld [vmem:[#allocation2 + $0x170] sm:$0xff]  ;;  %v2209_v49 = vld [vmem:[#allocation2 + $0x1a0] sm:$0xff] }
 0x171   : > { %1664 = vrot.lane.b32.xlu1 %v3558_v54, %s4159_s11  ;;  %1662 = vrot.lane.b32.xlu0 %v3557_v55, %s4159_s11  ;;  %817 = vst.msk [vmem:[#allocation2 + $0x424] sm:$0xf] %vm246_vm0, %v3384_v52  ;;  %v2178_v55 = vld [vmem:[#allocation2 + $0xa8] sm:$0xff] }
 0x172   : > { %v3646_v57 = vld [vmem:[%s4301_s26 + $0x18] sm:$0xf] }
 0x173   : > { %v1531_v62 = vpop.permute.xlu1 %1530  ;;  %v1529_v63 = vpop.permute.xlu0 %1528  ;;  %v2172_v0 = vld [vmem:[#allocation2 + $0x78] sm:$0xff]  ;;  %v2197_v1 = vld [vmem:[#allocation2 + $0x140] sm:$0xff]  ;;  %v2234_v50 = vld [vmem:[#allocation2 + $0x268] sm:$0xff] }
 0x174   : > { %1553 = vst.msk [vmem:[#allocation2 + $0x14c] sm:$0xf] %vm246_vm0, %v1531_v62  ;;  %1552 = vst.msk [vmem:[#allocation2 + $0x84] sm:$0xf] %vm246_vm0, %v1529_v63  ;;  %v3728_v2 = vpack.c.bf16 %v2172_v0, %v2171_v58  ;;  %v3764_v3 = vpack.c.bf16 %v2197_v1, %v2196_v59  ;;  %v3645_v58 = vld [vmem:[%s4301_s26 + $0x14] sm:$0xf] }
 0x175   : > { %1712 = vrot.lane.b32.xlu1 %v3566_v60, %s4159_s11  ;;  %1710 = vrot.lane.b32.xlu0 %v3565_v61, %s4159_s11  ;;  %v3368_v1 = vld [vmem:[%s4301_s26 + $0x6c] sm:$0xf] }
 0x176   : > { %3729 = vmatpush1.bf16.msra.mxu0 %v3728_v2  ;;  %3765 = vmatpush1.bf16.msra.mxu1 %v3764_v3  ;;  %v3367_v2 = vld [vmem:[%s4301_s26 + $0x68] sm:$0xf] }
 0x177   : > { %v1579_v13 = vpop.permute.xlu1 %1578  ;;  %v1577_v14 = vpop.permute.xlu0 %1576  ;;  %3730 = vmatprep.subr.bf16.mxu0 %v4160_v10  ;;  %3766 = vmatprep.subr.bf16.mxu1 %v4160_v10 }
 0x178   : > { %1601 = vst.msk [vmem:[#allocation2 + $0x150] sm:$0xf] %vm246_vm0, %v1579_v13  ;;  %1600 = vst.msk [vmem:[#allocation2 + $0x88] sm:$0xf] %vm246_vm0, %v1577_v14  ;;  %v3399_v13 = vld [vmem:[%s4301_s26 + $0x40] sm:$0xf] }
 0x179   : > { %1760 = vrot.lane.b32.xlu1 %v3574_v7, %s4161_s28  ;;  %1758 = vrot.lane.b32.xlu0 %v3573_v11, %s4161_s28 }
 0x17b   : > { %v1661_v17 = vpop.permute.xlu1 %1660  ;;  %v1659_v18 = vpop.permute.xlu0 %1658  ;;  %v2173_v21 = vld [vmem:[#allocation2 + $0x80] sm:$0xff]  ;;  %v2198_v25 = vld [vmem:[#allocation2 + $0x148] sm:$0xff] }
 0x17c   : > { %1683 = vst.msk [vmem:[#allocation2 + $0x15c] sm:$0xf] %vm246_vm0, %v1661_v17  ;;  %1682 = vst.msk [vmem:[#allocation2 + $0x94] sm:$0xf] %vm246_vm0, %v1659_v18  ;;  %v3432_v17 = vld [vmem:[%s4301_s26 + $0x70] sm:$0xf] }
 0x17d   : > { %1808 = vrot.lane.b32.xlu1 %v3582_v15, %s4161_s28  ;;  %1806 = vrot.lane.b32.xlu0 %v3581_v16, %s4161_s28  ;;  %v3431_v16 = vld [vmem:[%s4301_s26 + $0x6c] sm:$0xf]  ;;  %v3408_v18 = vld [vmem:[%s4301_s26 + $0x18] sm:$0xf]  ;;  %1074 = vst.msk [vmem:[#allocation2 + $0x43c] sm:$0xf] %vm246_vm0, %v3432_v17 }
 0x17e   : > { %1073 = vst.msk [vmem:[#allocation2 + $0x374] sm:$0xf] %vm246_vm0, %v3431_v16  ;;  %v3471_v16 = vld [vmem:[%s4301_s26 + $0x98] sm:$0xf] }
 0x17f   : > { %v1709_v22 = vpop.permute.xlu1 %1708  ;;  %v1707_v23 = vpop.permute.xlu0 %1706  ;;  %v2174_v24 = vld [vmem:[#allocation2 + $0x88] sm:$0xff]  ;;  %v2199_v26 = vld [vmem:[#allocation2 + $0x150] sm:$0xff] }
 0x180   : > { %1731 = vst.msk [vmem:[#allocation2 + $0x160] sm:$0xf] %vm246_vm0, %v1709_v22  ;;  %1730 = vst.msk [vmem:[#allocation2 + $0x98] sm:$0xf] %vm246_vm0, %v1707_v23  ;;  %v3731_v27 = vpack.c.bf16 %v2174_v24, %v2173_v21  ;;  %v3767_v28 = vpack.c.bf16 %v2199_v26, %v2198_v25 }
 0x181   : > { %1856 = vrot.lane.b32.xlu1 %v3590_v19, %s4162_s12  ;;  %1854 = vrot.lane.b32.xlu0 %v3589_v20, %s4162_s12  ;;  %v3407_v19 = vld [vmem:[%s4301_s26 + $0x14] sm:$0xf] }
 0x182   : > { %3732 = vmatpush1.bf16.msra.mxu0 %v3731_v27  ;;  %3768 = vmatpush1.bf16.msra.mxu1 %v3767_v28  ;;  %v3439_v28 = vld [vmem:[%s4301_s26 + $0x98] sm:$0xf] }
 0x183   : > { %v1757_v31 = vpop.permute.xlu1 %1756  ;;  %v1755_v32 = vpop.permute.xlu0 %1754  ;;  %3733 = vmatprep.subr.bf16.mxu0 %v4160_v10  ;;  %3769 = vmatprep.subr.bf16.mxu1 %v4160_v10  ;;  %v2175_v39 = vld [vmem:[#allocation2 + $0x90] sm:$0xff]  ;;  %v2200_v43 = vld [vmem:[#allocation2 + $0x158] sm:$0xff]  ;;  %1090 = vst.msk [vmem:[#allocation2 + $0x378] sm:$0xf] %vm246_vm0, %v3439_v28 }
 0x184   : > { %1779 = vst.msk [vmem:[#allocation2 + $0x164] sm:$0xf] %vm246_vm0, %v1757_v31  ;;  %1778 = vst.msk [vmem:[#allocation2 + $0x9c] sm:$0xf] %vm246_vm0, %v1755_v32  ;;  %v3440_v31 = vld [vmem:[%s4301_s26 + $0x9c] sm:$0xf] }
 0x185   : > { %1938 = vrot.lane.b32.xlu1 %v3614_v29, %s4159_s11  ;;  %1936 = vrot.lane.b32.xlu0 %v3613_v30, %s4159_s11  ;;  %v3416_v29 = vld [vmem:[%s4301_s26 + $0x44] sm:$0xf]  ;;  %v3415_v30 = vld [vmem:[%s4301_s26 + $0x40] sm:$0xf]  ;;  %1091 = vst.msk [vmem:[#allocation2 + $0x440] sm:$0xf] %vm246_vm0, %v3440_v31 }
 0x186   : > { %v3479_v31 = vld [vmem:[%s4301_s26 + $0x6c] sm:$0xf] }
 0x187   : > { %v1805_v35 = vpop.permute.xlu1 %1804  ;;  %v1803_v36 = vpop.permute.xlu0 %1802 }
 0x188   : > { %1827 = vst.msk [vmem:[#allocation2 + $0x168] sm:$0xf] %vm246_vm0, %v1805_v35  ;;  %1826 = vst.msk [vmem:[#allocation2 + $0xa0] sm:$0xf] %vm246_vm0, %v1803_v36  ;;  %v2207_v35 = vld [vmem:[#allocation2 + $0x190] sm:$0xff]  ;;  %v2208_v36 = vld [vmem:[#allocation2 + $0x198] sm:$0xff] }
 0x189   : > { %1986 = vrot.lane.b32.xlu1 %v3622_v33, %s4159_s11  ;;  %1984 = vrot.lane.b32.xlu0 %v3621_v34, %s4159_s11  ;;  %v4163_v34 = vmov 0.0  }
 0x18b   : > { %v1853_v40 = vpop.permute.xlu1 %1852  ;;  %v1851_v41 = vpop.permute.xlu0 %1850  ;;  %v2176_v42 = vld [vmem:[#allocation2 + $0x98] sm:$0xff]  ;;  %v2201_v44 = vld [vmem:[#allocation2 + $0x160] sm:$0xff] }
 0x18c   : > { %1875 = vst.msk [vmem:[#allocation2 + $0x16c] sm:$0xf] %vm246_vm0, %v1853_v40  ;;  %1874 = vst.msk [vmem:[#allocation2 + $0xa4] sm:$0xf] %vm246_vm0, %v1851_v41  ;;  %v3734_v45 = vpack.c.bf16 %v2176_v42, %v2175_v39  ;;  %v3770_v46 = vpack.c.bf16 %v2201_v44, %v2200_v43  ;;  %v3779_v43 = vpack.c.bf16 %v2208_v36, %v2207_v35  ;;  %v3503_v35 = vld [vmem:[%s4301_s26 + $0x18] sm:$0xf] }
 0x18d   : > { %2034 = vrot.lane.b32.xlu1 %v3630_v37, %s4161_s28  ;;  %2032 = vrot.lane.b32.xlu0 %v3629_v38, %s4161_s28  ;;  %v2232_v37 = vld [vmem:[#allocation2 + $0x258] sm:$0xff]  ;;  %v2233_v38 = vld [vmem:[#allocation2 + $0x260] sm:$0xff] }
 0x18e   : > { %3735 = vmatpush1.bf16.msra.mxu0 %v3734_v45  ;;  %3771 = vmatpush1.bf16.msra.mxu1 %v3770_v46  ;;  %v3815_v44 = vpack.c.bf16 %v2233_v38, %v2232_v37  ;;  %v3424_v45 = vld [vmem:[%s4301_s26 + $0x18] sm:$0xf]  ;;  %v3423_v46 = vld [vmem:[%s4301_s26 + $0x14] sm:$0xf] }
 0x18f   : > { %v1935_v53 = vpop.permute.xlu1 %1934  ;;  %v1933_v54 = vpop.permute.xlu0 %1932  ;;  %3736 = vmatprep.subr.bf16.mxu0 %v4160_v10  ;;  %3772 = vmatprep.subr.bf16.mxu1 %v4160_v10 }
 0x190   : > { %1957 = vst.msk [vmem:[#allocation2 + $0x178] sm:$0xf] %vm246_vm0, %v1935_v53  ;;  %1956 = vst.msk [vmem:[#allocation2 + $0xb0] sm:$0xf] %vm246_vm0, %v1933_v54 }
 0x191   : > { %2082 = vrot.lane.b32.xlu1 %v3638_v47, %s4161_s28  ;;  %2080 = vrot.lane.b32.xlu0 %v3637_v48, %s4161_s28  ;;  %v2210_v47 = vld [vmem:[#allocation2 + $0x1a8] sm:$0xff]  ;;  %v2235_v48 = vld [vmem:[#allocation2 + $0x270] sm:$0xff] }
 0x192   : > { %v3782_v53 = vpack.c.bf16 %v2210_v47, %v2209_v49  ;;  %v3818_v54 = vpack.c.bf16 %v2235_v48, %v2234_v50  ;;  %v3511_v47 = vld [vmem:[%s4301_s26 + $0x44] sm:$0xf]  ;;  %v3543_v48 = vld [vmem:[%s4301_s26 + $0x70] sm:$0xf]  ;;  %v3544_v49 = vld [vmem:[%s4301_s26 + $0x74] sm:$0xf] }
 0x193   : > { %v1983_v59 = vpop.permute.xlu1 %1982  ;;  %v1981_v60 = vpop.permute.xlu0 %1980  ;;  %v2177_v61 = vld [vmem:[#allocation2 + $0xa0] sm:$0xff]  ;;  %v2202_v62 = vld [vmem:[#allocation2 + $0x168] sm:$0xff]  ;;  %1621 = vst.msk [vmem:[#allocation2 + $0x3ac] sm:$0xf] %vm246_vm0, %v3543_v48  ;;  %1622 = vst.msk [vmem:[#allocation2 + $0x474] sm:$0xf] %vm246_vm0, %v3544_v49 }
 0x194   : > { %2005 = vst.msk [vmem:[#allocation2 + $0x17c] sm:$0xf] %vm246_vm0, %v1983_v59  ;;  %2004 = vst.msk [vmem:[#allocation2 + $0xb4] sm:$0xf] %vm246_vm0, %v1981_v60  ;;  %v3737_v63 = vpack.c.bf16 %v2178_v55, %v2177_v61  ;;  %v3773_v0 = vpack.c.bf16 %v2203_v56, %v2202_v62  ;;  %v3447_v55 = vld [vmem:[%s4301_s26 + $0x6c] sm:$0xf] }
 0x195   : > { %2130 = vrot.lane.b32.xlu1 %v3646_v57, %s4162_s12  ;;  %2128 = vrot.lane.b32.xlu0 %v3645_v58, %s4162_s12  ;;  %v2212_v56 = vld [vmem:[#allocation2 + $0x1b8] sm:$0xff]  ;;  %v2237_v57 = vld [vmem:[#allocation2 + $0x280] sm:$0xff]  ;;  %v2211_v58 = vld [vmem:[#allocation2 + $0x1b0] sm:$0xff] }
 0x196   : > { %3738 = vmatpush1.bf16.msra.mxu0 %v3737_v63  ;;  %3774 = vmatpush1.bf16.msra.mxu1 %v3773_v0  ;;  %v2236_v59 = vld [vmem:[#allocation2 + $0x278] sm:$0xff]  ;;  %v3785_v62 = vpack.c.bf16 %v2212_v56, %v2211_v58  ;;  %v3527_v58 = vld [vmem:[%s4301_s26 + $0x44] sm:$0xf] }
 0x197   : > { %v2031_v3 = vpop.permute.xlu1 %2030  ;;  %v2029_v4 = vpop.permute.xlu0 %2028  ;;  %3739 = vmatprep.subr.bf16.mxu0 %v4160_v10  ;;  %3775 = vmatprep.subr.bf16.mxu1 %v4160_v10  ;;  %v3821_v63 = vpack.c.bf16 %v2237_v57, %v2236_v59  ;;  %v3456_v0 = vld [vmem:[%s4301_s26 + $0x9c] sm:$0xf]  ;;  %v3528_v57 = vld [vmem:[%s4301_s26 + $0x48] sm:$0xf] }
 0x198   : > { %2053 = vst.msk [vmem:[#allocation2 + $0x180] sm:$0xf] %vm246_vm0, %v2031_v3  ;;  %2052 = vst.msk [vmem:[#allocation2 + $0xb8] sm:$0xf] %vm246_vm0, %v2029_v4  ;;  %v3536_v59 = vld [vmem:[%s4301_s26 + $0x1c] sm:$0xf] }
 0x199   : > { %764 = vrot.lane.b32.xlu1 %v3368_v1, %s4162_s12  ;;  %762 = vrot.lane.b32.xlu0 %v3367_v2, %s4162_s12  ;;  %v3455_v1 = vld [vmem:[%s4301_s26 + $0x98] sm:$0xf]  ;;  %v3615_v48 = vld [vmem:[%s4301_s26 + $0x1c] sm:$0xf] }
 0x19a   : > { %v2214_v2 = vld [vmem:[#allocation2 + $0x1c8] sm:$0xff] }
 0x19b   : > { %v2079_v7 = vpop.permute.xlu1 %2078  ;;  %v2077_v11 = vpop.permute.xlu0 %2076  ;;  %v2179_v20 = vld [vmem:[#allocation2 + $0xb0] sm:$0xff]  ;;  %v2204_v24 = vld [vmem:[#allocation2 + $0x178] sm:$0xff] }
 0x19c   : > { %2101 = vst.msk [vmem:[#allocation2 + $0x184] sm:$0xf] %vm246_vm0, %v2079_v7  ;;  %2100 = vst.msk [vmem:[#allocation2 + $0xbc] sm:$0xf] %vm246_vm0, %v2077_v11 }
 0x19d   : > { %846 = vrot.lane.b32.xlu1 %v3392_v5, %s4159_s11  ;;  %844 = vrot.lane.b32.xlu0 %v3391_v6, %s4159_s11  ;;  %v2239_v5 = vld [vmem:[#allocation2 + $0x290] sm:$0xff] }
 0x19f   : > { %v2127_v14 = vpop.permute.xlu1 %2126  ;;  %v2125_v15 = vpop.permute.xlu0 %2124 }
 0x1a0   : > { %2149 = vst.msk [vmem:[#allocation2 + $0x188] sm:$0xf] %vm246_vm0, %v2127_v14  ;;  %2148 = vst.msk [vmem:[#allocation2 + $0xc0] sm:$0xf] %vm246_vm0, %v2125_v15  ;;  %v3463_v14 = vld [vmem:[%s4301_s26 + $0x6c] sm:$0xf] }
 0x1a1   : > { %894 = vrot.lane.b32.xlu1 %v3400_v12, %s4159_s11  ;;  %892 = vrot.lane.b32.xlu0 %v3399_v13, %s4159_s11  ;;  %v3464_v13 = vld [vmem:[%s4301_s26 + $0x70] sm:$0xf]  ;;  %v3472_v15 = vld [vmem:[%s4301_s26 + $0x9c] sm:$0xf] }
 0x1a3   : > { %v761_v21 = vpop.permute.xlu1 %760  ;;  %v759_v22 = vpop.permute.xlu0 %758  ;;  %v2180_v23 = vld [vmem:[#allocation2 + $0xb8] sm:$0xff]  ;;  %v2205_v25 = vld [vmem:[#allocation2 + $0x180] sm:$0xff] }
 0x1a4   : > { %781 = vst.msk [vmem:[#allocation2 + $0x28c] sm:$0xf] %vm246_vm0, %v761_v21  ;;  %780 = vst.msk [vmem:[#allocation2 + $0x1c4] sm:$0xf] %vm246_vm0, %v759_v22  ;;  %v3740_v26 = vpack.c.bf16 %v2180_v23, %v2179_v20  ;;  %v3776_v27 = vpack.c.bf16 %v2205_v25, %v2204_v24  ;;  %v3487_v25 = vld [vmem:[%s4301_s26 + $0x18] sm:$0xf] }
 0x1a5   : > { %942 = vrot.lane.b32.xlu1 %v3408_v18, %s4161_s28  ;;  %940 = vrot.lane.b32.xlu0 %v3407_v19, %s4161_s28  ;;  %1347 = vst.msk [vmem:[#allocation2 + $0x390] sm:$0xf] %vm246_vm0, %v3487_v25 }
 0x1a6   : > { %3741 = vmatpush1.bf16.msra.mxu0 %v3740_v26  ;;  %3777 = vmatpush1.bf16.msra.mxu1 %v3776_v27  ;;  %v3495_v26 = vld [vmem:[%s4301_s26 + $0x44] sm:$0xf]  ;;  %v3488_v27 = vld [vmem:[%s4301_s26 + $0x1c] sm:$0xf] }
 0x1a7   : > { %v843_v32 = vpop.permute.xlu1 %842  ;;  %v841_v33 = vpop.permute.xlu0 %840  ;;  %2420 = vmatprep.subr.mxu0 %v4163_v34  ;;  %2493 = vmatprep.subr.mxu1 %v4163_v34  ;;  %v2181_v39 = vld [vmem:[#allocation2 + $0xc0] sm:$0xf]  ;;  %v2206_v40 = vld [vmem:[#allocation2 + $0x188] sm:$0xf]  ;;  %1364 = vst.msk [vmem:[#allocation2 + $0x394] sm:$0xf] %vm246_vm0, %v3495_v26 }
 0x1a8   : > { %863 = vst.msk [vmem:[#allocation2 + $0x298] sm:$0xf] %vm246_vm0, %v843_v32  ;;  %862 = vst.msk [vmem:[#allocation2 + $0x1d0] sm:$0xf] %vm246_vm0, %v841_v33  ;;  %v3496_v32 = vld [vmem:[%s4301_s26 + $0x48] sm:$0xf] }
 0x1a9   : > { %990 = vrot.lane.b32.xlu1 %v3416_v29, %s4161_s28  ;;  %988 = vrot.lane.b32.xlu0 %v3415_v30, %s4161_s28  ;;  %v3480_v30 = vld [vmem:[%s4301_s26 + $0x70] sm:$0xf]  ;;  %1348 = vst.msk [vmem:[#allocation2 + $0x458] sm:$0xf] %vm246_vm0, %v3488_v27  ;;  %1365 = vst.msk [vmem:[#allocation2 + $0x45c] sm:$0xf] %vm246_vm0, %v3496_v32 }
 0x1aa   : > { %3651 = vmatpush1.msk.msra.mxu0 %vm2368_vm2, %v2181_v39  ;;  %3653 = vmatpush1.msk.msra.mxu1 %vm2368_vm2, %v2206_v40  ;;  %v3504_v33 = vld [vmem:[%s4301_s26 + $0x1c] sm:$0xf]  ;;  %v3576_v27 = vld [vmem:[%s4301_s26 + $0x74] sm:$0xf]  ;;  %v3584_v32 = vld [vmem:[%s4301_s26 + $0xa0] sm:$0xf] }
 0x1ab   : > { %v891_v41 = vpop.permute.xlu1 %890  ;;  %v889_v42 = vpop.permute.xlu0 %888  ;;  %3778 = vmatprep.subr.bf16.mxu0 %v4160_v10  ;;  %3814 = vmatprep.subr.bf16.mxu1 %v4160_v10  ;;  %v2213_v3 = vld [vmem:[#allocation2 + $0x1c0] sm:$0xff]  ;;  %v2238_v4 = vld [vmem:[#allocation2 + $0x288] sm:$0xff] }
 0x1ac   : > { %911 = vst.msk [vmem:[#allocation2 + $0x29c] sm:$0xf] %vm246_vm0, %v891_v41  ;;  %910 = vst.msk [vmem:[#allocation2 + $0x1d4] sm:$0xf] %vm246_vm0, %v889_v42  ;;  %2437 = vmatmul.mubr.f32.vlgmr.msra.gmra.mrb[0].mxu0 %v4736_v8  ;;  %2510 = vmatmul.mubr.f32.vlgmr.msra.gmra.mrb[0].mxu1 %v4736_v8  ;;  %v3448_v8 = vld [vmem:[%s4301_s26 + $0x70] sm:$0xf]  ;;  %v3788_v11 = vpack.c.bf16 %v2214_v2, %v2213_v3  ;;  %v3824_v12 = vpack.c.bf16 %v2239_v5, %v2238_v4 }
 0x1ad   : > { %3780 = vmatpush1.bf16.msra.mxu0 %v3779_v43  ;;  %3816 = vmatpush1.bf16.msra.mxu1 %v3815_v44 }
 0x1ae   : > { %1038 = vrot.lane.b32.xlu1 %v3424_v45, %s4162_s12  ;;  %1036 = vrot.lane.b32.xlu0 %v3423_v46, %s4162_s12  ;;  %v3512_v46 = vld [vmem:[%s4301_s26 + $0x48] sm:$0xf] }
 0x1af   : > { %v939_v51 = vpop.permute.xlu1 %938  ;;  %v937_v52 = vpop.permute.xlu0 %936  ;;  %3781 = vmatprep.subr.bf16.mxu0 %v4160_v10  ;;  %3817 = vmatprep.subr.bf16.mxu1 %v4160_v10 }
 0x1b0   : > { %959 = vst.msk [vmem:[#allocation2 + $0x2a0] sm:$0xf] %vm246_vm0, %v939_v51  ;;  %958 = vst.msk [vmem:[#allocation2 + $0x1d8] sm:$0xf] %vm246_vm0, %v937_v52  ;;  %3656 = vmatprep.mubr.msk.f32.mxu0 %vm2365_vm1, %v4742_v9  ;;  %3658 = vmatprep.mubr.msk.f32.mxu1 %vm2365_vm1, %v4742_v9  ;;  %v3520_v52 = vld [vmem:[%s4301_s26 + $0x1c] sm:$0xf] }
 0x1b1   : > { %3783 = vmatpush1.bf16.msra.mxu0 %v3782_v53  ;;  %3819 = vmatpush1.bf16.msra.mxu1 %v3818_v54  ;;  %v3519_v53 = vld [vmem:[%s4301_s26 + $0x18] sm:$0xf]  ;;  %v3551_v54 = vld [vmem:[%s4301_s26 + $0x9c] sm:$0xf] }
 0x1b2   : > { %1120 = vrot.lane.b32.xlu1 %v3448_v8, %s4159_s11  ;;  %1118 = vrot.lane.b32.xlu0 %v3447_v55, %s4159_s11  ;;  %v3552_v8 = vld [vmem:[%s4301_s26 + $0xa0] sm:$0xf]  ;;  %1638 = vst.msk [vmem:[#allocation2 + $0x3b0] sm:$0xf] %vm246_vm0, %v3551_v54  ;;  %v3631_v54 = vld [vmem:[%s4301_s26 + $0x1c] sm:$0xf] }
 0x1b3   : > { %v987_v60 = vpop.permute.xlu1 %986  ;;  %v985_v61 = vpop.permute.xlu0 %984  ;;  %3784 = vmatprep.subr.bf16.mxu0 %v4160_v10  ;;  %3820 = vmatprep.subr.bf16.mxu1 %v4160_v10  ;;  %v2215_v17 = vld [vmem:[#allocation2 + $0x1d0] sm:$0xff]  ;;  %v2240_v21 = vld [vmem:[#allocation2 + $0x298] sm:$0xff]  ;;  %1639 = vst.msk [vmem:[#allocation2 + $0x478] sm:$0xf] %vm246_vm0, %v3552_v8 }
 0x1b4   : > { %1007 = vst.msk [vmem:[#allocation2 + $0x2a4] sm:$0xf] %vm246_vm0, %v987_v60  ;;  %1006 = vst.msk [vmem:[#allocation2 + $0x1dc] sm:$0xf] %vm246_vm0, %v985_v61  ;;  %v3535_v60 = vld [vmem:[%s4301_s26 + $0x18] sm:$0xf] }
 0x1b5   : > { %3786 = vmatpush1.bf16.msra.mxu0 %v3785_v62  ;;  %3822 = vmatpush1.bf16.msra.mxu1 %v3821_v63 }
 0x1b6   : > { %1168 = vrot.lane.b32.xlu1 %v3456_v0, %s4159_s11  ;;  %1166 = vrot.lane.b32.xlu0 %v3455_v1, %s4159_s11 }
 0x1b7   : > { %v1035_v6 = vpop.permute.xlu1 %1034  ;;  %v1033_v7 = vpop.permute.xlu0 %1032  ;;  %3787 = vmatprep.subr.bf16.mxu0 %v4160_v10  ;;  %3823 = vmatprep.subr.bf16.mxu1 %v4160_v10 }
 0x1b8   : > { %1055 = vst.msk [vmem:[#allocation2 + $0x2a8] sm:$0xf] %vm246_vm0, %v1035_v6  ;;  %1054 = vst.msk [vmem:[#allocation2 + $0x1e0] sm:$0xf] %vm246_vm0, %v1033_v7  ;;  %v3560_v7 = vld [vmem:[%s4301_s26 + $0x74] sm:$0xf] }
 0x1b9   : > { %3789 = vmatpush1.bf16.msra.mxu0 %v3788_v11  ;;  %3825 = vmatpush1.bf16.msra.mxu1 %v3824_v12  ;;  %v3559_v11 = vld [vmem:[%s4301_s26 + $0x70] sm:$0xf] }
 0x1ba   : > { %1216 = vrot.lane.b32.xlu1 %v3464_v13, %s4161_s28  ;;  %1214 = vrot.lane.b32.xlu0 %v3463_v14, %s4161_s28  ;;  %v2221_v12 = vld [vmem:[#allocation2 + $0x200] sm:$0xff]  ;;  %v2246_v13 = vld [vmem:[#allocation2 + $0x2c8] sm:$0xff] }
 0x1bb   : > { %v1117_v18 = vpop.permute.xlu1 %1116  ;;  %v1115_v19 = vpop.permute.xlu0 %1114  ;;  %3790 = vmatprep.subr.bf16.mxu0 %v4160_v10  ;;  %3826 = vmatprep.subr.bf16.mxu1 %v4160_v10  ;;  %v2216_v20 = vld [vmem:[#allocation2 + $0x1d8] sm:$0xff]  ;;  %v2241_v22 = vld [vmem:[#allocation2 + $0x2a0] sm:$0xff] }
 0x1bc   : > { %1137 = vst.msk [vmem:[#allocation2 + $0x2b4] sm:$0xf] %vm246_vm0, %v1117_v18  ;;  %1136 = vst.msk [vmem:[#allocation2 + $0x1ec] sm:$0xf] %vm246_vm0, %v1115_v19  ;;  %v3791_v23 = vpack.c.bf16 %v2216_v20, %v2215_v17  ;;  %v3827_v24 = vpack.c.bf16 %v2241_v22, %v2240_v21  ;;  %v3568_v14 = vld [vmem:[%s4301_s26 + $0xa0] sm:$0xf] }
 0x1bd   : > { %v3567_v17 = vld [vmem:[%s4301_s26 + $0x9c] sm:$0xf] }
 0x1be   : > { %1264 = vrot.lane.b32.xlu1 %v3472_v15, %s4161_s28  ;;  %1262 = vrot.lane.b32.xlu0 %v3471_v16, %s4161_s28  ;;  %v3599_v22 = vld [vmem:[%s4301_s26 + $0x1c] sm:$0xf] }
 0x1bf   : > { %3792 = vmatpush1.bf16.msra.mxu0 %v3791_v23  ;;  %3828 = vmatpush1.bf16.msra.mxu1 %v3827_v24  ;;  %v1165_v28 = vpop.permute.xlu1 %1164  ;;  %v1163_v29 = vpop.permute.xlu0 %1162  ;;  %v2217_v36 = vld [vmem:[#allocation2 + $0x1e0] sm:$0xff]  ;;  %v2242_v40 = vld [vmem:[#allocation2 + $0x2a8] sm:$0xff]  ;;  %1895 = vst.msk [vmem:[#allocation2 + $0x3c8] sm:$0xf] %vm246_vm0, %v3599_v22 }
 0x1c0   : > { %1185 = vst.msk [vmem:[#allocation2 + $0x2b8] sm:$0xf] %vm246_vm0, %v1165_v28  ;;  %1184 = vst.msk [vmem:[#allocation2 + $0x1f0] sm:$0xf] %vm246_vm0, %v1163_v29  ;;  %3793 = vmatprep.subr.bf16.mxu0 %v4160_v10  ;;  %3829 = vmatprep.subr.bf16.mxu1 %v4160_v10  ;;  %v3607_v23 = vld [vmem:[%s4301_s26 + $0x48] sm:$0xf] }
 0x1c1   : > { %1912 = vst.msk [vmem:[#allocation2 + $0x3cc] sm:$0xf] %vm246_vm0, %v3607_v23  ;;  %v3600_v24 = vld [vmem:[%s4301_s26 + $0x20] sm:$0xf]  ;;  %v3575_v28 = vld [vmem:[%s4301_s26 + $0x70] sm:$0xf] }
 0x1c2   : > { %1312 = vrot.lane.b32.xlu1 %v3480_v30, %s4162_s12  ;;  %1310 = vrot.lane.b32.xlu0 %v3479_v31, %s4162_s12  ;;  %1896 = vst.msk [vmem:[#allocation2 + $0x490] sm:$0xf] %vm246_vm0, %v3600_v24  ;;  %v3608_v29 = vld [vmem:[%s4301_s26 + $0x4c] sm:$0xf]  ;;  %v3369_v22 = vld [vmem:[%s4301_s26 + $0x70] sm:$0xf] }
 0x1c3   : > { %v1213_v37 = vpop.permute.xlu1 %1212  ;;  %v1211_v38 = vpop.permute.xlu0 %1210  ;;  %v2218_v39 = vld [vmem:[#allocation2 + $0x1e8] sm:$0xff]  ;;  %v2243_v41 = vld [vmem:[#allocation2 + $0x2b0] sm:$0xff]  ;;  %1913 = vst.msk [vmem:[#allocation2 + $0x494] sm:$0xf] %vm246_vm0, %v3608_v29 }
 0x1c4   : > { %1233 = vst.msk [vmem:[#allocation2 + $0x2bc] sm:$0xf] %vm246_vm0, %v1213_v37  ;;  %1232 = vst.msk [vmem:[#allocation2 + $0x1f4] sm:$0xf] %vm246_vm0, %v1211_v38  ;;  %v3794_v42 = vpack.c.bf16 %v2218_v39, %v2217_v36  ;;  %v3830_v43 = vpack.c.bf16 %v2243_v41, %v2242_v40  ;;  %v3591_v36 = vld [vmem:[%s4301_s26 + $0x70] sm:$0xf] }
 0x1c5   : > { %v3402_v29 = vld [vmem:[%s4301_s26 + $0x4c] sm:$0xf] }
 0x1c6   : > { %1394 = vrot.lane.b32.xlu1 %v3504_v33, %s4159_s11  ;;  %1392 = vrot.lane.b32.xlu0 %v3503_v35, %s4159_s11  ;;  %v3583_v33 = vld [vmem:[%s4301_s26 + $0x9c] sm:$0xf]  ;;  %v3592_v35 = vld [vmem:[%s4301_s26 + $0x74] sm:$0xf] }
 0x1c7   : > { %3795 = vmatpush1.bf16.msra.mxu0 %v3794_v42  ;;  %3831 = vmatpush1.bf16.msra.mxu1 %v3830_v43  ;;  %v1261_v44 = vpop.permute.xlu1 %1260  ;;  %v1259_v45 = vpop.permute.xlu0 %1258 }
 0x1c8   : > { %1281 = vst.msk [vmem:[#allocation2 + $0x2c0] sm:$0xf] %vm246_vm0, %v1261_v44  ;;  %1280 = vst.msk [vmem:[#allocation2 + $0x1f8] sm:$0xf] %vm246_vm0, %v1259_v45  ;;  %3796 = vmatprep.subr.bf16.mxu0 %v4160_v10  ;;  %3832 = vmatprep.subr.bf16.mxu1 %v4160_v10 }
 0x1ca   : > { %1442 = vrot.lane.b32.xlu1 %v3512_v46, %s4159_s11  ;;  %1440 = vrot.lane.b32.xlu0 %v3511_v47, %s4159_s11  ;;  %v3616_v47 = vld [vmem:[%s4301_s26 + $0x20] sm:$0xf] }
 0x1cb   : > { %v1309_v50 = vpop.permute.xlu1 %1308  ;;  %v1307_v51 = vpop.permute.xlu0 %1306  ;;  %v2219_v61 = vld [vmem:[#allocation2 + $0x1f0] sm:$0xff]  ;;  %v2244_v1 = vld [vmem:[#allocation2 + $0x2b8] sm:$0xff] }
 0x1cc   : > { %1329 = vst.msk [vmem:[#allocation2 + $0x2c4] sm:$0xf] %vm246_vm0, %v1309_v50  ;;  %1328 = vst.msk [vmem:[#allocation2 + $0x1fc] sm:$0xf] %vm246_vm0, %v1307_v51  ;;  %v3624_v51 = vld [vmem:[%s4301_s26 + $0x4c] sm:$0xf] }
 0x1ce   : > { %1490 = vrot.lane.b32.xlu1 %v3520_v52, %s4161_s28  ;;  %1488 = vrot.lane.b32.xlu0 %v3519_v53, %s4161_s28  ;;  %v3623_v52 = vld [vmem:[%s4301_s26 + $0x48] sm:$0xf]  ;;  %v3632_v53 = vld [vmem:[%s4301_s26 + $0x20] sm:$0xf] }
 0x1cf   : > { %v1391_v55 = vpop.permute.xlu1 %1390  ;;  %v1389_v56 = vpop.permute.xlu0 %1388 }
 0x1d0   : > { %1411 = vst.msk [vmem:[#allocation2 + $0x2d0] sm:$0xf] %vm246_vm0, %v1391_v55  ;;  %1410 = vst.msk [vmem:[#allocation2 + $0x208] sm:$0xf] %vm246_vm0, %v1389_v56 }
 0x1d2   : > { %1538 = vrot.lane.b32.xlu1 %v3528_v57, %s4161_s28  ;;  %1536 = vrot.lane.b32.xlu0 %v3527_v58, %s4161_s28 }
 0x1d3   : > { %v1439_v62 = vpop.permute.xlu1 %1438  ;;  %v1437_v63 = vpop.permute.xlu0 %1436  ;;  %v2220_v0 = vld [vmem:[#allocation2 + $0x1f8] sm:$0xff]  ;;  %v2245_v2 = vld [vmem:[#allocation2 + $0x2c0] sm:$0xff] }
 0x1d4   : > { %1459 = vst.msk [vmem:[#allocation2 + $0x2d4] sm:$0xf] %vm246_vm0, %v1439_v62  ;;  %1458 = vst.msk [vmem:[#allocation2 + $0x20c] sm:$0xf] %vm246_vm0, %v1437_v63  ;;  %v3797_v3 = vpack.c.bf16 %v2220_v0, %v2219_v61  ;;  %v3833_v4 = vpack.c.bf16 %v2245_v2, %v2244_v1  ;;  %v3377_v62 = vld [vmem:[%s4301_s26 + $0x1c] sm:$0xf] }
 0x1d5   : > { %v3385_v63 = vld [vmem:[%s4301_s26 + $0x48] sm:$0xf]  ;;  %v3378_v0 = vld [vmem:[%s4301_s26 + $0x20] sm:$0xf]  ;;  %801 = vst.msk [vmem:[#allocation2 + $0x4e8] sm:$0xf] %vm246_vm0, %v3377_v62 }
 0x1d6   : > { %1586 = vrot.lane.b32.xlu1 %v3536_v59, %s4162_s12  ;;  %1584 = vrot.lane.b32.xlu0 %v3535_v60, %s4162_s12  ;;  %818 = vst.msk [vmem:[#allocation2 + $0x4ec] sm:$0xf] %vm246_vm0, %v3385_v63  ;;  %802 = vst.msk [vmem:[#allocation2 + $0x5b0] sm:$0xf] %vm246_vm0, %v3378_v0  ;;  %v3386_v1 = vld [vmem:[%s4301_s26 + $0x4c] sm:$0xf] }
 0x1d7   : > { %3798 = vmatpush1.bf16.msra.mxu0 %v3797_v3  ;;  %3834 = vmatpush1.bf16.msra.mxu1 %v3833_v4  ;;  %v1487_v5 = vpop.permute.xlu1 %1486  ;;  %v1485_v6 = vpop.permute.xlu0 %1484  ;;  %v3640_v4 = vld [vmem:[%s4301_s26 + $0x4c] sm:$0xf]  ;;  %819 = vst.msk [vmem:[#allocation2 + $0x5b4] sm:$0xf] %vm246_vm0, %v3386_v1  ;;  %v2285_v63 = vld [vmem:[#allocation2 + $0x400] sm:$0xff] }
 0x1d8   : > { %1507 = vst.msk [vmem:[#allocation2 + $0x2d8] sm:$0xf] %vm246_vm0, %v1487_v5  ;;  %1506 = vst.msk [vmem:[#allocation2 + $0x210] sm:$0xf] %vm246_vm0, %v1485_v6  ;;  %3799 = vmatprep.subr.bf16.mxu0 %v4160_v10  ;;  %3835 = vmatprep.subr.bf16.mxu1 %v4160_v10  ;;  %v3639_v5 = vld [vmem:[%s4301_s26 + $0x48] sm:$0xf] }
 0x1d9   : > { %v2228_v6 = vld [vmem:[#allocation2 + $0x238] sm:$0xff] }
 0x1da   : > { %1668 = vrot.lane.b32.xlu1 %v3560_v7, %s4159_s11  ;;  %1666 = vrot.lane.b32.xlu0 %v3559_v11, %s4159_s11  ;;  %v2253_v7 = vld [vmem:[#allocation2 + $0x300] sm:$0xff]  ;;  %v2260_v62 = vld [vmem:[#allocation2 + $0x338] sm:$0xff] }
 0x1db   : > { %v1535_v15 = vpop.permute.xlu1 %1534  ;;  %v1533_v16 = vpop.permute.xlu0 %1532  ;;  %v2222_v18 = vld [vmem:[#allocation2 + $0x208] sm:$0xff]  ;;  %v2247_v19 = vld [vmem:[#allocation2 + $0x2d0] sm:$0xff] }
 0x1dc   : > { %1555 = vst.msk [vmem:[#allocation2 + $0x2dc] sm:$0xf] %vm246_vm0, %v1535_v15  ;;  %1554 = vst.msk [vmem:[#allocation2 + $0x214] sm:$0xf] %vm246_vm0, %v1533_v16  ;;  %v3800_v20 = vpack.c.bf16 %v2222_v18, %v2221_v12  ;;  %v3836_v21 = vpack.c.bf16 %v2247_v19, %v2246_v13  ;;  %v3648_v11 = vld [vmem:[%s4301_s26 + $0x20] sm:$0xf] }
 0x1de   : > { %1716 = vrot.lane.b32.xlu1 %v3568_v14, %s4159_s11  ;;  %1714 = vrot.lane.b32.xlu0 %v3567_v17, %s4159_s11  ;;  %v3647_v14 = vld [vmem:[%s4301_s26 + $0x1c] sm:$0xf] }
 0x1df   : > { %3801 = vmatpush1.bf16.msra.mxu0 %v3800_v20  ;;  %3837 = vmatpush1.bf16.msra.mxu1 %v3836_v21  ;;  %v1583_v25 = vpop.permute.xlu1 %1582  ;;  %v1581_v26 = vpop.permute.xlu0 %1580  ;;  %v3370_v21 = vld [vmem:[%s4301_s26 + $0x74] sm:$0xf] }
 0x1e0   : > { %1603 = vst.msk [vmem:[#allocation2 + $0x2e0] sm:$0xf] %vm246_vm0, %v1583_v25  ;;  %1602 = vst.msk [vmem:[#allocation2 + $0x218] sm:$0xf] %vm246_vm0, %v1581_v26  ;;  %3802 = vmatprep.subr.bf16.mxu0 %v4160_v10  ;;  %3838 = vmatprep.subr.bf16.mxu1 %v4160_v10  ;;  %v3394_v25 = vld [vmem:[%s4301_s26 + $0x20] sm:$0xf] }
 0x1e1   : > { %v3393_v26 = vld [vmem:[%s4301_s26 + $0x1c] sm:$0xf] }
 0x1e2   : > { %1764 = vrot.lane.b32.xlu1 %v3576_v27, %s4161_s28  ;;  %1762 = vrot.lane.b32.xlu0 %v3575_v28, %s4161_s28 }
 0x1e3   : > { %v1665_v30 = vpop.permute.xlu1 %1664  ;;  %v1663_v31 = vpop.permute.xlu0 %1662  ;;  %v2223_v37 = vld [vmem:[#allocation2 + $0x210] sm:$0xff]  ;;  %v2248_v41 = vld [vmem:[#allocation2 + $0x2d8] sm:$0xff] }
 0x1e4   : > { %1685 = vst.msk [vmem:[#allocation2 + $0x2ec] sm:$0xf] %vm246_vm0, %v1665_v30  ;;  %1684 = vst.msk [vmem:[#allocation2 + $0x224] sm:$0xf] %vm246_vm0, %v1663_v31  ;;  %v3401_v30 = vld [vmem:[%s4301_s26 + $0x48] sm:$0xf] }
 0x1e5   : > { %v3433_v31 = vld [vmem:[%s4301_s26 + $0x74] sm:$0xf] }
 0x1e6   : > { %1812 = vrot.lane.b32.xlu1 %v3584_v32, %s4161_s28  ;;  %1810 = vrot.lane.b32.xlu0 %v3583_v33, %s4161_s28  ;;  %v3434_v32 = vld [vmem:[%s4301_s26 + $0x78] sm:$0xf]  ;;  %v3410_v33 = vld [vmem:[%s4301_s26 + $0x20] sm:$0xf]  ;;  %1075 = vst.msk [vmem:[#allocation2 + $0x504] sm:$0xf] %vm246_vm0, %v3433_v31 }
 0x1e7   : > { %v1713_v38 = vpop.permute.xlu1 %1712  ;;  %v1711_v39 = vpop.permute.xlu0 %1710  ;;  %v2224_v40 = vld [vmem:[#allocation2 + $0x218] sm:$0xff]  ;;  %v2249_v42 = vld [vmem:[#allocation2 + $0x2e0] sm:$0xff]  ;;  %1076 = vst.msk [vmem:[#allocation2 + $0x5cc] sm:$0xf] %vm246_vm0, %v3434_v32 }
 0x1e8   : > { %1733 = vst.msk [vmem:[#allocation2 + $0x2f0] sm:$0xf] %vm246_vm0, %v1713_v38  ;;  %1732 = vst.msk [vmem:[#allocation2 + $0x228] sm:$0xf] %vm246_vm0, %v1711_v39  ;;  %v3803_v43 = vpack.c.bf16 %v2224_v40, %v2223_v37  ;;  %v3839_v44 = vpack.c.bf16 %v2249_v42, %v2248_v41 }
 0x1ea   : > { %1860 = vrot.lane.b32.xlu1 %v3592_v35, %s4162_s12  ;;  %1858 = vrot.lane.b32.xlu0 %v3591_v36, %s4162_s12  ;;  %v3409_v35 = vld [vmem:[%s4301_s26 + $0x1c] sm:$0xf] }
 0x1eb   : > { %3804 = vmatpush1.bf16.msra.mxu0 %v3803_v43  ;;  %3840 = vmatpush1.bf16.msra.mxu1 %v3839_v44  ;;  %v1761_v45 = vpop.permute.xlu1 %1760  ;;  %v1759_v46 = vpop.permute.xlu0 %1758  ;;  %v2225_v8 = vld [vmem:[#allocation2 + $0x220] sm:$0xff]  ;;  %v2250_v58 = vld [vmem:[#allocation2 + $0x2e8] sm:$0xff] }
 0x1ec   : > { %1781 = vst.msk [vmem:[#allocation2 + $0x2f4] sm:$0xf] %vm246_vm0, %v1761_v45  ;;  %1780 = vst.msk [vmem:[#allocation2 + $0x22c] sm:$0xf] %vm246_vm0, %v1759_v46  ;;  %3805 = vmatprep.subr.bf16.mxu0 %v4160_v10  ;;  %3841 = vmatprep.subr.bf16.mxu1 %v4160_v10  ;;  %v3441_v44 = vld [vmem:[%s4301_s26 + $0xa0] sm:$0xf] }
 0x1ed   : > { %v3442_v45 = vld [vmem:[%s4301_s26 + $0xa4] sm:$0xf]  ;;  %1092 = vst.msk [vmem:[#allocation2 + $0x508] sm:$0xf] %vm246_vm0, %v3441_v44  ;;  %v3497_v44 = vld [vmem:[%s4301_s26 + $0x4c] sm:$0xf] }
 0x1ee   : > { %1942 = vrot.lane.b32.xlu1 %v3616_v47, %s4159_s11  ;;  %1940 = vrot.lane.b32.xlu0 %v3615_v48, %s4159_s11  ;;  %1093 = vst.msk [vmem:[#allocation2 + $0x5d0] sm:$0xf] %vm246_vm0, %v3442_v45  ;;  %v3418_v48 = vld [vmem:[%s4301_s26 + $0x4c] sm:$0xf]  ;;  %v3490_v45 = vld [vmem:[%s4301_s26 + $0x24] sm:$0xf] }
 0x1ef   : > { %v1809_v49 = vpop.permute.xlu1 %1808  ;;  %v1807_v50 = vpop.permute.xlu0 %1806  ;;  %1366 = vst.msk [vmem:[#allocation2 + $0x524] sm:$0xf] %vm246_vm0, %v3497_v44  ;;  %1350 = vst.msk [vmem:[#allocation2 + $0x5e8] sm:$0xf] %vm246_vm0, %v3490_v45  ;;  %v3610_v44 = vld [vmem:[%s4301_s26 + $0x54] sm:$0xf] }
 0x1f0   : > { %1829 = vst.msk [vmem:[#allocation2 + $0x2f8] sm:$0xf] %vm246_vm0, %v1809_v49  ;;  %1828 = vst.msk [vmem:[#allocation2 + $0x230] sm:$0xf] %vm246_vm0, %v1807_v50  ;;  %v3417_v49 = vld [vmem:[%s4301_s26 + $0x48] sm:$0xf] }
 0x1f1   : > { %v2257_v50 = vld [vmem:[#allocation2 + $0x320] sm:$0xff]  ;;  %1915 = vst.msk [vmem:[#allocation2 + $0x624] sm:$0xf] %vm246_vm0, %v3610_v44 }
 0x1f2   : > { %1990 = vrot.lane.b32.xlu1 %v3624_v51, %s4159_s11  ;;  %1988 = vrot.lane.b32.xlu0 %v3623_v52, %s4159_s11  ;;  %v2258_v51 = vld [vmem:[#allocation2 + $0x328] sm:$0xff] }
 0x1f3   : > { %v1857_v55 = vpop.permute.xlu1 %1856  ;;  %v1855_v56 = vpop.permute.xlu0 %1854  ;;  %v2226_v57 = vld [vmem:[#allocation2 + $0x228] sm:$0xff]  ;;  %v2251_v59 = vld [vmem:[#allocation2 + $0x2f0] sm:$0xff] }
 0x1f4   : > { %1877 = vst.msk [vmem:[#allocation2 + $0x2fc] sm:$0xf] %vm246_vm0, %v1857_v55  ;;  %1876 = vst.msk [vmem:[#allocation2 + $0x234] sm:$0xf] %vm246_vm0, %v1855_v56  ;;  %v3806_v60 = vpack.c.bf16 %v2226_v57, %v2225_v8  ;;  %v3842_v61 = vpack.c.bf16 %v2251_v59, %v2250_v58  ;;  %v2282_v52 = vld [vmem:[#allocation2 + $0x3e8] sm:$0xff]  ;;  %v3851_v57 = vpack.c.bf16 %v2258_v51, %v2257_v50 }
 0x1f5   : > { %v3426_v59 = vld [vmem:[%s4301_s26 + $0x20] sm:$0xf]  ;;  %v3481_v50 = vld [vmem:[%s4301_s26 + $0x74] sm:$0xf]  ;;  %v3506_v51 = vld [vmem:[%s4301_s26 + $0x24] sm:$0xf] }
 0x1f6   : > { %2038 = vrot.lane.b32.xlu1 %v3632_v53, %s4161_s28  ;;  %2036 = vrot.lane.b32.xlu0 %v3631_v54, %s4161_s28  ;;  %v2283_v53 = vld [vmem:[#allocation2 + $0x3f0] sm:$0xff] }
 0x1f7   : > { %3807 = vmatpush1.bf16.msra.mxu0 %v3806_v60  ;;  %3843 = vmatpush1.bf16.msra.mxu1 %v3842_v61  ;;  %v1939_v2 = vpop.permute.xlu1 %1938  ;;  %v1937_v3 = vpop.permute.xlu0 %1936  ;;  %v3887_v58 = vpack.c.bf16 %v2283_v53, %v2282_v52  ;;  %v3425_v60 = vld [vmem:[%s4301_s26 + $0x1c] sm:$0xf]  ;;  %v5247_v61 = vld [vmem:[%s5723_s1] sm:$0xff] }
 0x1f8   : > { %1959 = vst.msk [vmem:[#allocation2 + $0x308] sm:$0xf] %vm246_vm0, %v1939_v2  ;;  %1958 = vst.msk [vmem:[#allocation2 + $0x240] sm:$0xf] %vm246_vm0, %v1937_v3  ;;  %3808 = vmatprep.subr.bf16.mxu0 %v4160_v10  ;;  %3844 = vmatprep.subr.bf16.mxu1 %v4160_v10  ;;  %v2259_v2 = vld [vmem:[#allocation2 + $0x330] sm:$0xff]  ;;  %v2284_v3 = vld [vmem:[#allocation2 + $0x3f8] sm:$0xff] }
 0x1f9   : > { %v3505_v52 = vld [vmem:[%s4301_s26 + $0x20] sm:$0xf] }
 0x1fa   : > { %2086 = vrot.lane.b32.xlu1 %v3640_v4, %s4161_s28  ;;  %2084 = vrot.lane.b32.xlu0 %v3639_v5, %s4161_s28  ;;  %v3854_v4 = vpack.c.bf16 %v2260_v62, %v2259_v2  ;;  %v3890_v5 = vpack.c.bf16 %v2285_v63, %v2284_v3  ;;  %v3514_v63 = vld [vmem:[%s4301_s26 + $0x50] sm:$0xf]  ;;  %v3546_v2 = vld [vmem:[%s4301_s26 + $0x7c] sm:$0xf] }
 0x1fb   : > { %v1987_v12 = vpop.permute.xlu1 %1986  ;;  %v1985_v13 = vpop.permute.xlu0 %1984  ;;  %v2227_v15 = vld [vmem:[#allocation2 + $0x230] sm:$0xff]  ;;  %v2252_v16 = vld [vmem:[#allocation2 + $0x2f8] sm:$0xff]  ;;  %1624 = vst.msk [vmem:[#allocation2 + $0x604] sm:$0xf] %vm246_vm0, %v3546_v2 }
 0x1fc   : > { %2007 = vst.msk [vmem:[#allocation2 + $0x30c] sm:$0xf] %vm246_vm0, %v1987_v12  ;;  %2006 = vst.msk [vmem:[#allocation2 + $0x244] sm:$0xf] %vm246_vm0, %v1985_v13  ;;  %v3809_v17 = vpack.c.bf16 %v2228_v6, %v2227_v15  ;;  %v3845_v18 = vpack.c.bf16 %v2253_v7, %v2252_v16  ;;  %v3450_v6 = vld [vmem:[%s4301_s26 + $0x78] sm:$0xf] }
 0x1fd   : > { %v3449_v7 = vld [vmem:[%s4301_s26 + $0x74] sm:$0xf]  ;;  %v2286_v16 = vld [vmem:[#allocation2 + $0x408] sm:$0xff]  ;;  %v3617_v2 = vld [vmem:[%s4301_s26 + $0x24] sm:$0xf] }
 0x1fe   : > { %2134 = vrot.lane.b32.xlu1 %v3648_v11, %s4162_s12  ;;  %2132 = vrot.lane.b32.xlu0 %v3647_v14, %s4162_s12  ;;  %v2262_v11 = vld [vmem:[#allocation2 + $0x348] sm:$0xff]  ;;  %v2287_v12 = vld [vmem:[#allocation2 + $0x410] sm:$0xff]  ;;  %v2261_v15 = vld [vmem:[#allocation2 + $0x340] sm:$0xff] }
 0x1ff   : > { %3810 = vmatpush1.bf16.msra.mxu0 %v3809_v17  ;;  %3846 = vmatpush1.bf16.msra.mxu1 %v3845_v18  ;;  %v2035_v19 = vpop.permute.xlu1 %2034  ;;  %v2033_v20 = vpop.permute.xlu0 %2032  ;;  %v3857_v17 = vpack.c.bf16 %v2262_v11, %v2261_v15  ;;  %v3893_v18 = vpack.c.bf16 %v2287_v12, %v2286_v16  ;;  %v3554_v11 = vld [vmem:[%s4301_s26 + $0xa8] sm:$0xf]  ;;  %v3529_v15 = vld [vmem:[%s4301_s26 + $0x4c] sm:$0xf]  ;;  %v3538_v16 = vld [vmem:[%s4301_s26 + $0x24] sm:$0xf] }
 0x200   : > { %2055 = vst.msk [vmem:[#allocation2 + $0x310] sm:$0xf] %vm246_vm0, %v2035_v19  ;;  %2054 = vst.msk [vmem:[#allocation2 + $0x248] sm:$0xf] %vm246_vm0, %v2033_v20  ;;  %3811 = vmatprep.subr.bf16.mxu0 %v4160_v10  ;;  %3847 = vmatprep.subr.bf16.mxu1 %v4160_v10  ;;  %v3458_v19 = vld [vmem:[%s4301_s26 + $0xa4] sm:$0xf] }
 0x201   : > { %v3457_v20 = vld [vmem:[%s4301_s26 + $0xa0] sm:$0xf]  ;;  %1641 = vst.msk [vmem:[#allocation2 + $0x608] sm:$0xf] %vm246_vm0, %v3554_v11  ;;  %v3633_v11 = vld [vmem:[%s4301_s26 + $0x24] sm:$0xf] }
 0x202   : > { %768 = vrot.lane.b32.xlu1 %v3370_v21, %s4162_s12  ;;  %766 = vrot.lane.b32.xlu0 %v3369_v22, %s4162_s12  ;;  %v2264_v21 = vld [vmem:[#allocation2 + $0x358] sm:$0xff] }
 0x203   : > { %v2083_v23 = vpop.permute.xlu1 %2082  ;;  %v2081_v24 = vpop.permute.xlu0 %2080  ;;  %v2229_v36 = vld [vmem:[#allocation2 + $0x240] sm:$0xff]  ;;  %v2254_v40 = vld [vmem:[#allocation2 + $0x308] sm:$0xff] }
 0x204   : > { %2103 = vst.msk [vmem:[#allocation2 + $0x314] sm:$0xf] %vm246_vm0, %v2083_v23  ;;  %2102 = vst.msk [vmem:[#allocation2 + $0x24c] sm:$0xf] %vm246_vm0, %v2081_v24  ;;  %v2289_v24 = vld [vmem:[#allocation2 + $0x420] sm:$0xff] }
 0x206   : > { %850 = vrot.lane.b32.xlu1 %v3394_v25, %s4159_s11  ;;  %848 = vrot.lane.b32.xlu0 %v3393_v26, %s4159_s11 }
 0x207   : > { %v2131_v27 = vpop.permute.xlu1 %2130  ;;  %v2129_v28 = vpop.permute.xlu0 %2128 }
 0x208   : > { %2151 = vst.msk [vmem:[#allocation2 + $0x318] sm:$0xf] %vm246_vm0, %v2131_v27  ;;  %2150 = vst.msk [vmem:[#allocation2 + $0x250] sm:$0xf] %vm246_vm0, %v2129_v28 }
 0x20a   : > { %898 = vrot.lane.b32.xlu1 %v3402_v29, %s4159_s11  ;;  %896 = vrot.lane.b32.xlu0 %v3401_v30, %s4159_s11  ;;  %v3466_v29 = vld [vmem:[%s4301_s26 + $0x78] sm:$0xf]  ;;  %v3465_v30 = vld [vmem:[%s4301_s26 + $0x74] sm:$0xf] }
 0x20b   : > { %v765_v37 = vpop.permute.xlu1 %764  ;;  %v763_v38 = vpop.permute.xlu0 %762  ;;  %v2230_v39 = vld [vmem:[#allocation2 + $0x248] sm:$0xff]  ;;  %v2255_v41 = vld [vmem:[#allocation2 + $0x310] sm:$0xff] }
 0x20c   : > { %783 = vst.msk [vmem:[#allocation2 + $0x41c] sm:$0xf] %vm246_vm0, %v765_v37  ;;  %782 = vst.msk [vmem:[#allocation2 + $0x354] sm:$0xf] %vm246_vm0, %v763_v38  ;;  %v3812_v42 = vpack.c.bf16 %v2230_v39, %v2229_v36  ;;  %v3848_v43 = vpack.c.bf16 %v2255_v41, %v2254_v40  ;;  %v3474_v38 = vld [vmem:[%s4301_s26 + $0xa4] sm:$0xf] }
 0x20d   : > { %v3473_v39 = vld [vmem:[%s4301_s26 + $0xa0] sm:$0xf] }
 0x20e   : > { %946 = vrot.lane.b32.xlu1 %v3410_v33, %s4161_s28  ;;  %944 = vrot.lane.b32.xlu0 %v3409_v35, %s4161_s28 }
 0x20f   : > { %3813 = vmatpush1.bf16.msra.mxu0 %v3812_v42  ;;  %3849 = vmatpush1.bf16.msra.mxu1 %v3848_v43  ;;  %v847_v46 = vpop.permute.xlu1 %846  ;;  %v845_v47 = vpop.permute.xlu0 %844  ;;  %v2231_v54 = vld [vmem:[#allocation2 + $0x250] sm:$0xf]  ;;  %v2256_v8 = vld [vmem:[#allocation2 + $0x318] sm:$0xf]  ;;  %v4164_v42 = vmov 0  }
 0x210   : > { %865 = vst.msk [vmem:[#allocation2 + $0x428] sm:$0xf] %vm246_vm0, %v847_v46  ;;  %864 = vst.msk [vmem:[#allocation2 + $0x360] sm:$0xf] %vm246_vm0, %v845_v47  ;;  %2566 = vmatprep.subr.mxu0 %v4163_v34  ;;  %2639 = vmatprep.subr.mxu1 %v4163_v34  ;;  %v3489_v43 = vld [vmem:[%s4301_s26 + $0x20] sm:$0xf] }
 0x211   : > { %4054 = vset.pattern.permute.xlu0 %v4164_v42  ;;  %1349 = vst.msk [vmem:[#allocation2 + $0x520] sm:$0xf] %vm246_vm0, %v3489_v43  ;;  %v3498_v46 = vld [vmem:[%s4301_s26 + $0x50] sm:$0xf]  ;;  %v3602_v43 = vld [vmem:[%s4301_s26 + $0x28] sm:$0xf] }
 0x212   : > { %994 = vrot.lane.b32.xlu1 %v3418_v48, %s4161_s28  ;;  %992 = vrot.lane.b32.xlu0 %v3417_v49, %s4161_s28  ;;  %1367 = vst.msk [vmem:[#allocation2 + $0x5ec] sm:$0xf] %vm246_vm0, %v3498_v46  ;;  %v3482_v49 = vld [vmem:[%s4301_s26 + $0x78] sm:$0xf]  ;;  %v3609_v42 = vld [vmem:[%s4301_s26 + $0x50] sm:$0xf] }
 0x213   : > { %3655 = vmatpush1.msk.msra.mxu0 %vm2368_vm2, %v2231_v54  ;;  %3657 = vmatpush1.msk.msra.mxu1 %vm2368_vm2, %v2256_v8  ;;  %v895_v55 = vpop.permute.xlu1 %894  ;;  %v893_v56 = vpop.permute.xlu0 %892  ;;  %v2263_v22 = vld [vmem:[#allocation2 + $0x350] sm:$0xff]  ;;  %v2288_v23 = vld [vmem:[#allocation2 + $0x418] sm:$0xff]  ;;  %1914 = vst.msk [vmem:[#allocation2 + $0x55c] sm:$0xf] %vm246_vm0, %v3609_v42  ;;  %1898 = vst.msk [vmem:[#allocation2 + $0x620] sm:$0xf] %vm246_vm0, %v3602_v43 }
 0x214   : > { %913 = vst.msk [vmem:[#allocation2 + $0x42c] sm:$0xf] %vm246_vm0, %v895_v55  ;;  %912 = vst.msk [vmem:[#allocation2 + $0x364] sm:$0xf] %vm246_vm0, %v893_v56  ;;  %3850 = vmatprep.subr.bf16.mxu0 %v4160_v10  ;;  %3886 = vmatprep.subr.bf16.mxu1 %v4160_v10  ;;  %v3860_v27 = vpack.c.bf16 %v2264_v21, %v2263_v22  ;;  %v3896_v28 = vpack.c.bf16 %v2289_v24, %v2288_v23  ;;  %v3678_v42 = vld [vmem:[%s4301_s26 + $0x68] sm:$0xf] }
 0x215   : > { %2583 = vmatmul.mubr.f32.vlgmr.msra.gmra.mrb[2].mxu0 %v5247_v61  ;;  %2656 = vmatmul.mubr.f32.vlgmr.msra.gmra.mrb[2].mxu1 %v5247_v61 }
 0x216   : > { %3852 = vmatpush1.bf16.msra.mxu0 %v3851_v57  ;;  %3888 = vmatpush1.bf16.msra.mxu1 %v3887_v58 }
 0x217   : > { %1042 = vrot.lane.b32.xlu1 %v3426_v59, %s4162_s12  ;;  %1040 = vrot.lane.b32.xlu0 %v3425_v60, %s4162_s12  ;;  %v943_v0 = vpop.permute.xlu1 %942  ;;  %v941_v1 = vpop.permute.xlu0 %940 }
 0x218   : > { %961 = vst.msk [vmem:[#allocation2 + $0x430] sm:$0xf] %vm246_vm0, %v943_v0  ;;  %960 = vst.msk [vmem:[#allocation2 + $0x368] sm:$0xf] %vm246_vm0, %v941_v1  ;;  %3853 = vmatprep.subr.bf16.mxu0 %v4160_v10  ;;  %3889 = vmatprep.subr.bf16.mxu1 %v4160_v10  ;;  %v3513_v0 = vld [vmem:[%s4301_s26 + $0x4c] sm:$0xf] }
 0x219   : > { %3660 = vmatprep.mubr.msk.f32.mxu0 %vm2365_vm1, %v4742_v9  ;;  %3662 = vmatprep.mubr.msk.f32.mxu1 %vm2365_vm1, %v4742_v9  ;;  %v3545_v1 = vld [vmem:[%s4301_s26 + $0x78] sm:$0xf] }
 0x21a   : > { %3855 = vmatpush1.bf16.msra.mxu0 %v3854_v4  ;;  %3891 = vmatpush1.bf16.msra.mxu1 %v3890_v5  ;;  %1623 = vst.msk [vmem:[#allocation2 + $0x53c] sm:$0xf] %vm246_vm0, %v3545_v1  ;;  %v3522_v5 = vld [vmem:[%s4301_s26 + $0x24] sm:$0xf]  ;;  %v3618_v1 = vld [vmem:[%s4301_s26 + $0x28] sm:$0xf] }
 0x21b   : > { %1124 = vrot.lane.b32.xlu1 %v3450_v6, %s4159_s11  ;;  %1122 = vrot.lane.b32.xlu0 %v3449_v7, %s4159_s11  ;;  %v991_v13 = vpop.permute.xlu1 %990  ;;  %v989_v14 = vpop.permute.xlu0 %988  ;;  %v2265_v31 = vld [vmem:[#allocation2 + $0x360] sm:$0xff]  ;;  %v2290_v33 = vld [vmem:[#allocation2 + $0x428] sm:$0xff] }
 0x21c   : > { %1009 = vst.msk [vmem:[#allocation2 + $0x434] sm:$0xf] %vm246_vm0, %v991_v13  ;;  %1008 = vst.msk [vmem:[#allocation2 + $0x36c] sm:$0xf] %vm246_vm0, %v989_v14  ;;  %3856 = vmatprep.subr.bf16.mxu0 %v4160_v10  ;;  %3892 = vmatprep.subr.bf16.mxu1 %v4160_v10  ;;  %v3521_v6 = vld [vmem:[%s4301_s26 + $0x20] sm:$0xf] }
 0x21d   : > { %v3553_v7 = vld [vmem:[%s4301_s26 + $0xa4] sm:$0xf]  ;;  %v3530_v14 = vld [vmem:[%s4301_s26 + $0x50] sm:$0xf] }
 0x21e   : > { %3858 = vmatpush1.bf16.msra.mxu0 %v3857_v17  ;;  %3894 = vmatpush1.bf16.msra.mxu1 %v3893_v18  ;;  %1640 = vst.msk [vmem:[#allocation2 + $0x540] sm:$0xf] %vm246_vm0, %v3553_v7  ;;  %v3537_v17 = vld [vmem:[%s4301_s26 + $0x20] sm:$0xf]  ;;  %v3634_v7 = vld [vmem:[%s4301_s26 + $0x28] sm:$0xf] }
 0x21f   : > { %1172 = vrot.lane.b32.xlu1 %v3458_v19, %s4159_s11  ;;  %1170 = vrot.lane.b32.xlu0 %v3457_v20, %s4159_s11 }
 0x220   : > { %v1039_v25 = vpop.permute.xlu1 %1038  ;;  %v1037_v26 = vpop.permute.xlu0 %1036  ;;  %3859 = vmatprep.subr.bf16.mxu0 %v4160_v10  ;;  %3895 = vmatprep.subr.bf16.mxu1 %v4160_v10 }
 0x221   : > { %1057 = vst.msk [vmem:[#allocation2 + $0x438] sm:$0xf] %vm246_vm0, %v1039_v25  ;;  %1056 = vst.msk [vmem:[#allocation2 + $0x370] sm:$0xf] %vm246_vm0, %v1037_v26 }
 0x222   : > { %3861 = vmatpush1.bf16.msra.mxu0 %v3860_v27  ;;  %3897 = vmatpush1.bf16.msra.mxu1 %v3896_v28  ;;  %v3562_v28 = vld [vmem:[%s4301_s26 + $0x7c] sm:$0xf] }
 0x223   : > { %1220 = vrot.lane.b32.xlu1 %v3466_v29, %s4161_s28  ;;  %1218 = vrot.lane.b32.xlu0 %v3465_v30, %s4161_s28  ;;  %v2266_v32 = vld [vmem:[#allocation2 + $0x368] sm:$0xff]  ;;  %v2291_v35 = vld [vmem:[#allocation2 + $0x430] sm:$0xff] }
 0x224   : > { %v1121_v36 = vpop.permute.xlu1 %1120  ;;  %v1119_v37 = vpop.permute.xlu0 %1118  ;;  %3862 = vmatprep.subr.bf16.mxu0 %v4160_v10  ;;  %3898 = vmatprep.subr.bf16.mxu1 %v4160_v10  ;;  %v3863_v40 = vpack.c.bf16 %v2266_v32, %v2265_v31  ;;  %v3899_v41 = vpack.c.bf16 %v2291_v35, %v2290_v33  ;;  %v3561_v29 = vld [vmem:[%s4301_s26 + $0x78] sm:$0xf]  ;;  %v2271_v30 = vld [vmem:[#allocation2 + $0x390] sm:$0xff]  ;;  %v3570_v32 = vld [vmem:[%s4301_s26 + $0xa8] sm:$0xf] }
 0x225   : > { %1139 = vst.msk [vmem:[#allocation2 + $0x444] sm:$0xf] %vm246_vm0, %v1121_v36  ;;  %1138 = vst.msk [vmem:[#allocation2 + $0x37c] sm:$0xf] %vm246_vm0, %v1119_v37  ;;  %v2296_v31 = vld [vmem:[#allocation2 + $0x458] sm:$0xff] }
 0x226   : > { %3864 = vmatpush1.bf16.msra.mxu0 %v3863_v40  ;;  %3900 = vmatpush1.bf16.msra.mxu1 %v3899_v41  ;;  %v3569_v36 = vld [vmem:[%s4301_s26 + $0xa4] sm:$0xf] }
 0x227   : > { %1268 = vrot.lane.b32.xlu1 %v3474_v38, %s4161_s28  ;;  %1266 = vrot.lane.b32.xlu0 %v3473_v39, %s4161_s28  ;;  %v3601_v41 = vld [vmem:[%s4301_s26 + $0x24] sm:$0xf] }
 0x228   : > { %v1169_v47 = vpop.permute.xlu1 %1168  ;;  %v1167_v48 = vpop.permute.xlu0 %1166  ;;  %3865 = vmatprep.subr.bf16.mxu0 %v4160_v10  ;;  %3901 = vmatprep.subr.bf16.mxu1 %v4160_v10  ;;  %v2267_v53 = vld [vmem:[#allocation2 + $0x370] sm:$0xff]  ;;  %v2292_v56 = vld [vmem:[#allocation2 + $0x438] sm:$0xff]  ;;  %1897 = vst.msk [vmem:[#allocation2 + $0x558] sm:$0xf] %vm246_vm0, %v3601_v41 }
 0x229   : > { %1187 = vst.msk [vmem:[#allocation2 + $0x448] sm:$0xf] %vm246_vm0, %v1169_v47  ;;  %1186 = vst.msk [vmem:[#allocation2 + $0x380] sm:$0xf] %vm246_vm0, %v1167_v48  ;;  %v3578_v47 = vld [vmem:[%s4301_s26 + $0x7c] sm:$0xf] }
 0x22a   : > { %v3577_v48 = vld [vmem:[%s4301_s26 + $0x78] sm:$0xf]  ;;  %v3677_v41 = vld [vmem:[%s4301_s26 + $0x64] sm:$0xf] }
 0x22b   : > { %1316 = vrot.lane.b32.xlu1 %v3482_v49, %s4162_s12  ;;  %1314 = vrot.lane.b32.xlu0 %v3481_v50, %s4162_s12 }
 0x22c   : > { %v1217_v54 = vpop.permute.xlu1 %1216  ;;  %v1215_v8 = vpop.permute.xlu0 %1214  ;;  %v2268_v55 = vld [vmem:[#allocation2 + $0x378] sm:$0xff]  ;;  %v2293_v57 = vld [vmem:[#allocation2 + $0x440] sm:$0xff] }
 0x22d   : > { %1235 = vst.msk [vmem:[#allocation2 + $0x44c] sm:$0xf] %vm246_vm0, %v1217_v54  ;;  %1234 = vst.msk [vmem:[#allocation2 + $0x384] sm:$0xf] %vm246_vm0, %v1215_v8  ;;  %v3866_v58 = vpack.c.bf16 %v2268_v55, %v2267_v53  ;;  %v3902_v59 = vpack.c.bf16 %v2293_v57, %v2292_v56  ;;  %v3594_v53 = vld [vmem:[%s4301_s26 + $0x7c] sm:$0xf] }
 0x22e   : > { %v3593_v54 = vld [vmem:[%s4301_s26 + $0x78] sm:$0xf] }
 0x22f   : > { %1398 = vrot.lane.b32.xlu1 %v3506_v51, %s4159_s11  ;;  %1396 = vrot.lane.b32.xlu0 %v3505_v52, %s4159_s11  ;;  %v3586_v51 = vld [vmem:[%s4301_s26 + $0xa8] sm:$0xf]  ;;  %v3585_v52 = vld [vmem:[%s4301_s26 + $0xa4] sm:$0xf] }
 0x230   : > { %3867 = vmatpush1.bf16.msra.mxu0 %v3866_v58  ;;  %3903 = vmatpush1.bf16.msra.mxu1 %v3902_v59  ;;  %v1265_v60 = vpop.permute.xlu1 %1264  ;;  %v1263_v62 = vpop.permute.xlu0 %1262 }
 0x231   : > { %1283 = vst.msk [vmem:[#allocation2 + $0x450] sm:$0xf] %vm246_vm0, %v1265_v60  ;;  %1282 = vst.msk [vmem:[#allocation2 + $0x388] sm:$0xf] %vm246_vm0, %v1263_v62  ;;  %3868 = vmatprep.subr.bf16.mxu0 %v4160_v10  ;;  %3904 = vmatprep.subr.bf16.mxu1 %v4160_v10 }
 0x233   : > { %1446 = vrot.lane.b32.xlu1 %v3514_v63, %s4159_s11  ;;  %1444 = vrot.lane.b32.xlu0 %v3513_v0, %s4159_s11 }
 0x234   : > { %v1313_v3 = vpop.permute.xlu1 %1312  ;;  %v1311_v4 = vpop.permute.xlu0 %1310  ;;  %v2269_v18 = vld [vmem:[#allocation2 + $0x380] sm:$0xff]  ;;  %v2294_v22 = vld [vmem:[#allocation2 + $0x448] sm:$0xff] }
 0x235   : > { %1331 = vst.msk [vmem:[#allocation2 + $0x454] sm:$0xf] %vm246_vm0, %v1313_v3  ;;  %1330 = vst.msk [vmem:[#allocation2 + $0x38c] sm:$0xf] %vm246_vm0, %v1311_v4 }
 0x237   : > { %1494 = vrot.lane.b32.xlu1 %v3522_v5, %s4161_s28  ;;  %1492 = vrot.lane.b32.xlu0 %v3521_v6, %s4161_s28  ;;  %v3626_v5 = vld [vmem:[%s4301_s26 + $0x54] sm:$0xf]  ;;  %v3625_v6 = vld [vmem:[%s4301_s26 + $0x50] sm:$0xf] }
 0x238   : > { %v1395_v12 = vpop.permute.xlu1 %1394  ;;  %v1393_v13 = vpop.permute.xlu0 %1392 }
 0x239   : > { %1413 = vst.msk [vmem:[#allocation2 + $0x460] sm:$0xf] %vm246_vm0, %v1395_v12  ;;  %1412 = vst.msk [vmem:[#allocation2 + $0x398] sm:$0xf] %vm246_vm0, %v1393_v13 }
 0x23b   : > { %1542 = vrot.lane.b32.xlu1 %v3530_v14, %s4161_s28  ;;  %1540 = vrot.lane.b32.xlu0 %v3529_v15, %s4161_s28 }
 0x23c   : > { %v1443_v19 = vpop.permute.xlu1 %1442  ;;  %v1441_v20 = vpop.permute.xlu0 %1440  ;;  %v2270_v21 = vld [vmem:[#allocation2 + $0x388] sm:$0xff]  ;;  %v2295_v23 = vld [vmem:[#allocation2 + $0x450] sm:$0xff] }
 0x23d   : > { %1461 = vst.msk [vmem:[#allocation2 + $0x464] sm:$0xf] %vm246_vm0, %v1443_v19  ;;  %1460 = vst.msk [vmem:[#allocation2 + $0x39c] sm:$0xf] %vm246_vm0, %v1441_v20  ;;  %v3869_v24 = vpack.c.bf16 %v2270_v21, %v2269_v18  ;;  %v3905_v25 = vpack.c.bf16 %v2295_v23, %v2294_v22  ;;  %v3642_v22 = vld [vmem:[%s4301_s26 + $0x54] sm:$0xf] }
 0x23e   : > { %v3641_v23 = vld [vmem:[%s4301_s26 + $0x50] sm:$0xf] }
 0x23f   : > { %1590 = vrot.lane.b32.xlu1 %v3538_v16, %s4162_s12  ;;  %1588 = vrot.lane.b32.xlu0 %v3537_v17, %s4162_s12 }
 0x240   : > { %3870 = vmatpush1.bf16.msra.mxu0 %v3869_v24  ;;  %3906 = vmatpush1.bf16.msra.mxu1 %v3905_v25  ;;  %v1491_v26 = vpop.permute.xlu1 %1490  ;;  %v1489_v27 = vpop.permute.xlu0 %1488  ;;  %v2278_v24 = vld [vmem:[#allocation2 + $0x3c8] sm:$0xff]  ;;  %v2303_v25 = vld [vmem:[#allocation2 + $0x490] sm:$0xff] }
 0x241   : > { %1509 = vst.msk [vmem:[#allocation2 + $0x468] sm:$0xf] %vm246_vm0, %v1491_v26  ;;  %1508 = vst.msk [vmem:[#allocation2 + $0x3a0] sm:$0xf] %vm246_vm0, %v1489_v27  ;;  %3871 = vmatprep.subr.bf16.mxu0 %v4160_v10  ;;  %3907 = vmatprep.subr.bf16.mxu1 %v4160_v10 }
 0x243   : > { %1672 = vrot.lane.b32.xlu1 %v3562_v28, %s4159_s11  ;;  %1670 = vrot.lane.b32.xlu0 %v3561_v29, %s4159_s11 }
 0x244   : > { %v1539_v33 = vpop.permute.xlu1 %1538  ;;  %v1537_v35 = vpop.permute.xlu0 %1536  ;;  %v2272_v37 = vld [vmem:[#allocation2 + $0x398] sm:$0xff]  ;;  %v2297_v38 = vld [vmem:[#allocation2 + $0x460] sm:$0xff] }
 0x245   : > { %1557 = vst.msk [vmem:[#allocation2 + $0x46c] sm:$0xf] %vm246_vm0, %v1539_v33  ;;  %1556 = vst.msk [vmem:[#allocation2 + $0x3a4] sm:$0xf] %vm246_vm0, %v1537_v35  ;;  %v3872_v39 = vpack.c.bf16 %v2272_v37, %v2271_v30  ;;  %v3908_v40 = vpack.c.bf16 %v2297_v38, %v2296_v31  ;;  %v3649_v33 = vld [vmem:[%s4301_s26 + $0x24] sm:$0xf] }
 0x246   : > { %v3675_v37 = vld [vmem:[%s4301_s26 + $0x5c] sm:$0xf]  ;;  %v3676_v38 = vld [vmem:[%s4301_s26 + $0x60] sm:$0xf] }
 0x247   : > { %1720 = vrot.lane.b32.xlu1 %v3570_v32, %s4159_s11  ;;  %1718 = vrot.lane.b32.xlu0 %v3569_v36, %s4159_s11  ;;  %v3650_v32 = vld [vmem:[%s4301_s26 + $0x28] sm:$0xf] }
 0x248   : > { %3873 = vmatpush1.bf16.msra.mxu0 %v3872_v39  ;;  %3909 = vmatpush1.bf16.msra.mxu1 %v3908_v40  ;;  %v1587_v45 = vpop.permute.xlu1 %1586  ;;  %v1585_v46 = vpop.permute.xlu0 %1584 }
 0x249   : > { %1605 = vst.msk [vmem:[#allocation2 + $0x470] sm:$0xf] %vm246_vm0, %v1587_v45  ;;  %1604 = vst.msk [vmem:[#allocation2 + $0x3a8] sm:$0xf] %vm246_vm0, %v1585_v46  ;;  %3874 = vmatprep.subr.bf16.mxu0 %v4160_v10  ;;  %3910 = vmatprep.subr.bf16.mxu1 %v4160_v10  ;;  %v3679_v45 = vld [vmem:[%s4301_s26 + $0x6c] sm:$0xf] }
 0x24a   : > { %v3680_v46 = vld [vmem:[%s4301_s26 + $0x70] sm:$0xf] }
 0x24b   : > { %1768 = vrot.lane.b32.xlu1 %v3578_v47, %s4161_s28  ;;  %1766 = vrot.lane.b32.xlu0 %v3577_v48, %s4161_s28 }
 0x24c   : > { %v1669_v49 = vpop.permute.xlu1 %1668  ;;  %v1667_v50 = vpop.permute.xlu0 %1666  ;;  %v2273_v8 = vld [vmem:[#allocation2 + $0x3a0] sm:$0xff]  ;;  %v2298_v58 = vld [vmem:[#allocation2 + $0x468] sm:$0xff] }
 0x24d   : > { %1687 = vst.msk [vmem:[#allocation2 + $0x47c] sm:$0xf] %vm246_vm0, %v1669_v49  ;;  %1686 = vst.msk [vmem:[#allocation2 + $0x3b4] sm:$0xf] %vm246_vm0, %v1667_v50 }
 0x24f   : > { %1816 = vrot.lane.b32.xlu1 %v3586_v51, %s4161_s28  ;;  %1814 = vrot.lane.b32.xlu0 %v3585_v52, %s4161_s28 }
 0x250   : > { %v1717_v55 = vpop.permute.xlu1 %1716  ;;  %v1715_v56 = vpop.permute.xlu0 %1714  ;;  %v2274_v57 = vld [vmem:[#allocation2 + $0x3a8] sm:$0xff]  ;;  %v2299_v59 = vld [vmem:[#allocation2 + $0x470] sm:$0xff] }
 0x251   : > { %1735 = vst.msk [vmem:[#allocation2 + $0x480] sm:$0xf] %vm246_vm0, %v1717_v55  ;;  %1734 = vst.msk [vmem:[#allocation2 + $0x3b8] sm:$0xf] %vm246_vm0, %v1715_v56  ;;  %v3875_v60 = vpack.c.bf16 %v2274_v57, %v2273_v8  ;;  %v3911_v62 = vpack.c.bf16 %v2299_v59, %v2298_v58  ;;  %v3681_v8 = vld [vmem:[%s4301_s26 + $0x74] sm:$0xf] }
 0x252   : > { %v3682_v55 = vld [vmem:[%s4301_s26 + $0x78] sm:$0xf]  ;;  %v2307_v58 = vld [vmem:[#allocation2 + $0x4b0] sm:$0xff] }
 0x253   : > { %1864 = vrot.lane.b32.xlu1 %v3594_v53, %s4162_s12  ;;  %1862 = vrot.lane.b32.xlu0 %v3593_v54, %s4162_s12  ;;  %v2308_v59 = vld [vmem:[#allocation2 + $0x4b8] sm:$0xff] }
 0x254   : > { %3876 = vmatpush1.bf16.msra.mxu0 %v3875_v60  ;;  %3912 = vmatpush1.bf16.msra.mxu1 %v3911_v62  ;;  %v1765_v63 = vpop.permute.xlu1 %1764  ;;  %v1763_v0 = vpop.permute.xlu0 %1762  ;;  %v2275_v12 = vld [vmem:[#allocation2 + $0x3b0] sm:$0xff]  ;;  %v2300_v16 = vld [vmem:[#allocation2 + $0x478] sm:$0xff]  ;;  %v2333_v62 = vld [vmem:[#allocation2 + $0x580] sm:$0xff] }
 0x255   : > { %1783 = vst.msk [vmem:[#allocation2 + $0x484] sm:$0xf] %vm246_vm0, %v1765_v63  ;;  %1782 = vst.msk [vmem:[#allocation2 + $0x3bc] sm:$0xf] %vm246_vm0, %v1763_v0  ;;  %3877 = vmatprep.subr.bf16.mxu0 %v4160_v10  ;;  %3913 = vmatprep.subr.bf16.mxu1 %v4160_v10  ;;  %v2332_v60 = vld [vmem:[#allocation2 + $0x578] sm:$0xff] }
 0x257   : > { %1946 = vrot.lane.b32.xlu1 %v3618_v1, %s4159_s11  ;;  %1944 = vrot.lane.b32.xlu0 %v3617_v2, %s4159_s11 }
 0x258   : > { %v1813_v3 = vpop.permute.xlu1 %1812  ;;  %v1811_v4 = vpop.permute.xlu0 %1810 }
 0x259   : > { %1831 = vst.msk [vmem:[#allocation2 + $0x488] sm:$0xf] %vm246_vm0, %v1813_v3  ;;  %1830 = vst.msk [vmem:[#allocation2 + $0x3c0] sm:$0xf] %vm246_vm0, %v1811_v4  ;;  %v3923_v3 = vpack.c.bf16 %v2308_v59, %v2307_v58  ;;  %v3959_v4 = vpack.c.bf16 %v2333_v62, %v2332_v60 }
 0x25b   : > { %1994 = vrot.lane.b32.xlu1 %v3626_v5, %s4159_s11  ;;  %1992 = vrot.lane.b32.xlu0 %v3625_v6, %s4159_s11  ;;  %v2310_v5 = vld [vmem:[#allocation2 + $0x4c8] sm:$0xff]  ;;  %v2335_v6 = vld [vmem:[#allocation2 + $0x590] sm:$0xff] }
 0x25c   : > { %v1861_v13 = vpop.permute.xlu1 %1860  ;;  %v1859_v14 = vpop.permute.xlu0 %1858  ;;  %v2276_v15 = vld [vmem:[#allocation2 + $0x3b8] sm:$0xff]  ;;  %v2301_v17 = vld [vmem:[#allocation2 + $0x480] sm:$0xff] }
 0x25d   : > { %1879 = vst.msk [vmem:[#allocation2 + $0x48c] sm:$0xf] %vm246_vm0, %v1861_v13  ;;  %1878 = vst.msk [vmem:[#allocation2 + $0x3c4] sm:$0xf] %vm246_vm0, %v1859_v14  ;;  %v3878_v18 = vpack.c.bf16 %v2276_v15, %v2275_v12  ;;  %v3914_v19 = vpack.c.bf16 %v2301_v17, %v2300_v16  ;;  %v2309_v12 = vld [vmem:[#allocation2 + $0x4c0] sm:$0xff]  ;;  %v2334_v13 = vld [vmem:[#allocation2 + $0x588] sm:$0xff] }
 0x25e   : > { %v3926_v16 = vpack.c.bf16 %v2310_v5, %v2309_v12  ;;  %v3962_v17 = vpack.c.bf16 %v2335_v6, %v2334_v13 }
 0x25f   : > { %2042 = vrot.lane.b32.xlu1 %v3634_v7, %s4161_s28  ;;  %2040 = vrot.lane.b32.xlu0 %v3633_v11, %s4161_s28  ;;  %v3691_v7 = vld [vmem:[%s4301_s26 + $0x8] sm:$0xf]  ;;  %v3692_v11 = vld [vmem:[%s4301_s26 + $0xc] sm:$0xf] }
 0x260   : > { %3879 = vmatpush1.bf16.msra.mxu0 %v3878_v18  ;;  %3915 = vmatpush1.bf16.msra.mxu1 %v3914_v19  ;;  %v1943_v20 = vpop.permute.xlu1 %1942  ;;  %v1941_v21 = vpop.permute.xlu0 %1940  ;;  %v2312_v18 = vld [vmem:[#allocation2 + $0x4d8] sm:$0xff]  ;;  %v2337_v19 = vld [vmem:[#allocation2 + $0x5a0] sm:$0xff] }
 0x261   : > { %1961 = vst.msk [vmem:[#allocation2 + $0x498] sm:$0xf] %vm246_vm0, %v1943_v20  ;;  %1960 = vst.msk [vmem:[#allocation2 + $0x3d0] sm:$0xf] %vm246_vm0, %v1941_v21  ;;  %3880 = vmatprep.subr.bf16.mxu0 %v4160_v10  ;;  %3916 = vmatprep.subr.bf16.mxu1 %v4160_v10  ;;  %v3694_v20 = vld [vmem:[%s4301_s26 + $0x14] sm:$0xf] }
 0x263   : > { %2090 = vrot.lane.b32.xlu1 %v3642_v22, %s4161_s28  ;;  %2088 = vrot.lane.b32.xlu0 %v3641_v23, %s4161_s28 }
 0x264   : > { %v1991_v26 = vpop.permute.xlu1 %1990  ;;  %v1989_v27 = vpop.permute.xlu0 %1988  ;;  %v2277_v28 = vld [vmem:[#allocation2 + $0x3c0] sm:$0xff]  ;;  %v2302_v29 = vld [vmem:[#allocation2 + $0x488] sm:$0xff] }
 0x265   : > { %2009 = vst.msk [vmem:[#allocation2 + $0x49c] sm:$0xf] %vm246_vm0, %v1991_v26  ;;  %2008 = vst.msk [vmem:[#allocation2 + $0x3d4] sm:$0xf] %vm246_vm0, %v1989_v27  ;;  %v3881_v30 = vpack.c.bf16 %v2278_v24, %v2277_v28  ;;  %v3917_v31 = vpack.c.bf16 %v2303_v25, %v2302_v29  ;;  %v2311_v25 = vld [vmem:[#allocation2 + $0x4d0] sm:$0xff]  ;;  %v2336_v26 = vld [vmem:[#allocation2 + $0x598] sm:$0xff] }
 0x266   : > { %v3929_v29 = vpack.c.bf16 %v2312_v18, %v2311_v25  ;;  %v2346_v18 = vld [vmem:[#allocation2 + $0x5e8] sm:$0xff] }
 0x267   : > { %3882 = vmatpush1.bf16.msra.mxu0 %v3881_v30  ;;  %3918 = vmatpush1.bf16.msra.mxu1 %v3917_v31  ;;  %v2314_v30 = vld [vmem:[#allocation2 + $0x4e8] sm:$0xff]  ;;  %v2339_v31 = vld [vmem:[#allocation2 + $0x5b0] sm:$0xff] }
 0x268   : > { %2138 = vrot.lane.b32.xlu1 %v3650_v32, %s4162_s12  ;;  %v2039_v35 = vpop.permute.xlu1 %2038  ;;  %2136 = vrot.lane.b32.xlu0 %v3649_v33, %s4162_s12  ;;  %v2037_v36 = vpop.permute.xlu0 %2036  ;;  %v3695_v32 = vld [vmem:[%s4301_s26 + $0x18] sm:$0xf] }
 0x269   : > { %2057 = vst.msk [vmem:[#allocation2 + $0x4a0] sm:$0xf] %vm246_vm0, %v2039_v35  ;;  %2056 = vst.msk [vmem:[#allocation2 + $0x3d8] sm:$0xf] %vm246_vm0, %v2037_v36  ;;  %3883 = vmatprep.subr.bf16.mxu0 %v4160_v10  ;;  %3919 = vmatprep.subr.bf16.mxu1 %v4160_v10  ;;  %v3696_v36 = vld [vmem:[%s4301_s26 + $0x1c] sm:$0xf] }
 0x26c   : > { %v2087_v39 = vpop.permute.xlu1 %2086  ;;  %v2085_v40 = vpop.permute.xlu0 %2084  ;;  %3001 = vrot.lane.b32.xlu0 %v3675_v37, %s4159_s11  ;;  %3003 = vrot.lane.b32.xlu1 %v3676_v38, %s4159_s11  ;;  %v2279_v47 = vld [vmem:[#allocation2 + $0x3d0] sm:$0xff]  ;;  %v2304_v51 = vld [vmem:[#allocation2 + $0x498] sm:$0xff] }
 0x26d   : > { %2105 = vst.msk [vmem:[#allocation2 + $0x4a4] sm:$0xf] %vm246_vm0, %v2087_v39  ;;  %2104 = vst.msk [vmem:[#allocation2 + $0x3dc] sm:$0xf] %vm246_vm0, %v2085_v40 }
 0x270   : > { %v2135_v43 = vpop.permute.xlu1 %2134  ;;  %v2133_v44 = vpop.permute.xlu0 %2132  ;;  %3005 = vrot.lane.b32.xlu0 %v3677_v41, %s4159_s11  ;;  %3007 = vrot.lane.b32.xlu1 %v3678_v42, %s4159_s11  ;;  %v3697_v41 = vld [vmem:[%s4301_s26 + $0x20] sm:$0xf]  ;;  %v3698_v42 = vld [vmem:[%s4301_s26 + $0x24] sm:$0xf] }
 0x271   : > { %2153 = vst.msk [vmem:[#allocation2 + $0x4a8] sm:$0xf] %vm246_vm0, %v2135_v43  ;;  %2152 = vst.msk [vmem:[#allocation2 + $0x3e0] sm:$0xf] %vm246_vm0, %v2133_v44 }
 0x274   : > { %v769_v48 = vpop.permute.xlu1 %768  ;;  %v767_v49 = vpop.permute.xlu0 %766  ;;  %v2280_v50 = vld [vmem:[#allocation2 + $0x3d8] sm:$0xff]  ;;  %v2305_v52 = vld [vmem:[#allocation2 + $0x4a0] sm:$0xff]  ;;  %3009 = vrot.lane.b32.xlu0 %v3679_v45, %s4159_s11  ;;  %3011 = vrot.lane.b32.xlu1 %v3680_v46, %s4159_s11 }
 0x275   : > { %785 = vst.msk [vmem:[#allocation2 + $0x5ac] sm:$0xf] %vm246_vm0, %v769_v48  ;;  %784 = vst.msk [vmem:[#allocation2 + $0x4e4] sm:$0xf] %vm246_vm0, %v767_v49  ;;  %v3884_v53 = vpack.c.bf16 %v2280_v50, %v2279_v47  ;;  %v3920_v54 = vpack.c.bf16 %v2305_v52, %v2304_v51  ;;  %v2357_v51 = vld [vmem:[%s5724_s2] sm:$0xf] }
 0x277   : > { %3885 = vmatpush1.bf16.msra.mxu0 %v3884_v53  ;;  %3921 = vmatpush1.bf16.msra.mxu1 %v3920_v54 }
 0x278   : > { %v851_v56 = vpop.permute.xlu1 %850  ;;  %v849_v57 = vpop.permute.xlu0 %848  ;;  %2712 = vmatprep.subr.mxu0 %v4163_v34  ;;  %2785 = vmatprep.subr.mxu1 %v4163_v34  ;;  %v2281_v63 = vld [vmem:[#allocation2 + $0x3e0] sm:$0xf]  ;;  %v2306_v0 = vld [vmem:[#allocation2 + $0x4a8] sm:$0xf] }
 0x279   : > { %867 = vst.msk [vmem:[#allocation2 + $0x5b8] sm:$0xf] %vm246_vm0, %v851_v56  ;;  %866 = vst.msk [vmem:[#allocation2 + $0x4f0] sm:$0xf] %vm246_vm0, %v849_v57  ;;  %3013 = vrot.lane.b32.xlu0 %v3681_v8, %s4159_s11  ;;  %3015 = vrot.lane.b32.xlu1 %v3682_v55, %s4159_s11 }
 0x27b   : > { %3659 = vmatpush1.msk.msra.mxu0 %vm2368_vm2, %v2281_v63  ;;  %3661 = vmatpush1.msk.msra.mxu1 %vm2368_vm2, %v2306_v0 }
 0x27c   : > { %v899_v1 = vpop.permute.xlu1 %898  ;;  %v897_v2 = vpop.permute.xlu0 %896  ;;  %3922 = vmatprep.subr.bf16.mxu0 %v4160_v10  ;;  %3958 = vmatprep.subr.bf16.mxu1 %v4160_v10  ;;  %v2313_v33 = vld [vmem:[#allocation2 + $0x4e0] sm:$0xff]  ;;  %v2338_v35 = vld [vmem:[#allocation2 + $0x5a8] sm:$0xff] }
 0x27d   : > { %915 = vst.msk [vmem:[#allocation2 + $0x5bc] sm:$0xf] %vm246_vm0, %v899_v1  ;;  %914 = vst.msk [vmem:[#allocation2 + $0x4f4] sm:$0xf] %vm246_vm0, %v897_v2  ;;  %2729 = vmatmul.mubr.f32.vlgmr.msra.gmra.mrb[4].mxu0 %v5247_v61  ;;  %2802 = vmatmul.mubr.f32.vlgmr.msra.gmra.mrb[4].mxu1 %v5247_v61  ;;  %v3693_v61 = vld [vmem:[%s4301_s26 + $0x10] sm:$0xf]  ;;  %v3932_v37 = vpack.c.bf16 %v2314_v30, %v2313_v33  ;;  %v3968_v38 = vpack.c.bf16 %v2339_v31, %v2338_v35 }
 0x27e   : > { %3924 = vmatpush1.bf16.msra.mxu0 %v3923_v3  ;;  %3960 = vmatpush1.bf16.msra.mxu1 %v3959_v4 }
 0x27f   : > { %3925 = vmatprep.subr.bf16.mxu0 %v4160_v10  ;;  %3961 = vmatprep.subr.bf16.mxu1 %v4160_v10  ;;  %v5473_v21 = vpop.f32.mrb[0].mxu0  ;;  %v5475_v22 = vpop.f32.mrb[0].mxu1 }
 0x280   : > { %v947_v14 = vpop.permute.xlu1 %946  ;;  %v945_v15 = vpop.permute.xlu0 %944  ;;  %3041 = vrot.lane.b32.xlu0 %v3691_v7, %s4159_s11  ;;  %3043 = vrot.lane.b32.xlu1 %v3692_v11, %s4159_s11 }
 0x281   : > { %963 = vst.msk [vmem:[#allocation2 + $0x5c0] sm:$0xf] %vm246_vm0, %v947_v14  ;;  %962 = vst.msk [vmem:[#allocation2 + $0x4f8] sm:$0xf] %vm246_vm0, %v945_v15  ;;  %3664 = vmatprep.mubr.msk.f32.mxu0 %vm2365_vm1, %v4742_v9  ;;  %3666 = vmatprep.mubr.msk.f32.mxu1 %vm2365_vm1, %v4742_v9  ;;  %v2440_v23 = vpop.f32.mrb[1].mxu0  ;;  %v2513_v24 = vpop.f32.mrb[1].mxu1  ;;  %v3965_v9 = vpack.c.bf16 %v2337_v19, %v2336_v26 }
 0x282   : > { %3927 = vmatpush1.bf16.msra.mxu0 %v3926_v16  ;;  %3963 = vmatpush1.bf16.msra.mxu1 %v3962_v17  ;;  %v2321_v17 = vld [vmem:[#allocation2 + $0x520] sm:$0xff] }
 0x283   : > { %3928 = vmatprep.subr.bf16.mxu0 %v4160_v10  ;;  %3964 = vmatprep.subr.bf16.mxu1 %v4160_v10 }
 0x284   : > { %v995_v27 = vpop.permute.xlu1 %994  ;;  %v993_v28 = vpop.permute.xlu0 %992  ;;  %3045 = vrot.lane.b32.xlu0 %v3693_v61, %s4159_s11  ;;  %3047 = vrot.lane.b32.xlu1 %v3694_v20, %s4159_s11  ;;  %v2315_v43 = vld [vmem:[#allocation2 + $0x4f0] sm:$0xff]  ;;  %v2340_v45 = vld [vmem:[#allocation2 + $0x5b8] sm:$0xff] }
 0x285   : > { %1011 = vst.msk [vmem:[#allocation2 + $0x5c4] sm:$0xf] %vm246_vm0, %v995_v27  ;;  %1010 = vst.msk [vmem:[#allocation2 + $0x4fc] sm:$0xf] %vm246_vm0, %v993_v28 }
 0x286   : > { %3930 = vmatpush1.bf16.msra.mxu0 %v3929_v29  ;;  %3966 = vmatpush1.bf16.msra.mxu1 %v3965_v9 }
 0x287   : > { %3931 = vmatprep.subr.bf16.mxu0 %v4160_v10  ;;  %3967 = vmatprep.subr.bf16.mxu1 %v4160_v10 }
 0x288   : > { %3049 = vrot.lane.b32.xlu0 %v3695_v32, %s4159_s11  ;;  %3051 = vrot.lane.b32.xlu1 %v3696_v36, %s4159_s11 }
 0x289   : > { %v1043_v39 = vpop.permute.xlu1 %1042  ;;  %v1041_v40 = vpop.permute.xlu0 %1040 }
 0x28a   : > { %1059 = vst.msk [vmem:[#allocation2 + $0x5c8] sm:$0xf] %vm246_vm0, %v1043_v39  ;;  %1058 = vst.msk [vmem:[#allocation2 + $0x500] sm:$0xf] %vm246_vm0, %v1041_v40  ;;  %3933 = vmatpush1.bf16.msra.mxu0 %v3932_v37  ;;  %3969 = vmatpush1.bf16.msra.mxu1 %v3968_v38 }
 0x28b   : > { %3934 = vmatprep.subr.bf16.mxu0 %v4160_v10  ;;  %3970 = vmatprep.subr.bf16.mxu1 %v4160_v10 }
 0x28c   : > { %v2316_v44 = vld [vmem:[#allocation2 + $0x4f8] sm:$0xff]  ;;  %v2341_v46 = vld [vmem:[#allocation2 + $0x5c0] sm:$0xff]  ;;  %3053 = vrot.lane.b32.xlu0 %v3697_v41, %s4159_s11  ;;  %3055 = vrot.lane.b32.xlu1 %v3698_v42, %s4159_s11 }
 0x28d   : > { %v1125_v47 = vpop.permute.xlu1 %1124  ;;  %v1123_v48 = vpop.permute.xlu0 %1122  ;;  %v3935_v49 = vpack.c.bf16 %v2316_v44, %v2315_v43  ;;  %v3971_v50 = vpack.c.bf16 %v2341_v46, %v2340_v45 }
 0x28e   : > { %1141 = vst.msk [vmem:[#allocation2 + $0x5d4] sm:$0xf] %vm246_vm0, %v1125_v47  ;;  %1140 = vst.msk [vmem:[#allocation2 + $0x50c] sm:$0xf] %vm246_vm0, %v1123_v48 }
 0x28f   : > { %3936 = vmatpush1.bf16.msra.mxu0 %v3935_v49  ;;  %3972 = vmatpush1.bf16.msra.mxu1 %v3971_v50 }
 0x290   : > { %3937 = vmatprep.subr.bf16.mxu0 %v4160_v10  ;;  %3973 = vmatprep.subr.bf16.mxu1 %v4160_v10 }
 0x291   : > { %v1173_v52 = vpop.permute.xlu1 %1172  ;;  %v1171_v53 = vpop.permute.xlu0 %1170  ;;  %2360 = vperm.xlu0 %4054, %v2357_v51   ;;  %v2317_v54 = vld [vmem:[#allocation2 + $0x500] sm:$0xff]  ;;  %v2342_v57 = vld [vmem:[#allocation2 + $0x5c8] sm:$0xff] }
 0x292   : > { %1189 = vst.msk [vmem:[#allocation2 + $0x5d8] sm:$0xf] %vm246_vm0, %v1173_v52  ;;  %1188 = vst.msk [vmem:[#allocation2 + $0x510] sm:$0xf] %vm246_vm0, %v1171_v53  ;;  %v2328_v52 = vld [vmem:[#allocation2 + $0x558] sm:$0xff]  ;;  %v2353_v53 = vld [vmem:[#allocation2 + $0x620] sm:$0xff] }
 0x295   : > { %v1221_v8 = vpop.permute.xlu1 %1220  ;;  %v1219_v55 = vpop.permute.xlu0 %1218  ;;  %v2318_v56 = vld [vmem:[#allocation2 + $0x508] sm:$0xff]  ;;  %v2343_v58 = vld [vmem:[#allocation2 + $0x5d0] sm:$0xff] }
 0x296   : > { %1237 = vst.msk [vmem:[#allocation2 + $0x5dc] sm:$0xf] %vm246_vm0, %v1221_v8  ;;  %1236 = vst.msk [vmem:[#allocation2 + $0x514] sm:$0xf] %vm246_vm0, %v1219_v55  ;;  %v3938_v59 = vpack.c.bf16 %v2318_v56, %v2317_v54  ;;  %v3974_v60 = vpack.c.bf16 %v2343_v58, %v2342_v57 }
 0x298   : > { %3939 = vmatpush1.bf16.msra.mxu0 %v3938_v59  ;;  %3975 = vmatpush1.bf16.msra.mxu1 %v3974_v60 }
 0x299   : > { %v1269_v62 = vpop.permute.xlu1 %1268  ;;  %v1267_v63 = vpop.permute.xlu0 %1266  ;;  %3940 = vmatprep.subr.bf16.mxu0 %v4160_v10  ;;  %3976 = vmatprep.subr.bf16.mxu1 %v4160_v10 }
 0x29a   : > { %1285 = vst.msk [vmem:[#allocation2 + $0x5e0] sm:$0xf] %vm246_vm0, %v1269_v62  ;;  %1284 = vst.msk [vmem:[#allocation2 + $0x518] sm:$0xf] %vm246_vm0, %v1267_v63 }
 0x29d   : > { %v1317_v0 = vpop.permute.xlu1 %1316  ;;  %v1315_v1 = vpop.permute.xlu0 %1314  ;;  %v2319_v4 = vld [vmem:[#allocation2 + $0x510] sm:$0xff]  ;;  %v2344_v11 = vld [vmem:[#allocation2 + $0x5d8] sm:$0xff] }
 0x29e   : > { %1333 = vst.msk [vmem:[#allocation2 + $0x5e4] sm:$0xf] %vm246_vm0, %v1317_v0  ;;  %1332 = vst.msk [vmem:[#allocation2 + $0x51c] sm:$0xf] %vm246_vm0, %v1315_v1 }
 0x2a1   : > { %v1399_v2 = vpop.permute.xlu1 %1398  ;;  %v1397_v3 = vpop.permute.xlu0 %1396 }
 0x2a2   : > { %1415 = vst.msk [vmem:[#allocation2 + $0x5f0] sm:$0xf] %vm246_vm0, %v1399_v2  ;;  %1414 = vst.msk [vmem:[#allocation2 + $0x528] sm:$0xf] %vm246_vm0, %v1397_v3 }
 0x2a5   : > { %v1447_v5 = vpop.permute.xlu1 %1446  ;;  %v1445_v6 = vpop.permute.xlu0 %1444  ;;  %v2320_v7 = vld [vmem:[#allocation2 + $0x518] sm:$0xff]  ;;  %v2345_v12 = vld [vmem:[#allocation2 + $0x5e0] sm:$0xff] }
 0x2a6   : > { %1463 = vst.msk [vmem:[#allocation2 + $0x5f4] sm:$0xf] %vm246_vm0, %v1447_v5  ;;  %1462 = vst.msk [vmem:[#allocation2 + $0x52c] sm:$0xf] %vm246_vm0, %v1445_v6  ;;  %v3941_v13 = vpack.c.bf16 %v2320_v7, %v2319_v4  ;;  %v3977_v14 = vpack.c.bf16 %v2345_v12, %v2344_v11 }
 0x2a8   : > { %3942 = vmatpush1.bf16.msra.mxu0 %v3941_v13  ;;  %3978 = vmatpush1.bf16.msra.mxu1 %v3977_v14 }
 0x2a9   : > { %v1495_v15 = vpop.permute.xlu1 %1494  ;;  %v1493_v16 = vpop.permute.xlu0 %1492  ;;  %3943 = vmatprep.subr.bf16.mxu0 %v4160_v10  ;;  %3979 = vmatprep.subr.bf16.mxu1 %v4160_v10 }
 0x2aa   : > { %1511 = vst.msk [vmem:[#allocation2 + $0x5f8] sm:$0xf] %vm246_vm0, %v1495_v15  ;;  %1510 = vst.msk [vmem:[#allocation2 + $0x530] sm:$0xf] %vm246_vm0, %v1493_v16  ;;  %v4057_v16 = vld [vmem:[%s5723_s1] sm:$0xff] }
 0x2ad   : > { %v1543_v19 = vpop.permute.xlu1 %1542  ;;  %v1541_v61 = vpop.permute.xlu0 %1540  ;;  %v2322_v20 = vld [vmem:[#allocation2 + $0x528] sm:$0xff]  ;;  %v2347_v23 = vld [vmem:[#allocation2 + $0x5f0] sm:$0xff] }
 0x2ae   : > { %1559 = vst.msk [vmem:[#allocation2 + $0x5fc] sm:$0xf] %vm246_vm0, %v1543_v19  ;;  %1558 = vst.msk [vmem:[#allocation2 + $0x534] sm:$0xf] %vm246_vm0, %v1541_v61  ;;  %v3944_v24 = vpack.c.bf16 %v2322_v20, %v2321_v17  ;;  %v3980_v25 = vpack.c.bf16 %v2347_v23, %v2346_v18 }
 0x2b0   : > { %3945 = vmatpush1.bf16.msra.mxu0 %v3944_v24  ;;  %3981 = vmatpush1.bf16.msra.mxu1 %v3980_v25  ;;  %v3667_v25 = vld [vmem:[%s4301_s26 + $0x88] sm:$0xf] }
 0x2b1   : > { %v1591_v26 = vpop.permute.xlu1 %1590  ;;  %v1589_v27 = vpop.permute.xlu0 %1588  ;;  %3946 = vmatprep.subr.bf16.mxu0 %v4160_v10  ;;  %3982 = vmatprep.subr.bf16.mxu1 %v4160_v10 }
 0x2b2   : > { %1607 = vst.msk [vmem:[#allocation2 + $0x600] sm:$0xf] %vm246_vm0, %v1591_v26  ;;  %1606 = vst.msk [vmem:[#allocation2 + $0x538] sm:$0xf] %vm246_vm0, %v1589_v27  ;;  %v3683_v26 = vld [vmem:[%s4301_s26 + $0x34] sm:$0xf] }
 0x2b3   : > { %v3668_v27 = vld [vmem:[%s4301_s26 + $0x8c] sm:$0xf] }
 0x2b5   : > { %v1673_v28 = vpop.permute.xlu1 %1672  ;;  %v1671_v29 = vpop.permute.xlu0 %1670  ;;  %v2323_v9 = vld [vmem:[#allocation2 + $0x530] sm:$0xff]  ;;  %v2348_v33 = vld [vmem:[#allocation2 + $0x5f8] sm:$0xff] }
 0x2b6   : > { %1689 = vst.msk [vmem:[#allocation2 + $0x60c] sm:$0xf] %vm246_vm0, %v1673_v28  ;;  %1688 = vst.msk [vmem:[#allocation2 + $0x544] sm:$0xf] %vm246_vm0, %v1671_v29  ;;  %v3684_v28 = vld [vmem:[%s4301_s26 + $0x38] sm:$0xf] }
 0x2b9   : > { %v1721_v30 = vpop.permute.xlu1 %1720  ;;  %v1719_v31 = vpop.permute.xlu0 %1718  ;;  %v2324_v32 = vld [vmem:[#allocation2 + $0x538] sm:$0xff]  ;;  %v2349_v35 = vld [vmem:[#allocation2 + $0x600] sm:$0xff] }
 0x2ba   : > { %1737 = vst.msk [vmem:[#allocation2 + $0x610] sm:$0xf] %vm246_vm0, %v1721_v30  ;;  %1736 = vst.msk [vmem:[#allocation2 + $0x548] sm:$0xf] %vm246_vm0, %v1719_v31  ;;  %v3947_v36 = vpack.c.bf16 %v2324_v32, %v2323_v9  ;;  %v3983_v37 = vpack.c.bf16 %v2349_v35, %v2348_v33  ;;  %v3669_v9 = vld [vmem:[%s4301_s26 + $0x90] sm:$0xf] }
 0x2bc   : > { %3948 = vmatpush1.bf16.msra.mxu0 %v3947_v36  ;;  %3984 = vmatpush1.bf16.msra.mxu1 %v3983_v37  ;;  %v3685_v36 = vld [vmem:[%s4301_s26 + $0x3c] sm:$0xf]  ;;  %v3670_v37 = vld [vmem:[%s4301_s26 + $0x94] sm:$0xf] }
 0x2bd   : > { %v1769_v38 = vpop.permute.xlu1 %1768  ;;  %v1767_v39 = vpop.permute.xlu0 %1766  ;;  %3949 = vmatprep.subr.bf16.mxu0 %v4160_v10  ;;  %3985 = vmatprep.subr.bf16.mxu1 %v4160_v10  ;;  %v2325_v42 = vld [vmem:[#allocation2 + $0x540] sm:$0xff]  ;;  %v2350_v46 = vld [vmem:[#allocation2 + $0x608] sm:$0xff] }
 0x2be   : > { %1785 = vst.msk [vmem:[#allocation2 + $0x614] sm:$0xf] %vm246_vm0, %v1769_v38  ;;  %1784 = vst.msk [vmem:[#allocation2 + $0x54c] sm:$0xf] %vm246_vm0, %v1767_v39  ;;  %v3686_v38 = vld [vmem:[%s4301_s26 + $0x40] sm:$0xf] }
 0x2c1   : > { %v1817_v40 = vpop.permute.xlu1 %1816  ;;  %v1815_v41 = vpop.permute.xlu0 %1814 }
 0x2c2   : > { %1833 = vst.msk [vmem:[#allocation2 + $0x618] sm:$0xf] %vm246_vm0, %v1817_v40  ;;  %1832 = vst.msk [vmem:[#allocation2 + $0x550] sm:$0xf] %vm246_vm0, %v1815_v41  ;;  %v3671_v41 = vld [vmem:[%s4301_s26 + $0x98] sm:$0xf] }
 0x2c5   : > { %v1865_v43 = vpop.permute.xlu1 %1864  ;;  %v1863_v44 = vpop.permute.xlu0 %1862  ;;  %v2326_v45 = vld [vmem:[#allocation2 + $0x548] sm:$0xff]  ;;  %v2351_v47 = vld [vmem:[#allocation2 + $0x610] sm:$0xff] }
 0x2c6   : > { %1881 = vst.msk [vmem:[#allocation2 + $0x61c] sm:$0xf] %vm246_vm0, %v1865_v43  ;;  %1880 = vst.msk [vmem:[#allocation2 + $0x554] sm:$0xf] %vm246_vm0, %v1863_v44  ;;  %v3950_v48 = vpack.c.bf16 %v2326_v45, %v2325_v42  ;;  %v3986_v49 = vpack.c.bf16 %v2351_v47, %v2350_v46  ;;  %v3672_v46 = vld [vmem:[%s4301_s26 + $0x9c] sm:$0xf] }
 0x2c8   : > { %3951 = vmatpush1.bf16.msra.mxu0 %v3950_v48  ;;  %3987 = vmatpush1.bf16.msra.mxu1 %v3986_v49  ;;  %v3687_v49 = vld [vmem:[%s4301_s26 + $0x44] sm:$0xf] }
 0x2c9   : > { %v1947_v50 = vpop.permute.xlu1 %1946  ;;  %v1945_v51 = vpop.permute.xlu0 %1944  ;;  %3952 = vmatprep.subr.bf16.mxu0 %v4160_v10  ;;  %3988 = vmatprep.subr.bf16.mxu1 %v4160_v10 }
 0x2ca   : > { %1963 = vst.msk [vmem:[#allocation2 + $0x628] sm:$0xf] %vm246_vm0, %v1947_v50  ;;  %1962 = vst.msk [vmem:[#allocation2 + $0x560] sm:$0xf] %vm246_vm0, %v1945_v51  ;;  %v3688_v50 = vld [vmem:[%s4301_s26 + $0x48] sm:$0xf] }
 0x2cd   : > { %v1995_v54 = vpop.permute.xlu1 %1994  ;;  %v1993_v8 = vpop.permute.xlu0 %1992  ;;  %v2327_v55 = vld [vmem:[#allocation2 + $0x550] sm:$0xff]  ;;  %v2352_v56 = vld [vmem:[#allocation2 + $0x618] sm:$0xff] }
 0x2ce   : > { %2011 = vst.msk [vmem:[#allocation2 + $0x62c] sm:$0xf] %vm246_vm0, %v1995_v54  ;;  %2010 = vst.msk [vmem:[#allocation2 + $0x564] sm:$0xf] %vm246_vm0, %v1993_v8  ;;  %v3953_v57 = vpack.c.bf16 %v2328_v52, %v2327_v55  ;;  %v3989_v58 = vpack.c.bf16 %v2353_v53, %v2352_v56  ;;  %v3673_v53 = vld [vmem:[%s4301_s26 + $0xa0] sm:$0xf] }
 0x2d0   : > { %3954 = vmatpush1.bf16.msra.mxu0 %v3953_v57  ;;  %3990 = vmatpush1.bf16.msra.mxu1 %v3989_v58  ;;  %v3674_v57 = vld [vmem:[%s4301_s26 + $0xa4] sm:$0xf] }
 0x2d1   : > { %v2043_v59 = vpop.permute.xlu1 %2042  ;;  %v2041_v60 = vpop.permute.xlu0 %2040  ;;  %3955 = vmatprep.subr.bf16.mxu0 %v4160_v10  ;;  %3991 = vmatprep.subr.bf16.mxu1 %v4160_v10 }
 0x2d2   : > { %2059 = vst.msk [vmem:[#allocation2 + $0x630] sm:$0xf] %vm246_vm0, %v2043_v59  ;;  %2058 = vst.msk [vmem:[#allocation2 + $0x568] sm:$0xf] %vm246_vm0, %v2041_v60  ;;  %v3689_v60 = vld [vmem:[%s4301_s26 + $0x4c] sm:$0xf] }
 0x2d5   : > { %v2091_v62 = vpop.permute.xlu1 %2090  ;;  %v2089_v63 = vpop.permute.xlu0 %2088  ;;  %v2329_v2 = vld [vmem:[#allocation2 + $0x560] sm:$0xff]  ;;  %v2354_v4 = vld [vmem:[#allocation2 + $0x628] sm:$0xff] }
 0x2d6   : > { %2107 = vst.msk [vmem:[#allocation2 + $0x634] sm:$0xf] %vm246_vm0, %v2091_v62  ;;  %2106 = vst.msk [vmem:[#allocation2 + $0x56c] sm:$0xf] %vm246_vm0, %v2089_v63  ;;  %v3690_v62 = vld [vmem:[%s4301_s26 + $0x50] sm:$0xf] }
 0x2da   : > { %v2139_v0 = vpop.permute.xlu1 %2138  ;;  %v2137_v1 = vpop.permute.xlu0 %2136 }
 0x2db   : > { %2155 = vst.msk [vmem:[#allocation2 + $0x638] sm:$0xf] %vm246_vm0, %v2139_v0  ;;  %2154 = vst.msk [vmem:[#allocation2 + $0x570] sm:$0xf] %vm246_vm0, %v2137_v1 }
 0x2dd   : > { %v2330_v3 = vld [vmem:[#allocation2 + $0x568] sm:$0xff]  ;;  %v2355_v10 = vld [vmem:[#allocation2 + $0x630] sm:$0xff] }
 0x2de   : > { %v3956_v5 = vpack.c.bf16 %v2330_v3, %v2329_v2  ;;  %v3992_v6 = vpack.c.bf16 %v2355_v10, %v2354_v4  ;;  %v3002_v7 = vpop.permute.xlu0 %3001  ;;  %v3004_v11 = vpop.permute.xlu1 %3003 }
 0x2df   : > { %v3025_v29 = vmax.f32 %v3667_v25, %v3002_v7  ;;  %v3026_v33 = vmax.f32 %v3668_v27, %v3004_v11 }
 0x2e0   : > { %3957 = vmatpush1.bf16.msra.mxu0 %v3956_v5  ;;  %3993 = vmatpush1.bf16.msra.mxu1 %v3992_v6 }
 0x2e1   : > { %2858 = vmatprep.subr.mxu0 %v4163_v34  ;;  %2931 = vmatprep.subr.mxu1 %v4163_v34 }
 0x2e2   : > { %v2331_v12 = vld [vmem:[#allocation2 + $0x570] sm:$0xf]  ;;  %v2356_v13 = vld [vmem:[#allocation2 + $0x638] sm:$0xf]  ;;  %v3006_v14 = vpop.permute.xlu0 %3005  ;;  %v3008_v15 = vpop.permute.xlu1 %3007 }
 0x2e3   : > { %v3027_v39 = vmax.f32 %v3669_v9, %v3006_v14  ;;  %v3028_v45 = vmax.f32 %v3670_v37, %v3008_v15 }
 0x2e4   : > { %3663 = vmatpush1.msk.msra.mxu0 %vm2368_vm2, %v2331_v12  ;;  %3665 = vmatpush1.msk.msra.mxu1 %vm2368_vm2, %v2356_v13 }
 0x2e5   : > { %2875 = vmatmul.mubr.f32.vlgmr.msra.gmra.mrb[6].mxu0 %v4057_v16  ;;  %2948 = vmatmul.mubr.f32.vlgmr.msra.gmra.mrb[6].mxu1 %v4057_v16 }
 0x2e6   : > { %v3010_v34 = vpop.permute.xlu0 %3009  ;;  %v3012_v17 = vpop.permute.xlu1 %3011 }
 0x2e7   : > { %v3029_v51 = vmax.f32 %v3671_v41, %v3010_v34  ;;  %v3030_v8 = vmax.f32 %v3672_v46, %v3012_v17 }
 0x2e8   : > { %v5561_v18 = vpop.f32.mrb[2].mxu0  ;;  %v5563_v19 = vpop.f32.mrb[2].mxu1 }
 0x2e9   : > { %v2586_v61 = vpop.f32.mrb[3].mxu0  ;;  %v2659_v20 = vpop.f32.mrb[3].mxu1 }
 0x2eb   : > { %v3014_v23 = vpop.permute.xlu0 %3013  ;;  %v3016_v24 = vpop.permute.xlu1 %3015 }
 0x2ec   : > { %v3031_v63 = vmax.f32 %v3673_v53, %v3014_v23  ;;  %v3032_v2 = vmax.f32 %v3674_v57, %v3016_v24 }
 0x2f2   : > { %v3042_v30 = vpop.permute.xlu0 %3041  ;;  %v3044_v31 = vpop.permute.xlu1 %3043 }
 0x2f3   : > { %v3065_v32 = vmax.f32 %v3683_v26, %v3042_v30  ;;  %v3066_v35 = vmax.f32 %v3684_v28, %v3044_v31 }
 0x2f5   : > { %v3073_v40 = vmax.f32 %v3025_v29, %v3065_v32  ;;  %v3074_v47 = vmax.f32 %v3026_v33, %v3066_v35  ;;  %v4165_v33 = vmov (!%p3699_p6), 0.0  }
 0x2f6   : > { %v3046_v42 = vpop.permute.xlu0 %3045  ;;  %v3048_v43 = vpop.permute.xlu1 %3047  ;;  %3126 = vst.msk [vmem:[%s5726_s4] sm:$0xff] (!%p3699_p6), %vm3125_vm3, %v4165_v33  ;;  %3127 = vst.msk [vmem:[%s5727_s5] sm:$0xff] (!%p3699_p6), %vm3125_vm3, %v4165_v33 }
 0x2f7   : > { %v3067_v44 = vmax.f32 %v3685_v36, %v3046_v42  ;;  %3089 = vrot.lane.b32.xlu1 %v3073_v40, %s4159_s11  ;;  %v3068_v48 = vmax.f32 %v3686_v38, %v3048_v43 }
 0x2f9   : > { %v3075_v52 = vmax.f32 %v3027_v39, %v3067_v44  ;;  %v3076_v58 = vmax.f32 %v3028_v45, %v3068_v48 }
 0x2fa   : > { %v3050_v54 = vpop.permute.xlu0 %3049  ;;  %v3052_v55 = vpop.permute.xlu1 %3051 }
 0x2fb   : > { %v3069_v56 = vmax.f32 %v3687_v49, %v3050_v54  ;;  %3091 = vrot.lane.b32.xlu1 %v3074_v47, %s4159_s11  ;;  %3093 = vrot.lane.b32.xlu0 %v3075_v52, %s4159_s11  ;;  %v3070_v59 = vmax.f32 %v3688_v50, %v3052_v55 }
 0x2fd   : > { %v3077_v0 = vmax.f32 %v3029_v51, %v3069_v56  ;;  %v3078_v10 = vmax.f32 %v3030_v8, %v3070_v59 }
 0x2fe   : > { %v3054_v1 = vpop.permute.xlu0 %3053  ;;  %v3056_v3 = vpop.permute.xlu1 %3055 }
 0x2ff   : > { %v3071_v4 = vmax.f32 %v3689_v60, %v3054_v1  ;;  %3095 = vrot.lane.b32.xlu1 %v3076_v58, %s4159_s11  ;;  %3097 = vrot.lane.b32.xlu0 %v3077_v0, %s4159_s11  ;;  %v3072_v5 = vmax.f32 %v3690_v62, %v3056_v3 }
 0x301   : > { %v3079_v6 = vmax.f32 %v3031_v63, %v3071_v4  ;;  %v3080_v7 = vmax.f32 %v3032_v2, %v3072_v5 }
 0x303   : > { %3099 = vrot.lane.b32.xlu1 %v3078_v10, %s4159_s11  ;;  %3101 = vrot.lane.b32.xlu0 %v3079_v6, %s4159_s11 }
 0x307   : > { %3103 = vrot.lane.b32.xlu1 %v3080_v7, %s4159_s11 }
 0x310   : > { %v2361_v11 = vpop.permute.xlu0 %2360 }
 0x311   : > { %v2439_v12 = vadd.f32 %v5473_v21, %v2361_v11  ;;  %v2512_v13 = vadd.f32 %v5475_v22, %v2361_v11  ;;  %v2585_v14 = vadd.f32 %v5561_v18, %v2361_v11  ;;  %v2658_v15 = vadd.f32 %v5563_v19, %v2361_v11 }
 0x313   : > { %2953 = vst.msk [vmem:[%s5594_s23] sm:$0xf] %vm246_vm0, %v2439_v12  ;;  %2954 = vst.msk [vmem:[%s5594_s23 + $0x8] sm:$0xf] %vm246_vm0, %v2512_v13 }
 0x314   : > { %2955 = vst.msk [vmem:[%s5594_s23 + $0x10] sm:$0xf] %vm246_vm0, %v2585_v14  ;;  %2956 = vst.msk [vmem:[%s5594_s23 + $0x18] sm:$0xf] %vm246_vm0, %v2658_v15 }
 0x350   : > { %v2730_v21 = vpop.f32.mrb[4].mxu0  ;;  %v2803_v22 = vpop.f32.mrb[4].mxu1 }
 0x351   : > { %v2731_v16 = vadd.f32 %v2730_v21, %v2361_v11  ;;  %v2804_v34 = vadd.f32 %v2803_v22, %v2361_v11  ;;  %v2732_v17 = vpop.f32.mrb[5].mxu0  ;;  %v2805_v18 = vpop.f32.mrb[5].mxu1 }
 0x353   : > { %2957 = vst.msk [vmem:[%s5594_s23 + $0x20] sm:$0xf] %vm246_vm0, %v2731_v16  ;;  %2958 = vst.msk [vmem:[%s5594_s23 + $0x28] sm:$0xf] %vm246_vm0, %v2804_v34 }
 0x369   : > { %v3090_v19 = vpop.permute.xlu1 %3089 }
 0x36a   : > { %3113 = vst.msk [vmem:[%s5594_s23 + $0x4] sm:$0xf] %vm246_vm0, %v3090_v19 }
 0x36d   : > { %v3092_v61 = vpop.permute.xlu1 %3091  ;;  %v3094_v20 = vpop.permute.xlu0 %3093 }
 0x36e   : > { %3114 = vst.msk [vmem:[%s5594_s23 + $0xc] sm:$0xf] %vm246_vm0, %v3092_v61  ;;  %3115 = vst.msk [vmem:[%s5594_s23 + $0x14] sm:$0xf] %vm246_vm0, %v3094_v20 }
 0x371   : > { %v3096_v23 = vpop.permute.xlu1 %3095  ;;  %v3098_v24 = vpop.permute.xlu0 %3097 }
 0x372   : > { %3116 = vst.msk [vmem:[%s5594_s23 + $0x1c] sm:$0xf] %vm246_vm0, %v3096_v23  ;;  %3117 = vst.msk [vmem:[%s5594_s23 + $0x24] sm:$0xf] %vm246_vm0, %v3098_v24 }
 0x375   : > { %v3100_v25 = vpop.permute.xlu1 %3099  ;;  %v3102_v26 = vpop.permute.xlu0 %3101 }
 0x376   : > { %3118 = vst.msk [vmem:[%s5594_s23 + $0x2c] sm:$0xf] %vm246_vm0, %v3100_v25  ;;  %3119 = vst.msk [vmem:[%s5594_s23 + $0x34] sm:$0xf] %vm246_vm0, %v3102_v26 }
 0x379   : > { %v3104_v27 = vpop.permute.xlu1 %3103 }
 0x37a   : > { %3120 = vst.msk [vmem:[%s5594_s23 + $0x3c] sm:$0xf] %vm246_vm0, %v3104_v27 }
 0x3b5   : > { %3124 = sbr.rel (%p3699_p6) target bundleno = 956 (0x3bc), region = 40 }
 0x3b8   : > { %v2876_v28 = vpop.f32.mrb[6].mxu0  ;;  %v2949_v29 = vpop.f32.mrb[6].mxu1 }
 0x3b9   : > { %v2877_v9 = vadd.f32 %v2876_v28, %v2361_v11  ;;  %v2950_v30 = vadd.f32 %v2949_v29, %v2361_v11  ;;  %v2878_v31 = vpop.f32.mrb[7].mxu0  ;;  %v2951_v32 = vpop.f32.mrb[7].mxu1 }
 0x3bb   : > { %2959 = vst.msk [vmem:[%s5594_s23 + $0x30] sm:$0xf] %vm246_vm0, %v2877_v9  ;;  %2960 = vst.msk [vmem:[%s5594_s23 + $0x38] sm:$0xf] %vm246_vm0, %v2950_v30 }
 0x3bc PF: > { %v3128_v35 = vld [vmem:[%s5594_s23] sm:$0xff]  ;;  %v3129_v36 = vld [vmem:[%s5594_s23 + $0x8] sm:$0xff]  ;;  %v3130_v37 = vld [vmem:[%s5594_s23 + $0x10] sm:$0xff]  ;;  %vm3137_vm4 = vcmask 64512   ;;  %s3705_s12 = sshll.u32 %s4220_s22, 10  ;;  %s3200_s14 = sshll.u32 %s5594_s23, 4  ;;  %s5666_s14 = int_to_ptr.vmem [resolvable:$true] %s3200_s14 }
 0x3bd   : > { %v3131_v38 = vld [vmem:[%s5594_s23 + $0x18] sm:$0xff]  ;;  %v3138_v39 = vsel %vm3137_vm4, %v3128_v35, 0.0  ;;  %v3139_v40 = vsel %vm3137_vm4, %v3129_v36, 0.0  ;;  %v3141_v41 = vsel %vm3137_vm4, %v3130_v37, 0.0  ;;  %v3159_v42 = vmul.f32 %v3128_v35, %v3128_v35  ;;  %v3132_v43 = vld [vmem:[%s5594_s23 + $0x20] sm:$0xff]  ;;  %v3133_v48 = vld [vmem:[%s5594_s23 + $0x28] sm:$0xff]  ;;  %s5664_s6 = scalar_lea.hbm %s5725_s3, %s3705_s12 }
 0x3be   : > { %v3140_v44 = vadd.f32 %v3139_v40, %v3138_v39  ;;  %v3143_v45 = vsel %vm3137_vm4, %v3131_v38, 0.0  ;;  %v3160_v46 = vmul.f32 %v3129_v36, %v3129_v36  ;;  %v3161_v47 = vmul.f32 %v3130_v37, %v3130_v37  ;;  %s3187_s8 = scalar_lea.sflag [#allocation5], %s4297_s17  ;;  %s4088_s9 = scalar_lea.vmem %s5666_s14, 1024 }
 0x3bf   : > { %v3162_v50 = vmul.f32 %v3131_v38, %v3131_v38  ;;  %v3145_v51 = vsel %vm3137_vm4, %v3132_v43, 0.0  ;;  %v3163_v52 = vmul.f32 %v3132_v43, %v3132_v43  ;;  %v3167_v53 = vsel %vm3137_vm4, %v3159_v42, 0.0  ;;  %p4089_p11 = scmp.ne.s32.totalorder %s5666_s14, %s4088_s9  ;;  %p5733_p12 = scmp.ne.s32.totalorder %s5730_s29, 0 }
 0x3c0   : > { %v3142_v49 = vadd.f32 %v3141_v41, %v3140_v44  ;;  %v3168_v54 = vsel %vm3137_vm4, %v3160_v46, 0.0  ;;  %v3170_v57 = vsel %vm3137_vm4, %v3161_v47, 0.0  ;;  %v3147_v58 = vsel %vm3137_vm4, %v3133_v48, 0.0  ;;  %s4166_s10 = smov [#allocation6]  }
 0x3c1   : > { %v3169_v56 = vadd.f32 %v3168_v54, %v3167_v53  ;;  %v3164_v59 = vmul.f32 %v3133_v48, %v3133_v48  ;;  %v3172_v60 = vsel %vm3137_vm4, %v3162_v50, 0.0  ;;  %v3174_v3 = vsel %vm3137_vm4, %v3163_v52, 0.0  ;;  %p4090_p13 = pnand %p4089_p11, %p5733_p12  ;;  %s4092_s13 = sshll.u32 %s4166_s10, 4  ;;  %s4093_s13 = int_to_ptr.vmem [resolvable:$false] %s4092_s13 }
 0x3c2   : > { %v3134_v8 = vld [vmem:[%s5594_s23 + $0x30] sm:$0xff]  ;;  %v3144_v55 = vadd.f32 %v3143_v45, %v3142_v49  ;;  %v3135_v62 = vld [vmem:[%s5594_s23 + $0x38] sm:$0xff]  ;;  %s4094_s22 = scalar_lea.vmem %s4093_s13, 2048  ;;  %p4095_p10 = scmp.lt.s32.totalorder %s5666_s14, %s4093_s13 }
 0x3c3   : > { %v3171_v0 = vadd.f32 %v3170_v57, %v3169_v56  ;;  %v3149_v1 = vsel %vm3137_vm4, %v3134_v8, 0.0  ;;  %v3165_v2 = vmul.f32 %v3134_v8, %v3134_v8  ;;  %v3151_v5 = vsel %vm3137_vm4, %v3135_v62, 0.0  ;;  %p4091_p8 = pneg %p4090_p13  ;;  %p4096_p0 = scmp.lt.s32.totalorder %s4094_s22, %s4088_s9 }
 0x3c4   : > { %v3146_v63 = vadd.f32 %v3145_v51, %v3144_v55  ;;  %v3166_v6 = vmul.f32 %v3135_v62, %v3135_v62  ;;  %v3176_v7 = vsel %vm3137_vm4, %v3164_v59, 0.0 }
 0x3c5   : > { %v3173_v10 = vadd.f32 %v3172_v60, %v3171_v0  ;;  %v3178_v13 = vsel %vm3137_vm4, %v3165_v2, 0.0  ;;  %p4097_p2 = por %p4096_p0, %p4095_p10 }
 0x3c6   : > { %v3148_v4 = vadd.f32 %v3147_v58, %v3146_v63  ;;  %v3180_v21 = vsel %vm3137_vm4, %v3166_v6, 0.0 }
 0x3c7   : > { %v3175_v12 = vadd.f32 %v3174_v3, %v3173_v10  ;;  %p4098_p4 = pnand %p4097_p2, %p4091_p8 }
 0x3c8   : > { %v3150_v11 = vadd.f32 %v3149_v1, %v3148_v4 }
 0x3c9   : > { %v3177_v15 = vadd.f32 %v3176_v7, %v3175_v12 }
 0x3ca   : > { %v3152_v14 = vadd.f32 %v3151_v5, %v3150_v11 }
 0x3cb   : > { %v3179_v22 = vadd.f32 %v3178_v13, %v3177_v15 }
 0x3cc   : > { %3153 = vadd.xlane.f32.xlu0 %v3152_v14 }
 0x3cd   : > { %v3181_v16 = vadd.f32 %v3180_v21, %v3179_v22 }
 0x3d0   : > { %3182 = vadd.xlane.f32.xlu0 %v3181_v16 }
 0x3d1   : > { %4101 = shalt.err (!%p4098_p4)
}
 0x3d2   : > { %s4102_s16 = scalar_lea.hbm %s5664_s6, 1024  ;;  %s4106_s26 = scalar_lea.hbm %s5725_s3, 2048 }
 0x3d3   : > { %p4103_p5 = scmp.ne.s32.totalorder %s5664_s6, %s4102_s16  ;;  %p4107_p1 = scmp.lt.u32.totalorder %s5664_s6, %s5725_s3 }
 0x3d4   : > { %p4108_p3 = scmp.lt.u32.totalorder %s4106_s26, %s4102_s16  ;;  %p4110_p11 = scmp.lt.u32.totalorder %s4102_s16, %s5664_s6 }
 0x3d5   : > { %p4104_p7 = pnand %p4103_p5, %p5733_p12 }
 0x3d6   : > { %p4109_p6 = por %p4108_p3, %p4107_p1 }
 0x3d7   : > { %p4105_p9 = pneg %p4104_p7 }
 0x3d8   : > { %p4111_p13 = por %p4110_p11, %p4109_p6 }
 0x3da   : > { %p4112_p8 = pnand %p4111_p13, %p4105_p9 }
 0x3dc   : > { %4115 = shalt.err (!%p4112_p8)
}
 0x3dd   : > { %s4167_s12 = smov 128   ;;  %s4168_s15 = smov 8   ;;  %v3136_v34 = vld [vmem:[%s5726_s4] sm:$0xff]  ;;  %vm3156_vm5 = vcmask 7168  }
 0x3de   : > { %3999 = dma.vmem_to_hbm [thread:$0]  (%p5733_p12), %s5666_s14, 1024, %s5664_s6, %s3187_s8, %s4167_s12, %s4167_s12, %s4168_s15  }
 0x3df   : > { %v3158_v19 = vld [vmem:[%s5727_s5] sm:$0xff] }
 0x459   : > { %v3154_v17 = vpop.xlane.xlu0 %3153 }
 0x45a   : > { %v3155_v18 = vadd.f32 %v3154_v17, %v3136_v34 }
 0x45c   : > { %3157 = vst.msk [vmem:[%s5726_s4] sm:$0xff] %vm3156_vm5, %v3155_v18 }
 0x45d   : > { %v3183_v61 = vpop.xlane.xlu0 %3182 }
 0x45e   : > { %v3184_v20 = vadd.f32 %v3183_v61, %v3158_v19 }
 0x460   : > { %3185 = vst.msk [vmem:[%s5727_s5] sm:$0xff] %vm3156_vm5, %v3184_v20 }
 0x461 PF: > { %s3227_s14 = sand.u32 1, %s4142_s18   ;;  %p5734_p12 = scmp.ne.s32.totalorder %s5731_s30, 0 }
 0x462   : > { %p5735_p10 = scmp.ge.s32.totalorder %s4154_s21, 2  ;;  %s3228_s6 = scalar_lea.sflag [#allocation5], %s3227_s14 }
 0x464   : > { %p4006_p0 = pnand %p5735_p10, %p5734_p12 }
 0x466   : > { %4137 = dma.done.wait (!%p4006_p0), %s3228_s6, 1024  }
 0x467   : > { %4139 = vsyncadd (!%p4006_p0), %s3228_s6, 4294966272  ;;  %p19_p2 = scmp.ge.s32.totalorder %s4224_s24, 4   ;;  %s5736_s18 = smov %s4146_s19 }
 0x468   : > { %s5737_s19 = smov %s4150_s20  ;;  %s5738_s20 = smov %s4236_s27 }
 0x469   : > { %s5739_s21 = smov %s4224_s24  ;;  %21 = sbr.rel (!%p19_p2) target bundleno = 5 (0x5), region = 110 }
 0x470   :  { %3233 = vsyncpa [#allocation4], 1 }
 0x471   :  { %3235 = vsyncpa [#allocation4 + $0x1], 1 }
 0x472   :  { %3236 = vsyncpa [#allocation5], 1 }
 0x473   :  { %3238 = vsyncpa [#allocation5 + $0x1], 1 }

</bundles_post_ra>
